<compile_context>
chip_gen: v5e
topology: v5e:2x2
jax: 0.10.0
libtpu: 0.0.40
codegen_flags: <defaults>
</compile_context>

<pallas_src>
import functools

import jax
import jax.numpy as jnp
from jax.experimental import pallas as pl
from jax.experimental.pallas import tpu as pltpu


def _make_basic_block_kernel(H, W, C, compute_dtype):
    """Fused conv1+bn1+relu+conv2+bn2+add+relu for one NHWC image per grid step."""
    HW = H * W

    def kernel(x_ref, w1_ref, s1_ref, b1_ref, w2_ref, s2_ref, b2_ref,
               out_ref, pad_ref, col_ref):
        f32 = jnp.float32
        x = x_ref[0].astype(f32)                               # (H, W, C)

        # Zero the padded scratch once per grid step; the interior is fully
        # overwritten below for each conv, the border stays zero for both.
        pad_ref[...] = jnp.zeros_like(pad_ref)

        def conv3x3_bn(src_hwc, w_ref, s_ref, b_ref):
            # place source in the zero-bordered padded VMEM scratch
            pad_ref[1:H + 1, 1:W + 1, :] = src_hwc
            xp = pad_ref[...]                                  # (H+2, W+2, C)
            # im2col: nine shifted (H*W, C) windows -> one (H*W, 9*C) slab
            for kh in range(3):
                for kw in range(3):
                    t = kh * 3 + kw
                    win = xp[kh:kh + H, kw:kw + W, :].reshape(HW, C)
                    col_ref[:, t * C:(t + 1) * C] = win
            # single MXU contraction with K = 9*C, f32 accumulation
            acc = jnp.dot(col_ref[...].astype(compute_dtype),
                          w_ref[...].astype(compute_dtype),
                          preferred_element_type=f32)          # (H*W, C)
            # folded BatchNorm (inference mode) epilogue in f32
            return acc * s_ref[...].astype(f32) + b_ref[...].astype(f32)

        # conv1 + bn1 + relu   (intermediate never leaves VMEM)
        mid = jnp.maximum(conv3x3_bn(x, w1_ref, s1_ref, b1_ref), 0.0)    # (H*W, C)
        # conv2 + bn2
        out = conv3x3_bn(mid.reshape(H, W, C), w2_ref, s2_ref, b2_ref)   # (H*W, C)
        # residual add (x still in vregs) + final relu
        out = jnp.maximum(out + x.reshape(HW, C), 0.0)
        # lane-dense NCHW store: (H*W, C) -> (C, H*W); last dim = H*W
        out_ref[0] = jnp.transpose(out).astype(out_ref.dtype)

    return kernel


@functools.partial(jax.jit, static_argnames=("compute_dtype",))
def basic_block_forward(x_nchw, w1, s1, b1, w2, s2, b2, *, compute_dtype=None):
    """x_nchw: (N, C, H, W). w1/w2: (3, 3, Cin, Cout) HWIO. s*/b*: folded BN (C,)."""
    N, C, H, W = x_nchw.shape
    assert w1.shape == (3, 3, C, C) and w2.shape == (3, 3, C, C), (
        "fused residual path requires inplanes == planes (stride=1, no downsample)")
    if compute_dtype is None:
        compute_dtype = x_nchw.dtype

    # NCHW -> NHWC for the kernel's channels-in-lanes compute layout.
    x_nhwc = jnp.transpose(x_nchw, (0, 2, 3, 1))

    # (3,3,Cin,Cout) -> (9*Cin, Cout); row order (kh, kw, cin) matches the im2col slab.
    w1_2d = w1.reshape(9 * C, C)
    w2_2d = w2.reshape(9 * C, C)
    s1r, b1r = s1.reshape(1, C), b1.reshape(1, C)
    s2r, b2r = s2.reshape(1, C), b2.reshape(1, C)

    kernel = _make_basic_block_kernel(H, W, C, compute_dtype)
    full2d = lambda n: (0, 0)

    out_flat = pl.pallas_call(
        kernel,
        grid=(N,),
        in_specs=[
            pl.BlockSpec((1, H, W, C), lambda n: (n, 0, 0, 0)),   # x (NHWC)
            pl.BlockSpec((9 * C, C), full2d),                     # w1 (9*Cin, Cout)
            pl.BlockSpec((1, C), full2d),                         # bn1 scale
            pl.BlockSpec((1, C), full2d),                         # bn1 bias
            pl.BlockSpec((9 * C, C), full2d),                     # w2
            pl.BlockSpec((1, C), full2d),                         # bn2 scale
            pl.BlockSpec((1, C), full2d),                         # bn2 bias
        ],
        out_specs=pl.BlockSpec((1, C, H * W), lambda n: (n, 0, 0)),
        out_shape=jax.ShapeDtypeStruct((N, C, H * W), x_nchw.dtype),
        scratch_shapes=[
            pltpu.VMEM((H + 2, W + 2, C), jnp.float32),   # shared zero-padded buffer
            pltpu.VMEM((H * W, 9 * C), jnp.float32),      # im2col slab
        ],
        compiler_params=pltpu.CompilerParams(
            dimension_semantics=("parallel",),
            vmem_limit_bytes=32 * 1024 * 1024,
        ),
    )(x_nhwc, w1_2d, s1r, b1r, w2_2d, s2r, b2r)

    # Free reshape: kernel already produced NCHW-flattened output.
    return out_flat.reshape(N, C, H, W)


def fold_bn(gamma, beta, mean, var, eps=1e-5):
    scale = gamma / jnp.sqrt(var + eps)
    bias = beta - mean * scale
    return scale, bias


def _reference(x_nchw, w1, s1, b1, w2, s2, b2):
    """Pure-JAX reference (NCHW convs) for correctness checking."""
    def conv(x, w_hwio):
        w_oihw = jnp.transpose(w_hwio, (3, 2, 0, 1))
        return jax.lax.conv_general_dilated(
            x, w_oihw, window_strides=(1, 1), padding=((1, 1), (1, 1)),
            dimension_numbers=("NCHW", "OIHW", "NCHW"))
    def bn(x, s, b):
        return x * s[None, :, None, None] + b[None, :, None, None]
    out = jax.nn.relu(bn(conv(x_nchw, w1), s1, b1))
    out = bn(conv(out, w2), s2, b2) + x_nchw
    return jax.nn.relu(out)


if __name__ == "__main__":
    key = jax.random.PRNGKey(0)
    N, C, H, W = 2, 4, 16, 16        # inplanes = planes = 4, expansion = 1, stride = 1
    k = jax.random.split(key, 12)

    x = jax.random.normal(k[0], (N, C, H, W), jnp.float32)

    # conv weights, stored HWIO (3,3,Cin,Cout)
    w1 = jax.random.normal(k[1], (3, 3, C, C), jnp.float32) * 0.1
    w2 = jax.random.normal(k[2], (3, 3, C, C), jnp.float32) * 0.1

    # BatchNorm params (inference mode), deterministic
    g1 = 1.0 + 0.1 * jax.random.normal(k[3], (C,), jnp.float32)
    be1 = 0.1 * jax.random.normal(k[4], (C,), jnp.float32)
    m1 = 0.1 * jax.random.normal(k[5], (C,), jnp.float32)
    v1 = jnp.abs(jax.random.normal(k[6], (C,), jnp.float32)) + 0.5
    g2 = 1.0 + 0.1 * jax.random.normal(k[7], (C,), jnp.float32)   # last_bn_0_init=False
    be2 = 0.1 * jax.random.normal(k[8], (C,), jnp.float32)
    m2 = 0.1 * jax.random.normal(k[9], (C,), jnp.float32)
    v2 = jnp.abs(jax.random.normal(k[10], (C,), jnp.float32)) + 0.5

    s1, b1 = fold_bn(g1, be1, m1, v1)
    s2, b2 = fold_bn(g2, be2, m2, v2)

    out = basic_block_forward(x, w1, s1, b1, w2, s2, b2)
    out = jax.block_until_ready(out)

    ref = _reference(x, w1, s1, b1, w2, s2, b2)
    assert out.shape == (N, C, H, W) and out.dtype == jnp.float32
    assert jnp.allclose(out, ref, atol=1e-2, rtol=1e-2)

    print("KERNEL_OK")
</pallas_src>

<mosaic_0001>
module attributes {stable_mosaic.version = 11 : i64} {
  func.func @kernel(%arg0: i32, %arg1: memref<1x16x16x4xf32, #tpu.memory_space<vmem>>, %arg2: memref<36x4xf32, #tpu.memory_space<vmem>>, %arg3: memref<1x4xf32, #tpu.memory_space<vmem>>, %arg4: memref<1x4xf32, #tpu.memory_space<vmem>>, %arg5: memref<36x4xf32, #tpu.memory_space<vmem>>, %arg6: memref<1x4xf32, #tpu.memory_space<vmem>>, %arg7: memref<1x4xf32, #tpu.memory_space<vmem>>, %arg8: memref<1x4x256xf32, #tpu.memory_space<vmem>>, %arg9: memref<18x18x4xf32, #tpu.memory_space<vmem>>, %arg10: memref<256x36xf32, #tpu.memory_space<vmem>>) attributes {dimension_semantics = [#tpu.dimension_semantics<parallel>], iteration_bounds = array<i64: 2>, scalar_prefetch = 0 : i64, scratch_operands = 2 : i64, tpu.core_type = #tpu.core_type<tc>, window_params = [{transform_indices = @transform_0, window_bounds = array<i64: 1, 16, 16, 4>}, {pipeline_mode = #tpu.pipeline_mode<synchronous>, transform_indices = @transform_1, window_bounds = array<i64: 36, 4>}, {pipeline_mode = #tpu.pipeline_mode<synchronous>, transform_indices = @transform_2, window_bounds = array<i64: 1, 4>}, {pipeline_mode = #tpu.pipeline_mode<synchronous>, transform_indices = @transform_3, window_bounds = array<i64: 1, 4>}, {pipeline_mode = #tpu.pipeline_mode<synchronous>, transform_indices = @transform_4, window_bounds = array<i64: 36, 4>}, {pipeline_mode = #tpu.pipeline_mode<synchronous>, transform_indices = @transform_5, window_bounds = array<i64: 1, 4>}, {pipeline_mode = #tpu.pipeline_mode<synchronous>, transform_indices = @transform_6, window_bounds = array<i64: 1, 4>}, {transform_indices = @transform_7, window_bounds = array<i64: 1, 4, 256>}]} {
    %c0 = arith.constant 0 : index
    %c0_0 = arith.constant 0 : index
    %c0_1 = arith.constant 0 : index
    %c0_2 = arith.constant 0 : index
    %0 = vector.load %arg1[%c0, %c0_0, %c0_1, %c0_2] : memref<1x16x16x4xf32, #tpu.memory_space<vmem>>, vector<1x16x16x4xf32>
    %1 = vector.shape_cast %0 : vector<1x16x16x4xf32> to vector<16x16x4xf32>
    %cst = arith.constant 0.000000e+00 : f32
    %2 = vector.broadcast %cst : f32 to vector<18x18x4xf32>
    %c0_3 = arith.constant 0 : index
    %c0_4 = arith.constant 0 : index
    %c0_5 = arith.constant 0 : index
    %3 = vector.load %arg9[%c0_3, %c0_4, %c0_5] : memref<18x18x4xf32, #tpu.memory_space<vmem>>, vector<18x18x4xf32>
    tpu.vector_store %arg9[%c0_3, %c0_4, %c0_5], %2 {strides = array<i32>} : memref<18x18x4xf32, #tpu.memory_space<vmem>>, vector<18x18x4xf32>,
    %c1 = arith.constant 1 : index
    %c1_6 = arith.constant 1 : index
    %c0_7 = arith.constant 0 : index
    %4 = vector.load %arg9[%c1, %c1_6, %c0_7] : memref<18x18x4xf32, #tpu.memory_space<vmem>>, vector<16x16x4xf32>
    tpu.vector_store %arg9[%c1, %c1_6, %c0_7], %1 {strides = array<i32>} : memref<18x18x4xf32, #tpu.memory_space<vmem>>, vector<16x16x4xf32>,
    %c0_8 = arith.constant 0 : index
    %c0_9 = arith.constant 0 : index
    %c0_10 = arith.constant 0 : index
    %5 = vector.load %arg9[%c0_8, %c0_9, %c0_10] : memref<18x18x4xf32, #tpu.memory_space<vmem>>, vector<18x18x4xf32>
    %6 = vector.extract_strided_slice %5 {offsets = [0, 0, 0], sizes = [16, 16, 4], strides = [1, 1, 1]} : vector<18x18x4xf32> to vector<16x16x4xf32>
    %7 = vector.shape_cast %6 : vector<16x16x4xf32> to vector<256x4xf32>
    %c0_11 = arith.constant 0 : index
    %c0_12 = arith.constant 0 : index
    %8 = vector.load %arg10[%c0_11, %c0_12] : memref<256x36xf32, #tpu.memory_space<vmem>>, vector<256x4xf32>
    tpu.vector_store %arg10[%c0_11, %c0_12], %7 {strides = array<i32>} : memref<256x36xf32, #tpu.memory_space<vmem>>, vector<256x4xf32>,
    %9 = vector.extract_strided_slice %5 {offsets = [0, 1, 0], sizes = [16, 16, 4], strides = [1, 1, 1]} : vector<18x18x4xf32> to vector<16x16x4xf32>
    %10 = vector.shape_cast %9 : vector<16x16x4xf32> to vector<256x4xf32>
    %c0_13 = arith.constant 0 : index
    %c4 = arith.constant 4 : index
    %11 = vector.load %arg10[%c0_13, %c4] : memref<256x36xf32, #tpu.memory_space<vmem>>, vector<256x4xf32>
    tpu.vector_store %arg10[%c0_13, %c4], %10 {strides = array<i32>} : memref<256x36xf32, #tpu.memory_space<vmem>>, vector<256x4xf32>,
    %12 = vector.extract_strided_slice %5 {offsets = [0, 2, 0], sizes = [16, 16, 4], strides = [1, 1, 1]} : vector<18x18x4xf32> to vector<16x16x4xf32>
    %13 = vector.shape_cast %12 : vector<16x16x4xf32> to vector<256x4xf32>
    %c0_14 = arith.constant 0 : index
    %c8 = arith.constant 8 : index
    %14 = vector.load %arg10[%c0_14, %c8] : memref<256x36xf32, #tpu.memory_space<vmem>>, vector<256x4xf32>
    tpu.vector_store %arg10[%c0_14, %c8], %13 {strides = array<i32>} : memref<256x36xf32, #tpu.memory_space<vmem>>, vector<256x4xf32>,
    %15 = vector.extract_strided_slice %5 {offsets = [1, 0, 0], sizes = [16, 16, 4], strides = [1, 1, 1]} : vector<18x18x4xf32> to vector<16x16x4xf32>
    %16 = vector.shape_cast %15 : vector<16x16x4xf32> to vector<256x4xf32>
    %c0_15 = arith.constant 0 : index
    %c12 = arith.constant 12 : index
    %17 = vector.load %arg10[%c0_15, %c12] : memref<256x36xf32, #tpu.memory_space<vmem>>, vector<256x4xf32>
    tpu.vector_store %arg10[%c0_15, %c12], %16 {strides = array<i32>} : memref<256x36xf32, #tpu.memory_space<vmem>>, vector<256x4xf32>,
    %18 = vector.extract_strided_slice %5 {offsets = [1, 1, 0], sizes = [16, 16, 4], strides = [1, 1, 1]} : vector<18x18x4xf32> to vector<16x16x4xf32>
    %19 = vector.shape_cast %18 : vector<16x16x4xf32> to vector<256x4xf32>
    %c0_16 = arith.constant 0 : index
    %c16 = arith.constant 16 : index
    %20 = vector.load %arg10[%c0_16, %c16] : memref<256x36xf32, #tpu.memory_space<vmem>>, vector<256x4xf32>
    tpu.vector_store %arg10[%c0_16, %c16], %19 {strides = array<i32>} : memref<256x36xf32, #tpu.memory_space<vmem>>, vector<256x4xf32>,
    %21 = vector.extract_strided_slice %5 {offsets = [1, 2, 0], sizes = [16, 16, 4], strides = [1, 1, 1]} : vector<18x18x4xf32> to vector<16x16x4xf32>
    %22 = vector.shape_cast %21 : vector<16x16x4xf32> to vector<256x4xf32>
    %c0_17 = arith.constant 0 : index
    %c20 = arith.constant 20 : index
    %23 = vector.load %arg10[%c0_17, %c20] : memref<256x36xf32, #tpu.memory_space<vmem>>, vector<256x4xf32>
    tpu.vector_store %arg10[%c0_17, %c20], %22 {strides = array<i32>} : memref<256x36xf32, #tpu.memory_space<vmem>>, vector<256x4xf32>,
    %24 = vector.extract_strided_slice %5 {offsets = [2, 0, 0], sizes = [16, 16, 4], strides = [1, 1, 1]} : vector<18x18x4xf32> to vector<16x16x4xf32>
    %25 = vector.shape_cast %24 : vector<16x16x4xf32> to vector<256x4xf32>
    %c0_18 = arith.constant 0 : index
    %c24 = arith.constant 24 : index
    %26 = vector.load %arg10[%c0_18, %c24] : memref<256x36xf32, #tpu.memory_space<vmem>>, vector<256x4xf32>
    tpu.vector_store %arg10[%c0_18, %c24], %25 {strides = array<i32>} : memref<256x36xf32, #tpu.memory_space<vmem>>, vector<256x4xf32>,
    %27 = vector.extract_strided_slice %5 {offsets = [2, 1, 0], sizes = [16, 16, 4], strides = [1, 1, 1]} : vector<18x18x4xf32> to vector<16x16x4xf32>
    %28 = vector.shape_cast %27 : vector<16x16x4xf32> to vector<256x4xf32>
    %c0_19 = arith.constant 0 : index
    %c28 = arith.constant 28 : index
    %29 = vector.load %arg10[%c0_19, %c28] : memref<256x36xf32, #tpu.memory_space<vmem>>, vector<256x4xf32>
    tpu.vector_store %arg10[%c0_19, %c28], %28 {strides = array<i32>} : memref<256x36xf32, #tpu.memory_space<vmem>>, vector<256x4xf32>,
    %30 = vector.extract_strided_slice %5 {offsets = [2, 2, 0], sizes = [16, 16, 4], strides = [1, 1, 1]} : vector<18x18x4xf32> to vector<16x16x4xf32>
    %31 = vector.shape_cast %30 : vector<16x16x4xf32> to vector<256x4xf32>
    %c0_20 = arith.constant 0 : index
    %c32 = arith.constant 32 : index
    %32 = vector.load %arg10[%c0_20, %c32] : memref<256x36xf32, #tpu.memory_space<vmem>>, vector<256x4xf32>
    tpu.vector_store %arg10[%c0_20, %c32], %31 {strides = array<i32>} : memref<256x36xf32, #tpu.memory_space<vmem>>, vector<256x4xf32>,
    %c0_21 = arith.constant 0 : index
    %c0_22 = arith.constant 0 : index
    %33 = vector.load %arg10[%c0_21, %c0_22] : memref<256x36xf32, #tpu.memory_space<vmem>>, vector<256x36xf32>
    %c0_23 = arith.constant 0 : index
    %c0_24 = arith.constant 0 : index
    %34 = vector.load %arg2[%c0_23, %c0_24] : memref<36x4xf32, #tpu.memory_space<vmem>>, vector<36x4xf32>
    %cst_25 = arith.constant dense<0.000000e+00> : vector<256x4xf32>
    %35 = tpu.matmul %33, %34, %cst_25 {dimension_numbers = #tpu.dot_dimension_numbers<[1], [0], [0], [1], [0, 0, 1, 1], [], []>} : vector<256x36xf32>, vector<36x4xf32>, vector<256x4xf32> -> vector<256x4xf32>
    %c0_26 = arith.constant 0 : index
    %c0_27 = arith.constant 0 : index
    %36 = vector.load %arg3[%c0_26, %c0_27] : memref<1x4xf32, #tpu.memory_space<vmem>>, vector<1x4xf32>
    %37 = vector.broadcast %36 : vector<1x4xf32> to vector<256x4xf32>
    %38 = arith.mulf %35, %37 : vector<256x4xf32>
    %c0_28 = arith.constant 0 : index
    %c0_29 = arith.constant 0 : index
    %39 = vector.load %arg4[%c0_28, %c0_29] : memref<1x4xf32, #tpu.memory_space<vmem>>, vector<1x4xf32>
    %40 = vector.broadcast %39 : vector<1x4xf32> to vector<256x4xf32>
    %41 = arith.addf %38, %40 : vector<256x4xf32>
    %cst_30 = arith.constant 0.000000e+00 : f32
    %42 = vector.broadcast %cst_30 : f32 to vector<256x4xf32>
    %43 = arith.maximumf %41, %42 : vector<256x4xf32>
    %44 = vector.shape_cast %43 : vector<256x4xf32> to vector<16x16x4xf32>
    %c1_31 = arith.constant 1 : index
    %c1_32 = arith.constant 1 : index
    %c0_33 = arith.constant 0 : index
    %45 = vector.load %arg9[%c1_31, %c1_32, %c0_33] : memref<18x18x4xf32, #tpu.memory_space<vmem>>, vector<16x16x4xf32>
    tpu.vector_store %arg9[%c1_31, %c1_32, %c0_33], %44 {strides = array<i32>} : memref<18x18x4xf32, #tpu.memory_space<vmem>>, vector<16x16x4xf32>,
    %c0_34 = arith.constant 0 : index
    %c0_35 = arith.constant 0 : index
    %c0_36 = arith.constant 0 : index
    %46 = vector.load %arg9[%c0_34, %c0_35, %c0_36] : memref<18x18x4xf32, #tpu.memory_space<vmem>>, vector<18x18x4xf32>
    %47 = vector.extract_strided_slice %46 {offsets = [0, 0, 0], sizes = [16, 16, 4], strides = [1, 1, 1]} : vector<18x18x4xf32> to vector<16x16x4xf32>
    %48 = vector.shape_cast %47 : vector<16x16x4xf32> to vector<256x4xf32>
    %c0_37 = arith.constant 0 : index
    %c0_38 = arith.constant 0 : index
    %49 = vector.load %arg10[%c0_37, %c0_38] : memref<256x36xf32, #tpu.memory_space<vmem>>, vector<256x4xf32>
    tpu.vector_store %arg10[%c0_37, %c0_38], %48 {strides = array<i32>} : memref<256x36xf32, #tpu.memory_space<vmem>>, vector<256x4xf32>,
    %50 = vector.extract_strided_slice %46 {offsets = [0, 1, 0], sizes = [16, 16, 4], strides = [1, 1, 1]} : vector<18x18x4xf32> to vector<16x16x4xf32>
    %51 = vector.shape_cast %50 : vector<16x16x4xf32> to vector<256x4xf32>
    %c0_39 = arith.constant 0 : index
    %c4_40 = arith.constant 4 : index
    %52 = vector.load %arg10[%c0_39, %c4_40] : memref<256x36xf32, #tpu.memory_space<vmem>>, vector<256x4xf32>
    tpu.vector_store %arg10[%c0_39, %c4_40], %51 {strides = array<i32>} : memref<256x36xf32, #tpu.memory_space<vmem>>, vector<256x4xf32>,
    %53 = vector.extract_strided_slice %46 {offsets = [0, 2, 0], sizes = [16, 16, 4], strides = [1, 1, 1]} : vector<18x18x4xf32> to vector<16x16x4xf32>
    %54 = vector.shape_cast %53 : vector<16x16x4xf32> to vector<256x4xf32>
    %c0_41 = arith.constant 0 : index
    %c8_42 = arith.constant 8 : index
    %55 = vector.load %arg10[%c0_41, %c8_42] : memref<256x36xf32, #tpu.memory_space<vmem>>, vector<256x4xf32>
    tpu.vector_store %arg10[%c0_41, %c8_42], %54 {strides = array<i32>} : memref<256x36xf32, #tpu.memory_space<vmem>>, vector<256x4xf32>,
    %56 = vector.extract_strided_slice %46 {offsets = [1, 0, 0], sizes = [16, 16, 4], strides = [1, 1, 1]} : vector<18x18x4xf32> to vector<16x16x4xf32>
    %57 = vector.shape_cast %56 : vector<16x16x4xf32> to vector<256x4xf32>
    %c0_43 = arith.constant 0 : index
    %c12_44 = arith.constant 12 : index
    %58 = vector.load %arg10[%c0_43, %c12_44] : memref<256x36xf32, #tpu.memory_space<vmem>>, vector<256x4xf32>
    tpu.vector_store %arg10[%c0_43, %c12_44], %57 {strides = array<i32>} : memref<256x36xf32, #tpu.memory_space<vmem>>, vector<256x4xf32>,
    %59 = vector.extract_strided_slice %46 {offsets = [1, 1, 0], sizes = [16, 16, 4], strides = [1, 1, 1]} : vector<18x18x4xf32> to vector<16x16x4xf32>
    %60 = vector.shape_cast %59 : vector<16x16x4xf32> to vector<256x4xf32>
    %c0_45 = arith.constant 0 : index
    %c16_46 = arith.constant 16 : index
    %61 = vector.load %arg10[%c0_45, %c16_46] : memref<256x36xf32, #tpu.memory_space<vmem>>, vector<256x4xf32>
    tpu.vector_store %arg10[%c0_45, %c16_46], %60 {strides = array<i32>} : memref<256x36xf32, #tpu.memory_space<vmem>>, vector<256x4xf32>,
    %62 = vector.extract_strided_slice %46 {offsets = [1, 2, 0], sizes = [16, 16, 4], strides = [1, 1, 1]} : vector<18x18x4xf32> to vector<16x16x4xf32>
    %63 = vector.shape_cast %62 : vector<16x16x4xf32> to vector<256x4xf32>
    %c0_47 = arith.constant 0 : index
    %c20_48 = arith.constant 20 : index
    %64 = vector.load %arg10[%c0_47, %c20_48] : memref<256x36xf32, #tpu.memory_space<vmem>>, vector<256x4xf32>
    tpu.vector_store %arg10[%c0_47, %c20_48], %63 {strides = array<i32>} : memref<256x36xf32, #tpu.memory_space<vmem>>, vector<256x4xf32>,
    %65 = vector.extract_strided_slice %46 {offsets = [2, 0, 0], sizes = [16, 16, 4], strides = [1, 1, 1]} : vector<18x18x4xf32> to vector<16x16x4xf32>
    %66 = vector.shape_cast %65 : vector<16x16x4xf32> to vector<256x4xf32>
    %c0_49 = arith.constant 0 : index
    %c24_50 = arith.constant 24 : index
    %67 = vector.load %arg10[%c0_49, %c24_50] : memref<256x36xf32, #tpu.memory_space<vmem>>, vector<256x4xf32>
    tpu.vector_store %arg10[%c0_49, %c24_50], %66 {strides = array<i32>} : memref<256x36xf32, #tpu.memory_space<vmem>>, vector<256x4xf32>,
    %68 = vector.extract_strided_slice %46 {offsets = [2, 1, 0], sizes = [16, 16, 4], strides = [1, 1, 1]} : vector<18x18x4xf32> to vector<16x16x4xf32>
    %69 = vector.shape_cast %68 : vector<16x16x4xf32> to vector<256x4xf32>
    %c0_51 = arith.constant 0 : index
    %c28_52 = arith.constant 28 : index
    %70 = vector.load %arg10[%c0_51, %c28_52] : memref<256x36xf32, #tpu.memory_space<vmem>>, vector<256x4xf32>
    tpu.vector_store %arg10[%c0_51, %c28_52], %69 {strides = array<i32>} : memref<256x36xf32, #tpu.memory_space<vmem>>, vector<256x4xf32>,
    %71 = vector.extract_strided_slice %46 {offsets = [2, 2, 0], sizes = [16, 16, 4], strides = [1, 1, 1]} : vector<18x18x4xf32> to vector<16x16x4xf32>
    %72 = vector.shape_cast %71 : vector<16x16x4xf32> to vector<256x4xf32>
    %c0_53 = arith.constant 0 : index
    %c32_54 = arith.constant 32 : index
    %73 = vector.load %arg10[%c0_53, %c32_54] : memref<256x36xf32, #tpu.memory_space<vmem>>, vector<256x4xf32>
    tpu.vector_store %arg10[%c0_53, %c32_54], %72 {strides = array<i32>} : memref<256x36xf32, #tpu.memory_space<vmem>>, vector<256x4xf32>,
    %c0_55 = arith.constant 0 : index
    %c0_56 = arith.constant 0 : index
    %74 = vector.load %arg10[%c0_55, %c0_56] : memref<256x36xf32, #tpu.memory_space<vmem>>, vector<256x36xf32>
    %c0_57 = arith.constant 0 : index
    %c0_58 = arith.constant 0 : index
    %75 = vector.load %arg5[%c0_57, %c0_58] : memref<36x4xf32, #tpu.memory_space<vmem>>, vector<36x4xf32>
    %cst_59 = arith.constant dense<0.000000e+00> : vector<256x4xf32>
    %76 = tpu.matmul %74, %75, %cst_59 {dimension_numbers = #tpu.dot_dimension_numbers<[1], [0], [0], [1], [0, 0, 1, 1], [], []>} : vector<256x36xf32>, vector<36x4xf32>, vector<256x4xf32> -> vector<256x4xf32>
    %c0_60 = arith.constant 0 : index
    %c0_61 = arith.constant 0 : index
    %77 = vector.load %arg6[%c0_60, %c0_61] : memref<1x4xf32, #tpu.memory_space<vmem>>, vector<1x4xf32>
    %78 = vector.broadcast %77 : vector<1x4xf32> to vector<256x4xf32>
    %79 = arith.mulf %76, %78 : vector<256x4xf32>
    %c0_62 = arith.constant 0 : index
    %c0_63 = arith.constant 0 : index
    %80 = vector.load %arg7[%c0_62, %c0_63] : memref<1x4xf32, #tpu.memory_space<vmem>>, vector<1x4xf32>
    %81 = vector.broadcast %80 : vector<1x4xf32> to vector<256x4xf32>
    %82 = arith.addf %79, %81 : vector<256x4xf32>
    %83 = vector.shape_cast %1 : vector<16x16x4xf32> to vector<256x4xf32>
    %84 = arith.addf %82, %83 : vector<256x4xf32>
    %cst_64 = arith.constant 0.000000e+00 : f32
    %85 = vector.broadcast %cst_64 : f32 to vector<256x4xf32>
    %86 = arith.maximumf %84, %85 : vector<256x4xf32>
    %87 = tpu.transpose %86, [1, 0] : vector<256x4xf32> -> vector<4x256xf32>
    %c0_65 = arith.constant 0 : index
    %c0_66 = arith.constant 0 : index
    %c0_67 = arith.constant 0 : index
    %88 = vector.load %arg8[%c0_65, %c0_66, %c0_67] : memref<1x4x256xf32, #tpu.memory_space<vmem>>, vector<1x4x256xf32>
    %89 = vector.shape_cast %88 : vector<1x4x256xf32> to vector<4x256xf32>
    %90 = vector.shape_cast %87 : vector<4x256xf32> to vector<1x4x256xf32>
    tpu.vector_store %arg8[%c0_65, %c0_66, %c0_67], %90 {strides = array<i32>} : memref<1x4x256xf32, #tpu.memory_space<vmem>>, vector<1x4x256xf32>,
    return
  }
  func.func @transform_0(%arg0: i32) -> (i32, i32, i32, i32) {
    %c0_i32 = arith.constant 0 : i32
    %c0_i32_0 = arith.constant 0 : i32
    %c0_i32_1 = arith.constant 0 : i32
    %c0_i32_2 = arith.constant 0 : i32
    return %arg0, %c0_i32, %c0_i32_0, %c0_i32_1 : i32, i32, i32, i32
  }
  func.func @transform_1(%arg0: i32) -> (i32, i32) {
    %c0_i32 = arith.constant 0 : i32
    %c0_i32_0 = arith.constant 0 : i32
    %c0_i32_1 = arith.constant 0 : i32
    return %c0_i32, %c0_i32_0 : i32, i32
  }
  func.func @transform_2(%arg0: i32) -> (i32, i32) {
    %c0_i32 = arith.constant 0 : i32
    %c0_i32_0 = arith.constant 0 : i32
    %c0_i32_1 = arith.constant 0 : i32
    return %c0_i32, %c0_i32_0 : i32, i32
  }
  func.func @transform_3(%arg0: i32) -> (i32, i32) {
    %c0_i32 = arith.constant 0 : i32
    %c0_i32_0 = arith.constant 0 : i32
    %c0_i32_1 = arith.constant 0 : i32
    return %c0_i32, %c0_i32_0 : i32, i32
  }
  func.func @transform_4(%arg0: i32) -> (i32, i32) {
    %c0_i32 = arith.constant 0 : i32
    %c0_i32_0 = arith.constant 0 : i32
    %c0_i32_1 = arith.constant 0 : i32
    return %c0_i32, %c0_i32_0 : i32, i32
  }
  func.func @transform_5(%arg0: i32) -> (i32, i32) {
    %c0_i32 = arith.constant 0 : i32
    %c0_i32_0 = arith.constant 0 : i32
    %c0_i32_1 = arith.constant 0 : i32
    return %c0_i32, %c0_i32_0 : i32, i32
  }
  func.func @transform_6(%arg0: i32) -> (i32, i32) {
    %c0_i32 = arith.constant 0 : i32
    %c0_i32_0 = arith.constant 0 : i32
    %c0_i32_1 = arith.constant 0 : i32
    return %c0_i32, %c0_i32_0 : i32, i32
  }
  func.func @transform_7(%arg0: i32) -> (i32, i32, i32) {
    %c0_i32 = arith.constant 0 : i32
    %c0_i32_0 = arith.constant 0 : i32
    %c0_i32_1 = arith.constant 0 : i32
    return %arg0, %c0_i32, %c0_i32_0 : i32, i32, i32
  }
}

</mosaic_0001>

<bundles_post_ra>
// kernel: basic_block_forward.1
= control target key start
LH: loop header
LB: loop body
LE: loop exit
PB: predicated region body
PF: predicated region fallthrough
CT: control target
= control target key end

     0   :  { %s4164_s24 = smov 0   ;;  %s7238_s0 = inlined_call_operand.vmem [shape: f32[2,16,16,4], index: 0, kind: input, shape index: {}]   ;;  %s7239_s1 = inlined_call_operand.vmem [shape: f32[36,4], index: 1, kind: input, shape index: {}]   ;;  %s7240_s2 = inlined_call_operand.vmem [shape: f32[1,4], index: 2, kind: input, shape index: {}]   ;;  %s7241_s3 = inlined_call_operand.vmem [shape: f32[1,4], index: 3, kind: input, shape index: {}]   ;;  %s7242_s4 = inlined_call_operand.vmem [shape: f32[36,4], index: 4, kind: input, shape index: {}]   ;;  %s7243_s5 = inlined_call_operand.vmem [shape: f32[1,4], index: 5, kind: input, shape index: {}]   ;;  %s7244_s6 = inlined_call_operand.vmem [shape: f32[1,4], index: 6, kind: input, shape index: {}]   ;;  %s7245_s7 = inlined_call_operand.vmem [shape: f32[2,4,256], index: 7, kind: output, shape index: {}]  }
   0x1 LB: > { %s3995_s25 = sadd.s32 4294967295, %s4113_s24   ;;  %p3999_p0 = scmp.ge.s32.totalorder %s4113_s24, 1  ;;  %s4113_s24 = sphi %s4164_s24, %s17_s24  }
   0x2   : > { %p237_p1 = scmp.lt.s32.totalorder %s4113_s24, 3 }
   0x4   : > { %p238_p2 = pnand %p3999_p0, %p237_p1 }
   0x6   : > { %241 = sbr.rel (%p238_p2) target bundleno = 2024 (0x7e8), region = 48 }
   0xb   : > { %vm311_vm0 = vcmask 31744   ;;  %v4115_v0 = vmov 0.0   ;;  %vm534_vm1 = vcmask 1046528   ;;  %s4116_s26 = smov 4   ;;  %vm314_vm2 = vcmask 25600   ;;  %p269_p3 = scmp.lt.s32.totalorder %s3995_s25, 1 }
   0xc   : > { %312 = vst.msk [vmem:[#allocation2] sm:$0xff] %vm311_vm0, %v4115_v0  ;;  %vm744_vm3 = vcmask 1045504   ;;  %vm711_vm4 = vcmask 64544   ;;  %s4117_s8 = smov 8   ;;  %s4118_s9 = smov 12   ;;  %vm921_vm5 = vcmask 97344  }
   0xd   : > { %313 = vst.msk [vmem:[#allocation2 + $0x8] sm:$0xff] %vm311_vm0, %v4115_v0  ;;  %s7738_s25 = smov (!%p269_p3, %s3995_s25), 1  ;;  %s4119_s10 = smov 16   ;;  %vm1052_vm6 = vcmask 130144   ;;  %vm1187_vm7 = vcmask 162944   ;;  %vm1321_vm8 = vcmask 195744  }
   0xe   : > { %316 = vst.msk [vmem:[#allocation2 + $0x18] sm:$0xff] %vm311_vm0, %v4115_v0  ;;  %s4072_s27 = sshll.u32 %s7738_s25, 8  ;;  %s4120_s11 = smov 20   ;;  %vm1452_vm9 = vcmask 228544   ;;  %vm1587_vm10 = vcmask 261344   ;;  %vm1888_vm11 = vcmask 1043456  }
   0xf   : > { %317 = vst.msk [vmem:[#allocation2 + $0x20] sm:$0xff] %vm311_vm0, %v4115_v0  ;;  %s4297_s30 = scalar_lea.vmem %s7238_s0, %s4072_s27  ;;  %s4121_s12 = smov 24   ;;  %vm1721_vm12 = vcmask 294144   ;;  %vm1791_vm13 = vcmask 293888  }
  0x10   : > { %319 = vst.msk [vmem:[#allocation2 + $0x30] sm:$0xff] %vm311_vm0, %v4115_v0  ;;  %v4306_v9 = vld [vmem:[%s4297_s30] sm:$0xff]  ;;  %v4311_v10 = vld [vmem:[%s4297_s30 + $0x8] sm:$0xff]  ;;  %v4326_v13 = vld [vmem:[%s4297_s30 + $0x30] sm:$0xff]  ;;  %s4122_s13 = smov 28   ;;  %s4123_s14 = smov 32  }
  0x11   : > { %320 = vst.msk [vmem:[#allocation2 + $0x38] sm:$0xff] %vm311_vm0, %v4115_v0  ;;  %v4316_v11 = vld [vmem:[%s4297_s30 + $0x20] sm:$0xff]  ;;  %v4321_v12 = vld [vmem:[%s4297_s30 + $0x28] sm:$0xff]  ;;  %v4331_v14 = vld [vmem:[%s4297_s30 + $0x38] sm:$0xff]  ;;  %s4073_s29 = sshll.u32 %s7738_s25, 3 }
  0x12   : > { %322 = vst.msk [vmem:[#allocation2 + $0x48] sm:$0xff] %vm311_vm0, %v4115_v0  ;;  %v4336_v15 = vld [vmem:[%s4297_s30 + $0x10] sm:$0xff]  ;;  %v4341_v16 = vld [vmem:[%s4297_s30 + $0x18] sm:$0xff]  ;;  %v4404_v36 = vld [vmem:[%s4297_s30 + $0x40] sm:$0xff] }
  0x13   : > { %v4186_v1 = vld [vmem:[#allocation2] sm:$0xff]  ;;  %323 = vst.msk [vmem:[#allocation2 + $0x50] sm:$0xff] %vm311_vm0, %v4115_v0  ;;  %v4362_v22 = vld [vmem:[%s4297_s30 + $0x50] sm:$0xff]  ;;  %v4394_v33 = vld [vmem:[%s4297_s30 + $0x58] sm:$0xff] }
  0x14   : > { %v4190_v2 = vld [vmem:[#allocation2 + $0x8] sm:$0xff]  ;;  %v535_v3 = vrot.slane %v4186_v1, 1  ;;  %325 = vst.msk [vmem:[#allocation2 + $0x60] sm:$0xff] %vm311_vm0, %v4115_v0  ;;  %v4419_v42 = vld [vmem:[%s4297_s30 + $0x60] sm:$0xff]  ;;  %v4486_v61 = vld [vmem:[%s4297_s30 + $0x70] sm:$0xff] }
  0x15   : > { %v536_v4 = vrot.slane %v4190_v2, 1  ;;  %326 = vst.msk [vmem:[#allocation2 + $0x68] sm:$0xff] %vm311_vm0, %v4115_v0  ;;  %v4412_v40 = vld [vmem:[%s4297_s30 + $0x48] sm:$0xff]  ;;  %v4451_v50 = vld [vmem:[%s4297_s30 + $0x80] sm:$0xff] }
  0x16   : > { %328 = vst.msk [vmem:[#allocation2 + $0x78] sm:$0xff] %vm311_vm0, %v4115_v0  ;;  %v4436_v46 = vld [vmem:[%s4297_s30 + $0x68] sm:$0xff] }
  0x17   : > { %v537_v5 = vsel %vm534_vm1, %v535_v3, %v536_v4  ;;  %329 = vst.msk [vmem:[#allocation2 + $0x80] sm:$0xff] %vm311_vm0, %v4115_v0  ;;  %v4476_v58 = vld [vmem:[%s4297_s30 + $0x88] sm:$0xff] }
  0x18   : > { %615 = vrot.lane.b32.xlu0 %v537_v5, %s4116_s26  ;;  %331 = vst.msk [vmem:[#allocation2 + $0x90] sm:$0xff] %vm311_vm0, %v4115_v0 }
  0x19   : > { %332 = vst.msk [vmem:[#allocation2 + $0x98] sm:$0xff] %vm311_vm0, %v4115_v0 }
  0x1a   : > { %334 = vst.msk [vmem:[#allocation2 + $0xa8] sm:$0xff] %vm311_vm0, %v4115_v0 }
  0x1b   : > { %335 = vst.msk [vmem:[#allocation2 + $0xb0] sm:$0xff] %vm311_vm0, %v4115_v0 }
  0x1c   : > { %337 = vst.msk [vmem:[#allocation2 + $0xc0] sm:$0xff] %vm311_vm0, %v4115_v0 }
  0x1d   : > { %338 = vst.msk [vmem:[#allocation2 + $0xc8] sm:$0xff] %vm311_vm0, %v4115_v0 }
  0x1e   : > { %340 = vst.msk [vmem:[#allocation2 + $0xd8] sm:$0xff] %vm311_vm0, %v4115_v0 }
  0x1f   : > { %341 = vst.msk [vmem:[#allocation2 + $0xe0] sm:$0xff] %vm311_vm0, %v4115_v0 }
  0x20   : > { %343 = vst.msk [vmem:[#allocation2 + $0xf0] sm:$0xff] %vm311_vm0, %v4115_v0 }
  0x21   : > { %344 = vst.msk [vmem:[#allocation2 + $0xf8] sm:$0xff] %vm311_vm0, %v4115_v0 }
  0x22   : > { %346 = vst.msk [vmem:[#allocation2 + $0x108] sm:$0xff] %vm311_vm0, %v4115_v0 }
  0x23   : > { %347 = vst.msk [vmem:[#allocation2 + $0x110] sm:$0xff] %vm311_vm0, %v4115_v0 }
  0x24   : > { %349 = vst.msk [vmem:[#allocation2 + $0x120] sm:$0xff] %vm311_vm0, %v4115_v0 }
  0x25   : > { %350 = vst.msk [vmem:[#allocation2 + $0x128] sm:$0xff] %vm311_vm0, %v4115_v0 }
  0x26   : > { %352 = vst.msk [vmem:[#allocation2 + $0x138] sm:$0xff] %vm311_vm0, %v4115_v0 }
  0x27   : > { %353 = vst.msk [vmem:[#allocation2 + $0x140] sm:$0xff] %vm311_vm0, %v4115_v0 }
  0x28   : > { %355 = vst.msk [vmem:[#allocation2 + $0x150] sm:$0xff] %vm311_vm0, %v4115_v0 }
  0x29   : > { %356 = vst.msk [vmem:[#allocation2 + $0x158] sm:$0xff] %vm311_vm0, %v4115_v0 }
  0x2a   : > { %358 = vst.msk [vmem:[#allocation2 + $0x168] sm:$0xff] %vm311_vm0, %v4115_v0 }
  0x2b   : > { %359 = vst.msk [vmem:[#allocation2 + $0x170] sm:$0xff] %vm311_vm0, %v4115_v0 }
  0x2c   : > { %361 = vst.msk [vmem:[#allocation2 + $0x180] sm:$0xff] %vm311_vm0, %v4115_v0 }
  0x2d   : > { %362 = vst.msk [vmem:[#allocation2 + $0x188] sm:$0xff] %vm311_vm0, %v4115_v0 }
  0x2e   : > { %364 = vst.msk [vmem:[#allocation2 + $0x198] sm:$0xff] %vm311_vm0, %v4115_v0 }
  0x2f   : > { %365 = vst.msk [vmem:[#allocation2 + $0x1a0] sm:$0xff] %vm311_vm0, %v4115_v0 }
  0x30   : > { %454 = vst.msk [vmem:[#allocation3] sm:$0xff] %vm311_vm0, %v4186_v1 }
  0x31   : > { %455 = vst.msk [vmem:[#allocation3 + $0x8] sm:$0xff] %vm311_vm0, %v4190_v2 }
  0x32   : > { %315 = vst.msk [vmem:[#allocation2 + $0x10] sm:$0x3] %vm314_vm2, %v4115_v0 }
  0x33   : > { %318 = vst.msk [vmem:[#allocation2 + $0x28] sm:$0x3] %vm314_vm2, %v4115_v0 }
  0x34   : > { %321 = vst.msk [vmem:[#allocation2 + $0x40] sm:$0x3] %vm314_vm2, %v4115_v0 }
  0x35   : > { %324 = vst.msk [vmem:[#allocation2 + $0x58] sm:$0x3] %vm314_vm2, %v4115_v0 }
  0x36   : > { %327 = vst.msk [vmem:[#allocation2 + $0x70] sm:$0x3] %vm314_vm2, %v4115_v0 }
  0x37   : > { %330 = vst.msk [vmem:[#allocation2 + $0x88] sm:$0x3] %vm314_vm2, %v4115_v0 }
  0x38   : > { %333 = vst.msk [vmem:[#allocation2 + $0xa0] sm:$0x3] %vm314_vm2, %v4115_v0 }
  0x39   : > { %v4276_v6 = vld [vmem:[#allocation2 + $0x10] sm:$0x3]  ;;  %336 = vst.msk [vmem:[#allocation2 + $0xb8] sm:$0x3] %vm314_vm2, %v4115_v0 }
  0x3a   : > { %v538_v7 = vrot.slane %v4276_v6, 1  ;;  %339 = vst.msk [vmem:[#allocation2 + $0xd0] sm:$0x3] %vm314_vm2, %v4115_v0 }
  0x3b   : > { %342 = vst.msk [vmem:[#allocation2 + $0xe8] sm:$0x3] %vm314_vm2, %v4115_v0 }
  0x3c   : > { %v539_v8 = vsel %vm534_vm1, %v536_v4, %v538_v7  ;;  %345 = vst.msk [vmem:[#allocation2 + $0x100] sm:$0x3] %vm314_vm2, %v4115_v0 }
  0x3d   : > { %617 = vrot.lane.b32.xlu0 %v539_v8, %s4116_s26  ;;  %348 = vst.msk [vmem:[#allocation2 + $0x118] sm:$0x3] %vm314_vm2, %v4115_v0  ;;  %v4514_v8 = vld [vmem:[%s4297_s30 + $0x90] sm:$0xff] }
  0x3e   : > { %351 = vst.msk [vmem:[#allocation2 + $0x130] sm:$0x3] %vm314_vm2, %v4115_v0 }
  0x3f   : > { %354 = vst.msk [vmem:[#allocation2 + $0x148] sm:$0x3] %vm314_vm2, %v4115_v0 }
  0x40   : > { %357 = vst.msk [vmem:[#allocation2 + $0x160] sm:$0x3] %vm314_vm2, %v4115_v0 }
  0x41   : > { %360 = vst.msk [vmem:[#allocation2 + $0x178] sm:$0x3] %vm314_vm2, %v4115_v0 }
  0x42   : > { %7443 = vst [vmem:[#allocation4_spill] sm:$0xff] %v4306_v9 }
  0x43   : > { %363 = vst.msk [vmem:[#allocation2 + $0x190] sm:$0x3] %vm314_vm2, %v4115_v0 }
  0x44   : > { %7444 = vst [vmem:[#allocation5_spill] sm:$0xff] %v4311_v10 }
  0x45   : > { %366 = vst.msk [vmem:[#allocation2 + $0x1a8] sm:$0x3] %vm314_vm2, %v4115_v0  ;;  %v4499_v0 = vld [vmem:[%s4297_s30 + $0x78] sm:$0xff] }
  0x46   : > { %7445 = vst [vmem:[#allocation6_spill] sm:$0xff] %v4316_v11 }
  0x47   : > { %368 = vst.msk [vmem:[#allocation2 + $0x19] sm:$0xff] %vm311_vm0, %v4306_v9 }
  0x48   : > { %7446 = vst [vmem:[#allocation7_spill] sm:$0xff] %v4321_v12 }
  0x49   : > { %369 = vst.msk [vmem:[#allocation2 + $0x21] sm:$0xff] %vm311_vm0, %v4311_v10 }
  0x4a   : > { %7447 = vst [vmem:[#allocation8_spill] sm:$0xff] %v4326_v13 }
  0x4b   : > { %372 = vst.msk [vmem:[#allocation2 + $0x49] sm:$0xff] %vm311_vm0, %v4316_v11 }
  0x4c   : > { %7448 = vst [vmem:[#allocation9_spill] sm:$0xff] %v4331_v14 }
  0x4d   : > { %373 = vst.msk [vmem:[#allocation2 + $0x51] sm:$0xff] %vm311_vm0, %v4321_v12 }
  0x4e   : > { %7449 = vst [vmem:[#allocation10_spill] sm:$0xff] %v4336_v15  ;;  %v4347_v17 = vld [vmem:[#allocation2 + $0x18] sm:$0xff] }
  0x4f   : > { %374 = vst.msk [vmem:[#allocation2 + $0x61] sm:$0xff] %vm311_vm0, %v4326_v13  ;;  %v540_v19 = vrot.slane %v4347_v17, 1 }
  0x50   : > { %7450 = vst [vmem:[#allocation11_spill] sm:$0xff] %v4341_v16  ;;  %v4351_v18 = vld [vmem:[#allocation2 + $0x20] sm:$0xff]  ;;  %v4369_v25 = vld [vmem:[#allocation2 + $0x28] sm:$0x3] }
  0x51   : > { %375 = vst.msk [vmem:[#allocation2 + $0x69] sm:$0xff] %vm311_vm0, %v4331_v14  ;;  %v541_v20 = vrot.slane %v4351_v18, 1  ;;  %v543_v31 = vrot.slane %v4369_v25, 1  ;;  %v4596_v14 = vld [vmem:[%s4297_s30 + $0xc0] sm:$0xff] }
  0x52   : > { %370 = vst.msk [vmem:[#allocation2 + $0x31] sm:$0xff] %vm311_vm0, %v4336_v15  ;;  %v4359_v21 = vld [vmem:[#allocation2 + $0x48] sm:$0xff] }
  0x53   : > { %371 = vst.msk [vmem:[#allocation2 + $0x39] sm:$0xff] %vm311_vm0, %v4341_v16  ;;  %v550_v24 = vrot.slane %v4359_v21, 1  ;;  %v4372_v26 = vsel %vm534_vm1, %v540_v19, %v541_v20  ;;  %v4422_v43 = vsel %vm534_vm1, %v541_v20, %v543_v31  ;;  %v4523_v20 = vld [vmem:[%s4297_s30 + $0x98] sm:$0xff]  ;;  %v4653_v15 = vld [vmem:[%s4297_s30 + $0xe8] sm:$0xff] }
  0x54   : > { %456 = vst.msk [vmem:[#allocation3 + $0x10] sm:$0xff] %vm311_vm0, %v4347_v17  ;;  %v4364_v23 = vld [vmem:[#allocation2 + $0x50] sm:$0xff]  ;;  %619 = vrot.lane.b32.xlu1 %v4372_v26, %s4116_s26  ;;  %v4431_v45 = vld [vmem:[#allocation2 + $0x58] sm:$0x3] }
  0x55   : > { %457 = vst.msk [vmem:[#allocation3 + $0x18] sm:$0xff] %vm311_vm0, %v4351_v18  ;;  %v551_v27 = vrot.slane %v4364_v23, 1  ;;  %v553_v51 = vrot.slane %v4431_v45, 1 }
  0x56   : > { %7451 = vst [vmem:[#allocation12_spill] sm:$0xff] %v4362_v22  ;;  %v4456_v52 = vld [vmem:[#allocation2 + $0x60] sm:$0xff] }
  0x57   : > { %460 = vst.msk [vmem:[#allocation3 + $0x30] sm:$0xff] %vm311_vm0, %v4359_v21  ;;  %v4386_v30 = vsel %vm534_vm1, %v550_v24, %v551_v27  ;;  %v4479_v59 = vsel %vm534_vm1, %v551_v27, %v553_v51  ;;  %v555_v63 = vrot.slane %v4456_v52, 1  ;;  %v4552_v51 = vld [vmem:[%s4297_s30 + $0xb0] sm:$0xff] }
  0x58   : > { %461 = vst.msk [vmem:[#allocation3 + $0x38] sm:$0xff] %vm311_vm0, %v4364_v23  ;;  %v4379_v28 = vld [vmem:[#allocation2 + $0x68] sm:$0xff]  ;;  %v4381_v29 = vld [vmem:[#allocation2 + $0x70] sm:$0x3]  ;;  %627 = vrot.lane.b32.xlu0 %v4386_v30, %s4116_s26 }
  0x59   : > { %378 = vst.msk [vmem:[#allocation2 + $0x91] sm:$0xff] %vm311_vm0, %v4362_v22  ;;  %v4391_v32 = vld [vmem:[#allocation2 + $0x30] sm:$0xff]  ;;  %v556_v37 = vrot.slane %v4379_v28, 1  ;;  %v558_v38 = vrot.slane %v4381_v29, 1 }
  0x5a   : > { %7452 = vst [vmem:[#allocation13_spill] sm:$0xff] %v4386_v30  ;;  %v4398_v34 = vld [vmem:[#allocation2 + $0x38] sm:$0xff]  ;;  %v545_v35 = vrot.slane %v4391_v32, 1  ;;  %v4416_v41 = vld [vmem:[#allocation2 + $0x40] sm:$0x3] }
  0x5b   : > { %463 = vst.msk [vmem:[#allocation3 + $0x48] sm:$0xff] %vm311_vm0, %v4379_v28  ;;  %v546_v39 = vrot.slane %v4398_v34, 1  ;;  %v4439_v47 = vsel %vm534_vm1, %v556_v37, %v558_v38  ;;  %v548_v49 = vrot.slane %v4416_v41, 1  ;;  %v4528_v31 = vsel %vm534_vm1, %v555_v63, %v556_v37 }
  0x5c   : > { %7453 = vst [vmem:[#allocation14_spill] sm:$0xff] %v4394_v33  ;;  %621 = vrot.lane.b32.xlu1 %v4422_v43, %s4116_s26 }
  0x5d   : > { %458 = vst.msk [vmem:[#allocation3 + $0x20] sm:$0xff] %vm311_vm0, %v4391_v32  ;;  %v4425_v44 = vsel %vm534_vm1, %v545_v35, %v546_v39  ;;  %v4466_v55 = vsel %vm534_vm1, %v546_v39, %v548_v49 }
  0x5e   : > { %7454 = vst [vmem:[#allocation15_spill] sm:$0xff] %v4404_v36  ;;  %623 = vrot.lane.b32.xlu2 %v4425_v44, %s4116_s26 }
  0x5f   : > { %459 = vst.msk [vmem:[#allocation3 + $0x28] sm:$0xff] %vm311_vm0, %v4398_v34 }
  0x60   : > { %7455 = vst [vmem:[#allocation16_spill] sm:$0xff] %v4412_v40  ;;  %v4441_v48 = vld [vmem:[#allocation2 + $0x90] sm:$0xff]  ;;  %633 = vrot.lane.b32.xlu0 %v4439_v47, %s4116_s26 }
  0x61   : > { %379 = vst.msk [vmem:[#allocation2 + $0x99] sm:$0xff] %vm311_vm0, %v4394_v33  ;;  %v565_v54 = vrot.slane %v4441_v48, 1 }
  0x62   : > { %7456 = vst [vmem:[#allocation17_spill] sm:$0xff] %v4419_v42 }
  0x63   : > { %376 = vst.msk [vmem:[#allocation2 + $0x79] sm:$0xff] %vm311_vm0, %v4404_v36 }
  0x64   : > { %377 = vst.msk [vmem:[#allocation2 + $0x81] sm:$0xff] %vm311_vm0, %v4412_v40  ;;  %629 = vrot.lane.b32.xlu1 %v4479_v59, %s4116_s26  ;;  %v4589_v40 = vld [vmem:[%s4297_s30 + $0xa8] sm:$0xff] }
  0x65   : > { %7457 = vst [vmem:[#allocation18_spill] sm:$0xff] %v4436_v46 }
  0x66   : > { %7458 = vst [vmem:[#allocation19_spill] sm:$0xff] %v4439_v47  ;;  %625 = vrot.lane.b32.xlu2 %v4466_v55, %s4116_s26 }
  0x67   : > { %380 = vst.msk [vmem:[#allocation2 + $0xa9] sm:$0xff] %vm311_vm0, %v4419_v42 }
  0x68   : > { %466 = vst.msk [vmem:[#allocation3 + $0x60] sm:$0xff] %vm311_vm0, %v4441_v48  ;;  %v4462_v53 = vld [vmem:[#allocation2 + $0x98] sm:$0xff]  ;;  %v4545_v37 = vld [vmem:[#allocation2 + $0xa0] sm:$0x3] }
  0x69   : > { %7459 = vst [vmem:[#allocation20_spill] sm:$0xff] %v4451_v50  ;;  %v566_v56 = vrot.slane %v4462_v53, 1 }
  0x6a   : > { %381 = vst.msk [vmem:[#allocation2 + $0xb1] sm:$0xff] %vm311_vm0, %v4436_v46  ;;  %v4473_v57 = vld [vmem:[#allocation2 + $0x78] sm:$0xff]  ;;  %v4575_v46 = vld [vmem:[%s4297_s30 + $0xa0] sm:$0xff] }
  0x6b   : > { %462 = vst.msk [vmem:[#allocation3 + $0x40] sm:$0xff] %vm311_vm0, %v4456_v52  ;;  %v4481_v60 = vld [vmem:[#allocation2 + $0x80] sm:$0xff]  ;;  %v4493_v62 = vsel %vm534_vm1, %v565_v54, %v566_v56  ;;  %v560_v5 = vrot.slane %v4473_v57, 1  ;;  %v4532_v35 = vld [vmem:[#allocation2 + $0x88] sm:$0x3] }
  0x6c   : > { %384 = vst.msk [vmem:[#allocation2 + $0xd9] sm:$0xff] %vm311_vm0, %v4451_v50  ;;  %v561_v7 = vrot.slane %v4481_v60, 1  ;;  %639 = vrot.lane.b32.xlu0 %v4493_v62, %s4116_s26  ;;  %v563_v63 = vrot.slane %v4532_v35, 1 }
  0x6d   : > { %467 = vst.msk [vmem:[#allocation3 + $0x68] sm:$0xff] %vm311_vm0, %v4462_v53 }
  0x6e   : > { %7460 = vst [vmem:[#allocation21_spill] sm:$0xff] %v4476_v58  ;;  %v4537_v38 = vsel %vm534_vm1, %v560_v5, %v561_v7  ;;  %v4541_v39 = vld [vmem:[#allocation2 + $0xa8] sm:$0xff]  ;;  %631 = vrot.lane.b32.xlu2 %v4528_v31, %s4116_s26  ;;  %v4584_v22 = vsel %vm534_vm1, %v561_v7, %v563_v63 }
  0x6f   : > { %7461 = vst [vmem:[#allocation22_spill] sm:$0xff] %v4479_v59  ;;  %635 = vrot.lane.b32.xlu1 %v4537_v38, %s4116_s26  ;;  %v4604_v7 = vld [vmem:[%s4297_s30 + $0xc8] sm:$0xff] }
  0x70   : > { %464 = vst.msk [vmem:[#allocation3 + $0x50] sm:$0xff] %vm311_vm0, %v4473_v57 }
  0x71   : > { %7462 = vst [vmem:[#allocation23_spill] sm:$0xff] %v4486_v61  ;;  %v4503_v3 = vld [vmem:[#allocation2 + $0xb0] sm:$0xff]  ;;  %v4505_v4 = vld [vmem:[#allocation2 + $0xb8] sm:$0x3] }
  0x72   : > { %465 = vst.msk [vmem:[#allocation3 + $0x58] sm:$0xff] %vm311_vm0, %v4481_v60  ;;  %v571_v24 = vrot.slane %v4503_v3, 1  ;;  %v573_v27 = vrot.slane %v4505_v4, 1 }
  0x73   : > { %7463 = vst [vmem:[#allocation24_spill] sm:$0xff] %v4493_v62  ;;  %v4518_v19 = vld [vmem:[#allocation2 + $0xd8] sm:$0xff] }
  0x74   : > { %385 = vst.msk [vmem:[#allocation2 + $0xe1] sm:$0xff] %vm311_vm0, %v4476_v58  ;;  %v4555_v54 = vsel %vm534_vm1, %v571_v24, %v573_v27  ;;  %v568_v27 = vrot.slane %v4545_v37, 1  ;;  %v580_v42 = vrot.slane %v4518_v19, 1 }
  0x75   : > { %7464 = vst [vmem:[#allocation25_spill] sm:$0xff] %v4499_v0  ;;  %645 = vrot.lane.b32.xlu0 %v4555_v54, %s4116_s26 }
  0x76   : > { %382 = vst.msk [vmem:[#allocation2 + $0xc1] sm:$0xff] %vm311_vm0, %v4486_v61  ;;  %v4599_v13 = vsel %vm534_vm1, %v566_v56, %v568_v27  ;;  %637 = vrot.lane.b32.xlu2 %v4584_v22, %s4116_s26 }
  0x77   : > { %469 = vst.msk [vmem:[#allocation3 + $0x78] sm:$0xff] %vm311_vm0, %v4503_v3  ;;  %641 = vrot.lane.b32.xlu1 %v4599_v13, %s4116_s26 }
  0x78   : > { %7465 = vst [vmem:[#allocation26_spill] sm:$0xff] %v4514_v8 }
  0x79   : > { %383 = vst.msk [vmem:[#allocation2 + $0xc9] sm:$0xff] %vm311_vm0, %v4499_v0  ;;  %v4567_v0 = vld [vmem:[%s4297_s30 + $0xb8] sm:$0xff] }
  0x7a   : > { %7466 = vst [vmem:[#allocation27_spill] sm:$0xff] %v4523_v20 }
  0x7b   : > { %7467 = vst [vmem:[#allocation28_spill] sm:$0xff] %v4528_v31  ;;  %v4547_v49 = vld [vmem:[#allocation2 + $0xe0] sm:$0xff] }
  0x7c   : > { %472 = vst.msk [vmem:[#allocation3 + $0x90] sm:$0xff] %vm311_vm0, %v4518_v19  ;;  %v581_v33 = vrot.slane %v4547_v49, 1 }
  0x7d   : > { %386 = vst.msk [vmem:[#allocation2 + $0xf1] sm:$0xff] %vm311_vm0, %v4514_v8  ;;  %v4560_v5 = vld [vmem:[#allocation2 + $0xc0] sm:$0xff] }
  0x7e   : > { %7468 = vst [vmem:[#allocation29_spill] sm:$0xff] %v4537_v38  ;;  %v4611_v63 = vsel %vm534_vm1, %v580_v42, %v581_v33 }
  0x7f   : > { %387 = vst.msk [vmem:[#allocation2 + $0xf9] sm:$0xff] %vm311_vm0, %v4523_v20  ;;  %651 = vrot.lane.b32.xlu0 %v4611_v63, %s4116_s26 }
  0x80   : > { %468 = vst.msk [vmem:[#allocation3 + $0x70] sm:$0xff] %vm311_vm0, %v4541_v39  ;;  %v4570_v61 = vld [vmem:[#allocation2 + $0xc8] sm:$0xff]  ;;  %v4648_v20 = vld [vmem:[#allocation2 + $0xd0] sm:$0x3] }
  0x81   : > { %7469 = vst [vmem:[#allocation30_spill] sm:$0xff] %v4552_v51  ;;  %v576_v42 = vrot.slane %v4570_v61, 1 }
  0x82   : > { %7470 = vst [vmem:[#allocation31_spill] sm:$0xff] %v4555_v54 }
  0x83   : > { %473 = vst.msk [vmem:[#allocation3 + $0x98] sm:$0xff] %vm311_vm0, %v4547_v49 }
  0x84   : > { %470 = vst.msk [vmem:[#allocation3 + $0x80] sm:$0xff] %vm311_vm0, %v4560_v5  ;;  %v4628_v12 = vld [vmem:[#allocation2 + $0xf0] sm:$0xff] }
  0x85   : > { %7471 = vst [vmem:[#allocation32_spill] sm:$0xff] %v4567_v0 }
  0x86   : > { %390 = vst.msk [vmem:[#allocation2 + $0x121] sm:$0xff] %vm311_vm0, %v4552_v51  ;;  %v4591_v36 = vld [vmem:[#allocation2 + $0xf8] sm:$0xff]  ;;  %v4618_v56 = vld [vmem:[#allocation2 + $0x100] sm:$0x3]  ;;  %v575_v51 = vrot.slane %v4560_v5, 1 }
  0x87   : > { %7472 = vst [vmem:[#allocation33_spill] sm:$0xff] %v4575_v46  ;;  %v588_v11 = vrot.slane %v4618_v56, 1 }
  0x88   : > { %471 = vst.msk [vmem:[#allocation3 + $0x88] sm:$0xff] %vm311_vm0, %v4570_v61  ;;  %v4656_v8 = vsel %vm534_vm1, %v575_v51, %v576_v42  ;;  %v578_v51 = vrot.slane %v4648_v20, 1 }
  0x89   : > { %7473 = vst [vmem:[#allocation34_spill] sm:$0xff] %v4584_v22  ;;  %647 = vrot.lane.b32.xlu1 %v4656_v8, %s4116_s26 }
  0x8a   : > { %391 = vst.msk [vmem:[#allocation2 + $0x129] sm:$0xff] %vm311_vm0, %v4567_v0  ;;  %v570_v0 = vrot.slane %v4541_v39, 1 }
  0x8b   : > { %7474 = vst [vmem:[#allocation35_spill] sm:$0xff] %v4589_v40 }
  0x8c   : > { %388 = vst.msk [vmem:[#allocation2 + $0x109] sm:$0xff] %vm311_vm0, %v4575_v46  ;;  %v4642_v46 = vsel %vm534_vm1, %v570_v0, %v571_v24  ;;  %v4664_v0 = vld [vmem:[#allocation2 + $0xe8] sm:$0x3]  ;;  %v4669_v24 = vld [vmem:[%s4297_s30 + $0xd0] sm:$0xff] }
  0x8d   : > { %7475 = vst [vmem:[#allocation36_spill] sm:$0xff] %v4596_v14  ;;  %v4620_v27 = vld [vmem:[#allocation2 + $0x120] sm:$0xff]  ;;  %643 = vrot.lane.b32.xlu2 %v4642_v46, %s4116_s26  ;;  %v583_v9 = vrot.slane %v4664_v0, 1 }
  0x8e   : > { %7476 = vst [vmem:[#allocation37_spill] sm:$0xff] %v4599_v13 }
  0x8f   : > { %475 = vst.msk [vmem:[#allocation3 + $0xa8] sm:$0xff] %vm311_vm0, %v4591_v36 }
  0x90   : > { %7477 = vst [vmem:[#allocation38_spill] sm:$0xff] %v4604_v7 }
  0x91   : > { %389 = vst.msk [vmem:[#allocation2 + $0x111] sm:$0xff] %vm311_vm0, %v4589_v40  ;;  %v586_v40 = vrot.slane %v4591_v36, 1  ;;  %v4747_v47 = vld [vmem:[#allocation2 + $0x130] sm:$0x3] }
  0x92   : > { %7478 = vst [vmem:[#allocation39_spill] sm:$0xff] %v4611_v63 }
  0x93   : > { %392 = vst.msk [vmem:[#allocation2 + $0x139] sm:$0xff] %vm311_vm0, %v4596_v14  ;;  %v4632_v14 = vld [vmem:[#allocation2 + $0x128] sm:$0xff]  ;;  %v4672_v58 = vsel %vm534_vm1, %v586_v40, %v588_v11 }
  0x94   : > { %393 = vst.msk [vmem:[#allocation2 + $0x141] sm:$0xff] %vm311_vm0, %v4604_v7  ;;  %v4637_v7 = vld [vmem:[%s4297_s30 + $0xe0] sm:$0xff]  ;;  %v4646_v16 = vld [vmem:[#allocation2 + $0x108] sm:$0xff]  ;;  %657 = vrot.lane.b32.xlu0 %v4672_v58, %s4116_s26  ;;  %v596_v63 = vrot.slane %v4632_v14, 1 }
  0x95   : > { %478 = vst.msk [vmem:[#allocation3 + $0xc0] sm:$0xff] %vm311_vm0, %v4620_v27 }
  0x96   : > { %474 = vst.msk [vmem:[#allocation3 + $0xa0] sm:$0xff] %vm311_vm0, %v4628_v12 }
  0x97   : > { %7479 = vst [vmem:[#allocation40_spill] sm:$0xff] %v4637_v7 }
  0x98   : > { %7480 = vst [vmem:[#allocation41_spill] sm:$0xff] %v4642_v46  ;;  %v4658_v10 = vld [vmem:[#allocation2 + $0x110] sm:$0xff]  ;;  %v4740_v38 = vld [vmem:[#allocation2 + $0x118] sm:$0x3] }
  0x99   : > { %479 = vst.msk [vmem:[#allocation3 + $0xc8] sm:$0xff] %vm311_vm0, %v4632_v14  ;;  %v591_v13 = vrot.slane %v4658_v10, 1  ;;  %v593_v59 = vrot.slane %v4740_v38, 1 }
  0x9a   : > { %476 = vst.msk [vmem:[#allocation3 + $0xb0] sm:$0xff] %vm311_vm0, %v4646_v16  ;;  %v4693_v11 = vld [vmem:[#allocation2 + $0x138] sm:$0xff] }
  0x9b   : > { %7481 = vst [vmem:[#allocation42_spill] sm:$0xff] %v4653_v15  ;;  %v4675_v50 = vld [vmem:[#allocation2 + $0x140] sm:$0xff]  ;;  %v600_v22 = vrot.slane %v4693_v11, 1 }
  0x9c   : > { %7482 = vst [vmem:[#allocation43_spill] sm:$0xff] %v4656_v8  ;;  %v4698_v8 = vsel %vm534_vm1, %v576_v42, %v578_v51  ;;  %v585_v42 = vrot.slane %v4628_v12, 1  ;;  %v590_v51 = vrot.slane %v4646_v16, 1 }
  0x9d   : > { %396 = vst.msk [vmem:[#allocation2 + $0x169] sm:$0xff] %vm311_vm0, %v4637_v7  ;;  %v4680_v7 = vld [vmem:[%s4297_s30 + $0xd8] sm:$0xff]  ;;  %649 = vrot.lane.b32.xlu2 %v4698_v8, %s4116_s26 }
  0x9e   : > { %477 = vst.msk [vmem:[#allocation3 + $0xb8] sm:$0xff] %vm311_vm0, %v4658_v10  ;;  %v4738_v62 = vsel %vm534_vm1, %v585_v42, %v586_v40  ;;  %v4743_v46 = vsel %vm534_vm1, %v590_v51, %v591_v13  ;;  %v598_v40 = vrot.slane %v4747_v47, 1 }
  0x9f   : > { %7483 = vst [vmem:[#allocation44_spill] sm:$0xff] %v4669_v24 }
  0xa0   : > { %7484 = vst [vmem:[#allocation45_spill] sm:$0xff] %v4672_v58 }
  0xa1   : > { %397 = vst.msk [vmem:[#allocation2 + $0x171] sm:$0xff] %vm311_vm0, %v4653_v15  ;;  %v595_v15 = vrot.slane %v4620_v27, 1 }
  0xa2   : > { %7485 = vst [vmem:[#allocation46_spill] sm:$0xff] %v4680_v7 }
  0xa3   : > { %481 = vst.msk [vmem:[#allocation3 + $0xd8] sm:$0xff] %vm311_vm0, %v4675_v50  ;;  %v4714_v58 = vsel %vm534_vm1, %v595_v15, %v596_v63  ;;  %v601_v15 = vrot.slane %v4675_v50, 1 }
  0xa4   : > { %394 = vst.msk [vmem:[#allocation2 + $0x151] sm:$0xff] %vm311_vm0, %v4669_v24  ;;  %v4702_v54 = vld [vmem:[#allocation2 + $0x168] sm:$0xff]  ;;  %v4705_v24 = vsel %vm534_vm1, %v581_v33, %v583_v9  ;;  %663 = vrot.lane.b32.xlu0 %v4714_v58, %s4116_s26 }
  0xa5   : > { %395 = vst.msk [vmem:[#allocation2 + $0x159] sm:$0xff] %vm311_vm0, %v4680_v7  ;;  %653 = vrot.lane.b32.xlu1 %v4705_v24, %s4116_s26  ;;  %v4721_v9 = vld [vmem:[#allocation2 + $0x148] sm:$0x3]  ;;  %655 = vrot.lane.b32.xlu2 %v4738_v62, %s4116_s26  ;;  %v610_v42 = vrot.slane %v4702_v54, 1 }
  0xa6   : > { %7486 = vst [vmem:[#allocation47_spill] sm:$0xff] %v4698_v8 }
  0xa7   : > { %480 = vst.msk [vmem:[#allocation3 + $0xd0] sm:$0xff] %vm311_vm0, %v4693_v11 }
  0xa8   : > { %7487 = vst [vmem:[#allocation48_spill] sm:$0xff] %v4705_v24  ;;  %v4711_v7 = vld [vmem:[#allocation2 + $0x170] sm:$0xff]  ;;  %v603_v24 = vrot.slane %v4721_v9, 1 }
  0xa9   : > { %484 = vst.msk [vmem:[#allocation3 + $0xf0] sm:$0xff] %vm311_vm0, %v4702_v54  ;;  %v611_v51 = vrot.slane %v4711_v7, 1 }
  0xaa   : > { %7488 = vst [vmem:[#allocation49_spill] sm:$0xff] %v4714_v58  ;;  %v4750_v58 = vsel %vm534_vm1, %v601_v15, %v603_v24  ;;  %v4764_v24 = vsel %vm534_vm1, %v596_v63, %v598_v40  ;;  %v4781_v63 = vsel %vm534_vm1, %v600_v22, %v601_v15  ;;  %v756_v15 = vrot.slane %v4398_v34, 2 }
  0xab   : > { %485 = vst.msk [vmem:[#allocation3 + $0xf8] sm:$0xff] %vm311_vm0, %v4711_v7  ;;  %v4723_v33 = vld [vmem:[#allocation2 + $0x150] sm:$0xff] }
  0xac   : > { %v4727_v8 = vld [vmem:[#allocation2 + $0x158] sm:$0xff]  ;;  %482 = vst.msk [vmem:[#allocation3 + $0xe0] sm:$0xff] %vm311_vm0, %v4723_v33  ;;  %669 = vrot.lane.b32.xlu0 %v4750_v58, %s4116_s26  ;;  %v4783_v40 = vld [vmem:[#allocation2 + $0x160] sm:$0x3] }
  0xad   : > { %483 = vst.msk [vmem:[#allocation3 + $0xe8] sm:$0xff] %vm311_vm0, %v4727_v8  ;;  %659 = vrot.lane.b32.xlu1 %v4743_v46, %s4116_s26  ;;  %v606_v30 = vrot.slane %v4727_v8, 1 }
  0xae   : > { %7489 = vst [vmem:[#allocation50_spill] sm:$0xff] %v4738_v62  ;;  %v4761_v62 = vsel %vm534_vm1, %v591_v13, %v593_v59  ;;  %v746_v13 = vrot.slane %v4190_v2, 2  ;;  %v748_v59 = vrot.slane %v4276_v6, 2  ;;  %v608_v2 = vrot.slane %v4783_v40, 1  ;;  %v616_v6 = vpop.permute.xlu0 %615 }
  0xaf   : > { %7490 = vst [vmem:[#allocation51_spill] sm:$0xff] %v4743_v46  ;;  %661 = vrot.lane.b32.xlu2 %v4761_v62, %s4116_s26  ;;  %v4769_v46 = vsel %vm534_vm1, %v610_v42, %v611_v51 }
  0xb0   : > { %7491 = vst [vmem:[#allocation52_spill] sm:$0xff] %v4750_v58  ;;  %v605_v58 = vrot.slane %v4723_v33, 1 }
  0xb1   : > { %7492 = vst [vmem:[#allocation53_spill] sm:$0xff] %v4761_v62  ;;  %v751_v62 = vrot.slane %v4351_v18, 2 }
  0xb2   : > { %7493 = vst [vmem:[#allocation54_spill] sm:$0xff] %v4764_v24  ;;  %v4786_v42 = vsel %vm534_vm1, %v605_v58, %v606_v30  ;;  %v755_v58 = vrot.slane %v4391_v32, 2 }
  0xb3   : > { %7494 = vst [vmem:[#allocation55_spill] sm:$0xff] %v4769_v46 }
  0xb4   : > { %675 = vrot.lane.b32.xlu0 %v4769_v46, %s4116_s26  ;;  %7495 = vst [vmem:[#allocation56_spill] sm:$0xff] %v4781_v63  ;;  %v749_v46 = vsel %vm744_vm3, %v746_v13, %v748_v59  ;;  %v4802_v59 = vsel %vm534_vm1, %v606_v30, %v608_v2  ;;  %v761_v30 = vrot.slane %v4364_v23, 2 }
  0xb5   : > { %665 = vrot.lane.b32.xlu1 %v4764_v24, %s4116_s26  ;;  %7496 = vst [vmem:[#allocation57_spill] sm:$0xff] %v4786_v42  ;;  %v4790_v24 = vld [vmem:[#allocation2 + $0x178] sm:$0x3] }
  0xb6   : > { %v613_v22 = vrot.slane %v4790_v24, 1  ;;  %712 = vst.msk [vmem:[#allocation3] sm:$0xff] %vm711_vm4, %v616_v6  ;;  %v745_v6 = vrot.slane %v4186_v1, 2 }
  0xb7   : > { %667 = vrot.lane.b32.xlu2 %v4781_v63, %s4116_s26  ;;  %7497 = vst [vmem:[#allocation58_spill] sm:$0xff] %v4802_v59 }
  0xb8   : > { %v4805_v63 = vsel %vm534_vm1, %v611_v51, %v613_v22  ;;  %v763_v51 = vrot.slane %v4431_v45, 2  ;;  %v747_v2 = vsel %vm744_vm3, %v745_v6, %v746_v13  ;;  %v770_v45 = vrot.slane %v4473_v57, 2 }
  0xb9   : > { %v771_v13 = vrot.slane %v4481_v60, 2 }
  0xba   : > { %v4827_v1 = vsel %vm744_vm3, %v761_v30, %v763_v51  ;;  %v618_v51 = vpop.permute.xlu0 %617 }
  0xbb   : > { %7499 = vst [vmem:[#allocation60_spill] sm:$0xff] %v4827_v1 }
  0xbc   : > { %827 = vrot.lane.b32.xlu0 %v749_v46, %s4117_s8  ;;  %v750_v46 = vrot.slane %v4347_v17, 2  ;;  %713 = vst.msk [vmem:[#allocation3 + $0x8] sm:$0xff] %vm711_vm4, %v618_v51 }
  0xbd   : > { %671 = vrot.lane.b32.xlu1 %v4786_v42, %s4116_s26  ;;  %v4810_v42 = vsel %vm744_vm3, %v755_v58, %v756_v15  ;;  %v753_v58 = vrot.slane %v4369_v25, 2  ;;  %v4846_v25 = vsel %vm744_vm3, %v770_v45, %v771_v13 }
  0xbe   : > { %7498 = vst [vmem:[#allocation59_spill] sm:$0xff] %v4810_v42  ;;  %v4823_v22 = vsel %vm744_vm3, %v750_v46, %v751_v62 }
  0xbf   : > { %673 = vrot.lane.b32.xlu2 %v4802_v59, %s4116_s26  ;;  %v4838_v6 = vsel %vm744_vm3, %v751_v62, %v753_v58  ;;  %7500 = vst [vmem:[#allocation61_spill] sm:$0xff] %v4846_v25  ;;  %v765_v62 = vrot.slane %v4456_v52, 2  ;;  %v778_v58 = vrot.slane %v4545_v37, 2  ;;  %v773_v37 = vrot.slane %v4532_v35, 2 }
  0xc4   : > { %833 = vrot.lane.b32.xlu0 %v4810_v42, %s4117_s8  ;;  %v758_v42 = vrot.slane %v4416_v41, 2  ;;  %v760_v41 = vrot.slane %v4359_v21, 2 }
  0xc5   : > { %677 = vrot.lane.b32.xlu1 %v4805_v63, %s4116_s26 }
  0xc6   : > { %v4841_v46 = vsel %vm744_vm3, %v756_v15, %v758_v42  ;;  %v766_v42 = vrot.slane %v4379_v28, 2  ;;  %v776_v15 = vrot.slane %v4462_v53, 2  ;;  %v4860_v45 = vsel %vm744_vm3, %v760_v41, %v761_v30 }
  0xc7   : > { %825 = vrot.lane.b32.xlu2 %v747_v2, %s4117_s8  ;;  %v624_v2 = vpop.permute.xlu2 %623  ;;  %v785_v30 = vrot.slane %v4560_v5, 2  ;;  %v786_v41 = vrot.slane %v4570_v61, 2 }
  0xc8   : > { %716 = vst.msk [vmem:[#allocation3 + $0x20] sm:$0xff] %vm711_vm4, %v624_v2  ;;  %v4868_v51 = vsel %vm744_vm3, %v776_v15, %v778_v58  ;;  %v768_v2 = vrot.slane %v4381_v29, 2  ;;  %v4883_v29 = vsel %vm744_vm3, %v771_v13, %v773_v37  ;;  %v620_v13 = vpop.permute.xlu1 %619  ;;  %v793_v37 = vrot.slane %v4664_v0, 2 }
  0xc9   : > { %7502 = vst [vmem:[#allocation63_spill] sm:$0xff] %v4868_v51  ;;  %v4888_v35 = vsel %vm744_vm3, %v785_v30, %v786_v41 }
  0xca   : > { %7504 = vst [vmem:[#allocation65_spill] sm:$0xff] %v4883_v29 }
  0xcb   : > { %7505 = vst [vmem:[#allocation66_spill] sm:$0xff] %v4888_v35 }
  0xcc   : > { %839 = vrot.lane.b32.xlu0 %v4827_v1, %s4117_s8  ;;  %v4863_v1 = vsel %vm744_vm3, %v765_v62, %v766_v42  ;;  %v4880_v62 = vsel %vm744_vm3, %v766_v42, %v768_v2  ;;  %v781_v42 = vrot.slane %v4503_v3, 2  ;;  %714 = vst.msk [vmem:[#allocation3 + $0x10] sm:$0xff] %vm711_vm4, %v620_v13  ;;  %v791_v2 = vrot.slane %v4547_v49, 2 }
  0xcd   : > { %829 = vrot.lane.b32.xlu1 %v4823_v22, %s4117_s8  ;;  %7501 = vst [vmem:[#allocation62_spill] sm:$0xff] %v4863_v1  ;;  %v783_v13 = vrot.slane %v4505_v4, 2 }
  0xce   : > { %7503 = vst [vmem:[#allocation64_spill] sm:$0xff] %v4880_v62 }
  0xcf   : > { %831 = vrot.lane.b32.xlu2 %v4838_v6, %s4117_s8  ;;  %v4924_v4 = vsel %vm744_vm3, %v781_v42, %v783_v13  ;;  %v796_v13 = vrot.slane %v4591_v36, 2 }
  0xd0   : > { %7508 = vst [vmem:[#allocation69_spill] sm:$0xff] %v4924_v4 }
  0xd4   : > { %845 = vrot.lane.b32.xlu0 %v4846_v25, %s4117_s8  ;;  %v626_v25 = vpop.permute.xlu2 %625 }
  0xd5   : > { %835 = vrot.lane.b32.xlu1 %v4841_v46, %s4117_s8  ;;  %717 = vst.msk [vmem:[#allocation3 + $0x28] sm:$0xff] %vm711_vm4, %v626_v25  ;;  %v775_v25 = vrot.slane %v4441_v48, 2 }
  0xd7   : > { %837 = vrot.lane.b32.xlu2 %v4860_v45, %s4117_s8  ;;  %v4902_v30 = vsel %vm744_vm3, %v775_v25, %v776_v15  ;;  %v788_v15 = vrot.slane %v4648_v20, 2  ;;  %v801_v25 = vrot.slane %v4658_v10, 2 }
  0xd8   : > { %7506 = vst [vmem:[#allocation67_spill] sm:$0xff] %v4902_v30 }
  0xdc   : > { %851 = vrot.lane.b32.xlu0 %v4868_v51, %s4117_s8  ;;  %v632_v58 = vpop.permute.xlu2 %631  ;;  %v780_v51 = vrot.slane %v4541_v39, 2 }
  0xdd   : > { %841 = vrot.lane.b32.xlu1 %v4863_v1, %s4117_s8  ;;  %720 = vst.msk [vmem:[#allocation3 + $0x40] sm:$0xff] %vm711_vm4, %v632_v58  ;;  %v4911_v58 = vsel %vm744_vm3, %v791_v2, %v793_v37 }
  0xde   : > { %v4905_v1 = vsel %vm744_vm3, %v780_v51, %v781_v42  ;;  %7507 = vst [vmem:[#allocation68_spill] sm:$0xff] %v4911_v58  ;;  %v622_v51 = vpop.permute.xlu1 %621  ;;  %v795_v42 = vrot.slane %v4628_v12, 2 }
  0xdf   : > { %843 = vrot.lane.b32.xlu2 %v4880_v62, %s4117_s8  ;;  %715 = vst.msk [vmem:[#allocation3 + $0x18] sm:$0xff] %vm711_vm4, %v622_v51 }
  0xe4   : > { %857 = vrot.lane.b32.xlu0 %v4888_v35, %s4117_s8  ;;  %v638_v0 = vpop.permute.xlu2 %637  ;;  %v4927_v35 = vsel %vm744_vm3, %v786_v41, %v788_v15  ;;  %v806_v15 = vrot.slane %v4632_v14, 2 }
  0xe5   : > { %847 = vrot.lane.b32.xlu1 %v4883_v29, %s4117_s8  ;;  %v628_v29 = vpop.permute.xlu0 %627  ;;  %723 = vst.msk [vmem:[#allocation3 + $0x58] sm:$0xff] %vm711_vm4, %v638_v0  ;;  %v790_v0 = vrot.slane %v4518_v19, 2 }
  0xe6   : > { %718 = vst.msk [vmem:[#allocation3 + $0x30] sm:$0xff] %vm711_vm4, %v628_v29  ;;  %v800_v29 = vrot.slane %v4646_v16, 2  ;;  %v630_v41 = vpop.permute.xlu1 %629 }
  0xe7   : > { %849 = vrot.lane.b32.xlu2 %v4902_v30, %s4117_s8  ;;  %7509 = vst [vmem:[#allocation70_spill] sm:$0xff] %v4927_v35 }
  0xe8   : > { %v4933_v20 = vsel %vm744_vm3, %v800_v29, %v801_v25  ;;  %719 = vst.msk [vmem:[#allocation3 + $0x38] sm:$0xff] %vm711_vm4, %v630_v41  ;;  %v808_v29 = vrot.slane %v4747_v47, 2  ;;  %v798_v41 = vrot.slane %v4618_v56, 2 }
  0xe9   : > { %7510 = vst [vmem:[#allocation71_spill] sm:$0xff] %v4933_v20 }
  0xea   : > { %v4969_v56 = vsel %vm744_vm3, %v796_v13, %v798_v41  ;;  %v811_v41 = vrot.slane %v4675_v50, 2 }
  0xeb   : > { %7513 = vst [vmem:[#allocation74_spill] sm:$0xff] %v4969_v56 }
  0xec   : > { %863 = vrot.lane.b32.xlu0 %v4911_v58, %s4117_s8  ;;  %v644_v51 = vpop.permute.xlu2 %643 }
  0xed   : > { %853 = vrot.lane.b32.xlu1 %v4905_v1, %s4117_s8  ;;  %v634_v37 = vpop.permute.xlu0 %633  ;;  %726 = vst.msk [vmem:[#allocation3 + $0x70] sm:$0xff] %vm711_vm4, %v644_v51  ;;  %v4956_v51 = vsel %vm744_vm3, %v806_v15, %v808_v29 }
  0xee   : > { %721 = vst.msk [vmem:[#allocation3 + $0x48] sm:$0xff] %vm711_vm4, %v634_v37  ;;  %v4947_v37 = vsel %vm744_vm3, %v790_v0, %v791_v2  ;;  %v803_v2 = vrot.slane %v4740_v38, 2  ;;  %v636_v0 = vpop.permute.xlu1 %635 }
  0xef   : > { %855 = vrot.lane.b32.xlu2 %v4924_v4, %s4117_s8  ;;  %7511 = vst [vmem:[#allocation72_spill] sm:$0xff] %v4947_v37 }
  0xf0   : > { %7512 = vst [vmem:[#allocation73_spill] sm:$0xff] %v4956_v51 }
  0xf1   : > { %722 = vst.msk [vmem:[#allocation3 + $0x50] sm:$0xff] %vm711_vm4, %v636_v0 }
  0xf4   : > { %869 = vrot.lane.b32.xlu0 %v4933_v20, %s4117_s8  ;;  %v4972_v20 = vsel %vm744_vm3, %v801_v25, %v803_v2  ;;  %v821_v2 = vrot.slane %v4711_v7, 2 }
  0xf5   : > { %859 = vrot.lane.b32.xlu1 %v4927_v35, %s4117_s8  ;;  %v640_v58 = vpop.permute.xlu0 %639  ;;  %v4950_v35 = vsel %vm744_vm3, %v795_v42, %v796_v13  ;;  %v816_v42 = vrot.slane %v4727_v8, 2  ;;  %7514 = vst [vmem:[#allocation75_spill] sm:$0xff] %v4972_v20  ;;  %v810_v13 = vrot.slane %v4693_v11, 2 }
  0xf6   : > { %724 = vst.msk [vmem:[#allocation3 + $0x60] sm:$0xff] %vm711_vm4, %v640_v58  ;;  %v815_v58 = vrot.slane %v4723_v33, 2  ;;  %v642_v25 = vpop.permute.xlu1 %641 }
  0xf7   : > { %861 = vrot.lane.b32.xlu2 %v4947_v37, %s4117_s8  ;;  %v650_v47 = vpop.permute.xlu2 %649  ;;  %725 = vst.msk [vmem:[#allocation3 + $0x68] sm:$0xff] %vm711_vm4, %v642_v25  ;;  %v813_v25 = vrot.slane %v4721_v9, 2 }
  0xf8   : > { %729 = vst.msk [vmem:[#allocation3 + $0x88] sm:$0xff] %vm711_vm4, %v650_v47  ;;  %v4978_v38 = vsel %vm744_vm3, %v815_v58, %v816_v42  ;;  %v805_v47 = vrot.slane %v4620_v27, 2  ;;  %v823_v58 = vrot.slane %v4790_v24, 2 }
  0xfc   : > { %875 = vrot.lane.b32.xlu0 %v4956_v51, %s4117_s8 }
  0xfd   : > { %865 = vrot.lane.b32.xlu1 %v4950_v35, %s4117_s8  ;;  %v646_v29 = vpop.permute.xlu0 %645 }
  0xfe   : > { %727 = vst.msk [vmem:[#allocation3 + $0x78] sm:$0xff] %vm711_vm4, %v646_v29  ;;  %v4992_v29 = vsel %vm744_vm3, %v805_v47, %v806_v15  ;;  %v818_v15 = vrot.slane %v4783_v40, 2  ;;  %v648_v47 = vpop.permute.xlu1 %647  ;;  %v820_v40 = vrot.slane %v4702_v54, 2 }
  0xff   : > { %867 = vrot.lane.b32.xlu2 %v4969_v56, %s4117_s8  ;;  %v656_v0 = vpop.permute.xlu2 %655  ;;  %7515 = vst [vmem:[#allocation76_spill] sm:$0xff] %v4992_v29 }
 0x100   : > { %732 = vst.msk [vmem:[#allocation3 + $0xa0] sm:$0xff] %vm711_vm4, %v656_v0  ;;  %v5001_v0 = vsel %vm744_vm3, %v821_v2, %v823_v58  ;;  %v5015_v9 = vsel %vm744_vm3, %v816_v42, %v818_v15  ;;  %v5028_v42 = vsel %vm744_vm3, %v820_v40, %v821_v2 }
 0x101   : > { %728 = vst.msk [vmem:[#allocation3 + $0x80] sm:$0xff] %vm711_vm4, %v648_v47 }
 0x104   : > { %881 = vrot.lane.b32.xlu0 %v4978_v38, %s4117_s8 }
 0x105   : > { %871 = vrot.lane.b32.xlu1 %v4972_v20, %s4117_s8  ;;  %v652_v51 = vpop.permute.xlu0 %651  ;;  %v4995_v20 = vsel %vm744_vm3, %v810_v13, %v811_v41 }
 0x106   : > { %730 = vst.msk [vmem:[#allocation3 + $0x90] sm:$0xff] %vm711_vm4, %v652_v51  ;;  %v5012_v51 = vsel %vm744_vm3, %v811_v41, %v813_v25 }
 0x107   : > { %873 = vrot.lane.b32.xlu2 %v4992_v29, %s4117_s8  ;;  %7516 = vst [vmem:[#allocation77_spill] sm:$0xff] %v5012_v51 }
 0x109   : > { %v662_v24 = vpop.permute.xlu2 %661 }
 0x10a   : > { %735 = vst.msk [vmem:[#allocation3 + $0xb8] sm:$0xff] %vm711_vm4, %v662_v24 }
 0x10c   : > { %887 = vrot.lane.b32.xlu0 %v5001_v0, %s4117_s8 }
 0x10d   : > { %877 = vrot.lane.b32.xlu1 %v4995_v20, %s4117_s8  ;;  %v658_v13 = vpop.permute.xlu0 %657 }
 0x10e   : > { %733 = vst.msk [vmem:[#allocation3 + $0xa8] sm:$0xff] %vm711_vm4, %v658_v13 }
 0x10f   : > { %879 = vrot.lane.b32.xlu2 %v5012_v51, %s4117_s8 }
 0x111   : > { %v668_v58 = vpop.permute.xlu2 %667 }
 0x112   : > { %738 = vst.msk [vmem:[#allocation3 + $0xd0] sm:$0xff] %vm711_vm4, %v668_v58 }
 0x114   : > { %960 = vrot.lane.b32.xlu0 %v4391_v32, %s4118_s9 }
 0x115   : > { %883 = vrot.lane.b32.xlu1 %v5015_v9, %s4117_s8 }
 0x116   : > { %v664_v41 = vpop.permute.xlu0 %663 }
 0x117   : > { %v654_v24 = vpop.permute.xlu1 %653  ;;  %736 = vst.msk [vmem:[#allocation3 + $0xc0] sm:$0xff] %vm711_vm4, %v664_v41  ;;  %885 = vrot.lane.b32.xlu2 %v5028_v42, %s4117_s8 }
 0x118   : > { %731 = vst.msk [vmem:[#allocation3 + $0x98] sm:$0xff] %vm711_vm4, %v654_v24 }
 0x119   : > { %v674_v25 = vpop.permute.xlu2 %673 }
 0x11a   : > { %741 = vst.msk [vmem:[#allocation3 + $0xe8] sm:$0xff] %vm711_vm4, %v674_v25 }
 0x11c   : > { %966 = vrot.lane.b32.xlu0 %v4364_v23, %s4118_s9 }
 0x11d   : > { %956 = vrot.lane.b32.xlu1 %v4347_v17, %s4118_s9 }
 0x11e   : > { %v670_v2 = vpop.permute.xlu0 %669 }
 0x11f   : > { %v660_v15 = vpop.permute.xlu1 %659  ;;  %739 = vst.msk [vmem:[#allocation3 + $0xd8] sm:$0xff] %vm711_vm4, %v670_v2  ;;  %958 = vrot.lane.b32.xlu2 %v4351_v18, %s4118_s9 }
 0x120   : > { %734 = vst.msk [vmem:[#allocation3 + $0xb0] sm:$0xff] %vm711_vm4, %v660_v15 }
 0x121   : > { %v826_v17 = vpop.permute.xlu2 %825 }
 0x122   : > { %922 = vst.msk [vmem:[#allocation3] sm:$0xff] %vm921_vm5, %v826_v17 }
 0x124   : > { %972 = vrot.lane.b32.xlu0 %v4473_v57, %s4118_s9 }
 0x125   : > { %962 = vrot.lane.b32.xlu1 %v4398_v34, %s4118_s9 }
 0x126   : > { %v676_v13 = vpop.permute.xlu0 %675 }
 0x127   : > { %v666_v47 = vpop.permute.xlu1 %665  ;;  %742 = vst.msk [vmem:[#allocation3 + $0xf0] sm:$0xff] %vm711_vm4, %v676_v13  ;;  %964 = vrot.lane.b32.xlu2 %v4359_v21, %s4118_s9 }
 0x128   : > { %737 = vst.msk [vmem:[#allocation3 + $0xc8] sm:$0xff] %vm711_vm4, %v666_v47  ;;  %v5079_v47 = vld [vmem:[%s4297_s30 + $0xf0] sm:$0xff] }
 0x129   : > { %v832_v18 = vpop.permute.xlu2 %831  ;;  %7517 = vst [vmem:[#allocation78_spill] sm:$0xff] %v5079_v47 }
 0x12a   : > { %925 = vst.msk [vmem:[#allocation3 + $0x18] sm:$0xff] %vm921_vm5, %v832_v18 }
 0x12b   : > { %398 = vst.msk [vmem:[#allocation2 + $0x181] sm:$0xff] %vm311_vm0, %v5079_v47 }
 0x12c   : > { %978 = vrot.lane.b32.xlu0 %v4462_v53, %s4118_s9 }
 0x12d   : > { %968 = vrot.lane.b32.xlu1 %v4456_v52, %s4118_s9 }
 0x12e   : > { %v828_v58 = vpop.permute.xlu0 %827 }
 0x12f   : > { %v672_v40 = vpop.permute.xlu1 %671  ;;  %923 = vst.msk [vmem:[#allocation3 + $0x8] sm:$0xff] %vm921_vm5, %v828_v58  ;;  %970 = vrot.lane.b32.xlu2 %v4379_v28, %s4118_s9 }
 0x130   : > { %740 = vst.msk [vmem:[#allocation3 + $0xe0] sm:$0xff] %vm711_vm4, %v672_v40 }
 0x131   : > { %v838_v24 = vpop.permute.xlu2 %837 }
 0x132   : > { %928 = vst.msk [vmem:[#allocation3 + $0x30] sm:$0xff] %vm921_vm5, %v838_v24 }
 0x134   : > { %984 = vrot.lane.b32.xlu0 %v4560_v5, %s4118_s9 }
 0x135   : > { %974 = vrot.lane.b32.xlu1 %v4481_v60, %s4118_s9 }
 0x136   : > { %v834_v25 = vpop.permute.xlu0 %833 }
 0x137   : > { %v678_v41 = vpop.permute.xlu1 %677  ;;  %926 = vst.msk [vmem:[#allocation3 + $0x20] sm:$0xff] %vm921_vm5, %v834_v25  ;;  %976 = vrot.lane.b32.xlu2 %v4441_v48, %s4118_s9  ;;  %v5102_v25 = vld [vmem:[%s4297_s30 + $0xf8] sm:$0xff] }
 0x138   : > { %743 = vst.msk [vmem:[#allocation3 + $0xf8] sm:$0xff] %vm711_vm4, %v678_v41 }
 0x139   : > { %v844_v15 = vpop.permute.xlu2 %843  ;;  %7518 = vst [vmem:[#allocation79_spill] sm:$0xff] %v5102_v25 }
 0x13a   : > { %931 = vst.msk [vmem:[#allocation3 + $0x48] sm:$0xff] %vm921_vm5, %v844_v15 }
 0x13b   : > { %399 = vst.msk [vmem:[#allocation2 + $0x189] sm:$0xff] %vm311_vm0, %v5102_v25 }
 0x13c   : > { %990 = vrot.lane.b32.xlu0 %v4547_v49, %s4118_s9 }
 0x13d   : > { %980 = vrot.lane.b32.xlu1 %v4541_v39, %s4118_s9 }
 0x13e   : > { %v840_v17 = vpop.permute.xlu0 %839 }
 0x13f   : > { %v830_v2 = vpop.permute.xlu1 %829  ;;  %929 = vst.msk [vmem:[#allocation3 + $0x38] sm:$0xff] %vm921_vm5, %v840_v17  ;;  %982 = vrot.lane.b32.xlu2 %v4503_v3, %s4118_s9 }
 0x140   : > { %924 = vst.msk [vmem:[#allocation3 + $0x10] sm:$0xff] %vm921_vm5, %v830_v2 }
 0x141   : > { %v850_v13 = vpop.permute.xlu2 %849 }
 0x142   : > { %934 = vst.msk [vmem:[#allocation3 + $0x60] sm:$0xff] %vm921_vm5, %v850_v13 }
 0x144   : > { %996 = vrot.lane.b32.xlu0 %v4646_v16, %s4118_s9 }
 0x145   : > { %986 = vrot.lane.b32.xlu1 %v4570_v61, %s4118_s9 }
 0x146   : > { %v846_v40 = vpop.permute.xlu0 %845 }
 0x147   : > { %v836_v18 = vpop.permute.xlu1 %835  ;;  %932 = vst.msk [vmem:[#allocation3 + $0x50] sm:$0xff] %vm921_vm5, %v846_v40  ;;  %988 = vrot.lane.b32.xlu2 %v4518_v19, %s4118_s9 }
 0x148   : > { %927 = vst.msk [vmem:[#allocation3 + $0x28] sm:$0xff] %vm921_vm5, %v836_v18 }
 0x149   : > { %v856_v58 = vpop.permute.xlu2 %855 }
 0x14a   : > { %937 = vst.msk [vmem:[#allocation3 + $0x78] sm:$0xff] %vm921_vm5, %v856_v58 }
 0x14c   : > { %1002 = vrot.lane.b32.xlu0 %v4632_v14, %s4118_s9 }
 0x14d   : > { %992 = vrot.lane.b32.xlu1 %v4628_v12, %s4118_s9 }
 0x14e   : > { %v852_v41 = vpop.permute.xlu0 %851 }
 0x14f   : > { %v842_v24 = vpop.permute.xlu1 %841  ;;  %935 = vst.msk [vmem:[#allocation3 + $0x68] sm:$0xff] %vm921_vm5, %v852_v41  ;;  %994 = vrot.lane.b32.xlu2 %v4591_v36, %s4118_s9 }
 0x150   : > { %930 = vst.msk [vmem:[#allocation3 + $0x40] sm:$0xff] %vm921_vm5, %v842_v24 }
 0x151   : > { %v862_v15 = vpop.permute.xlu2 %861 }
 0x152   : > { %940 = vst.msk [vmem:[#allocation3 + $0x90] sm:$0xff] %vm921_vm5, %v862_v15  ;;  %v5130_v15 = vld [vmem:[#allocation2 + $0x180] sm:$0xff] }
 0x154   : > { %1008 = vrot.lane.b32.xlu0 %v4723_v33, %s4118_s9 }
 0x155   : > { %998 = vrot.lane.b32.xlu1 %v4658_v10, %s4118_s9 }
 0x156   : > { %v858_v17 = vpop.permute.xlu0 %857 }
 0x157   : > { %v848_v2 = vpop.permute.xlu1 %847  ;;  %938 = vst.msk [vmem:[#allocation3 + $0x80] sm:$0xff] %vm921_vm5, %v858_v17  ;;  %1000 = vrot.lane.b32.xlu2 %v4620_v27, %s4118_s9 }
 0x158   : > { %933 = vst.msk [vmem:[#allocation3 + $0x58] sm:$0xff] %vm921_vm5, %v848_v2 }
 0x159   : > { %v868_v13 = vpop.permute.xlu2 %867 }
 0x15a   : > { %943 = vst.msk [vmem:[#allocation3 + $0xa8] sm:$0xff] %vm921_vm5, %v868_v13 }
 0x15c   : > { %1014 = vrot.lane.b32.xlu0 %v4711_v7, %s4118_s9 }
 0x15d   : > { %1004 = vrot.lane.b32.xlu1 %v4693_v11, %s4118_s9 }
 0x15e   : > { %v864_v40 = vpop.permute.xlu0 %863 }
 0x15f   : > { %v854_v18 = vpop.permute.xlu1 %853  ;;  %941 = vst.msk [vmem:[#allocation3 + $0x98] sm:$0xff] %vm921_vm5, %v864_v40  ;;  %1006 = vrot.lane.b32.xlu2 %v4675_v50, %s4118_s9 }
 0x160   : > { %936 = vst.msk [vmem:[#allocation3 + $0x70] sm:$0xff] %vm921_vm5, %v854_v18 }
 0x161   : > { %v874_v58 = vpop.permute.xlu2 %873 }
 0x162   : > { %946 = vst.msk [vmem:[#allocation3 + $0xc0] sm:$0xff] %vm921_vm5, %v874_v58 }
 0x164   : > { %1091 = vrot.lane.b32.xlu0 %v4372_v26, %s4119_s10  ;;  %v5141_v26 = vld [vmem:[#allocation2 + $0x188] sm:$0xff] }
 0x165   : > { %1010 = vrot.lane.b32.xlu1 %v4727_v8, %s4118_s9 }
 0x166   : > { %v870_v41 = vpop.permute.xlu0 %869 }
 0x167   : > { %v860_v24 = vpop.permute.xlu1 %859  ;;  %944 = vst.msk [vmem:[#allocation3 + $0xb0] sm:$0xff] %vm921_vm5, %v870_v41  ;;  %1012 = vrot.lane.b32.xlu2 %v4702_v54, %s4118_s9 }
 0x168   : > { %939 = vst.msk [vmem:[#allocation3 + $0x88] sm:$0xff] %vm921_vm5, %v860_v24  ;;  %v7519_v24 = vld [vmem:[#allocation13_spill] sm:$0xff] }
 0x169   : > { %v880_v2 = vpop.permute.xlu2 %879 }
 0x16a   : > { %949 = vst.msk [vmem:[#allocation3 + $0xd8] sm:$0xff] %vm921_vm5, %v880_v2  ;;  %v7520_v2 = vld [vmem:[#allocation34_spill] sm:$0xff] }
 0x16c   : > { %1097 = vrot.lane.b32.xlu0 %v4466_v55, %s4119_s10 }
 0x16d   : > { %1016 = vrot.lane.b32.xlu1 %v5130_v15, %s4118_s9 }
 0x16e   : > { %v876_v13 = vpop.permute.xlu0 %875 }
 0x16f   : > { %v866_v17 = vpop.permute.xlu1 %865  ;;  %947 = vst.msk [vmem:[#allocation3 + $0xc8] sm:$0xff] %vm921_vm5, %v876_v13  ;;  %1018 = vrot.lane.b32.xlu2 %v5141_v26, %s4118_s9  ;;  %v7521_v13 = vld [vmem:[#allocation22_spill] sm:$0xff] }
 0x170   : > { %942 = vst.msk [vmem:[#allocation3 + $0xa0] sm:$0xff] %vm921_vm5, %v866_v17 }
 0x171   : > { %v886_v18 = vpop.permute.xlu2 %885 }
 0x172   : > { %952 = vst.msk [vmem:[#allocation3 + $0xf0] sm:$0xff] %vm921_vm5, %v886_v18  ;;  %v7522_v18 = vld [vmem:[#allocation19_spill] sm:$0xff] }
 0x174   : > { %1103 = vrot.lane.b32.xlu0 %v4528_v31, %s4119_s10 }
 0x175   : > { %1093 = vrot.lane.b32.xlu1 %v4422_v43, %s4119_s10 }
 0x176   : > { %v882_v58 = vpop.permute.xlu0 %881 }
 0x177   : > { %v872_v40 = vpop.permute.xlu1 %871  ;;  %950 = vst.msk [vmem:[#allocation3 + $0xe0] sm:$0xff] %vm921_vm5, %v882_v58  ;;  %1095 = vrot.lane.b32.xlu2 %v4425_v44, %s4119_s10 }
 0x178   : > { %945 = vst.msk [vmem:[#allocation3 + $0xb8] sm:$0xff] %vm921_vm5, %v872_v40 }
 0x179   : > { %v959_v43 = vpop.permute.xlu2 %958 }
 0x17a   : > { %1054 = vst.msk [vmem:[#allocation3 + $0x8] sm:$0xff] %vm1052_vm6, %v959_v43  ;;  %v7523_v43 = vld [vmem:[#allocation41_spill] sm:$0xff] }
 0x17c   : > { %1109 = vrot.lane.b32.xlu0 %v7520_v2, %s4119_s10 }
 0x17d   : > { %1099 = vrot.lane.b32.xlu1 %v7519_v24, %s4119_s10 }
 0x17e   : > { %v888_v17 = vpop.permute.xlu0 %887 }
 0x17f   : > { %v878_v41 = vpop.permute.xlu1 %877  ;;  %953 = vst.msk [vmem:[#allocation3 + $0xf8] sm:$0xff] %vm921_vm5, %v888_v17  ;;  %1101 = vrot.lane.b32.xlu2 %v7521_v13, %s4119_s10  ;;  %v7525_v17 = vld [vmem:[#allocation24_spill] sm:$0xff] }
 0x180   : > { %948 = vst.msk [vmem:[#allocation3 + $0xd0] sm:$0xff] %vm921_vm5, %v878_v41  ;;  %v7524_v41 = vld [vmem:[#allocation29_spill] sm:$0xff] }
 0x181   : > { %v965_v40 = vpop.permute.xlu2 %964 }
 0x182   : > { %1057 = vst.msk [vmem:[#allocation3 + $0x20] sm:$0xff] %vm1052_vm6, %v965_v40  ;;  %v7526_v40 = vld [vmem:[#allocation47_spill] sm:$0xff] }
 0x184   : > { %1115 = vrot.lane.b32.xlu0 %v7523_v43, %s4119_s10 }
 0x185   : > { %1105 = vrot.lane.b32.xlu1 %v7522_v18, %s4119_s10 }
 0x186   : > { %v961_v25 = vpop.permute.xlu0 %960 }
 0x187   : > { %v884_v58 = vpop.permute.xlu1 %883  ;;  %1055 = vst.msk [vmem:[#allocation3 + $0x10] sm:$0xff] %vm1052_vm6, %v961_v25  ;;  %1107 = vrot.lane.b32.xlu2 %v7524_v41, %s4119_s10  ;;  %v7527_v25 = vld [vmem:[#allocation37_spill] sm:$0xff] }
 0x188   : > { %951 = vst.msk [vmem:[#allocation3 + $0xe8] sm:$0xff] %vm921_vm5, %v884_v58  ;;  %v7528_v58 = vld [vmem:[#allocation31_spill] sm:$0xff] }
 0x189   : > { %v971_v47 = vpop.permute.xlu2 %970 }
 0x18a   : > { %1060 = vst.msk [vmem:[#allocation3 + $0x38] sm:$0xff] %vm1052_vm6, %v971_v47  ;;  %v7529_v47 = vld [vmem:[#allocation50_spill] sm:$0xff] }
 0x18c   : > { %1121 = vrot.lane.b32.xlu0 %v7526_v40, %s4119_s10 }
 0x18d   : > { %1111 = vrot.lane.b32.xlu1 %v7525_v17, %s4119_s10 }
 0x18e   : > { %v967_v43 = vpop.permute.xlu0 %966 }
 0x18f   : > { %v957_v2 = vpop.permute.xlu1 %956  ;;  %1058 = vst.msk [vmem:[#allocation3 + $0x28] sm:$0xff] %vm1052_vm6, %v967_v43  ;;  %1113 = vrot.lane.b32.xlu2 %v7527_v25, %s4119_s10  ;;  %v7531_v43 = vld [vmem:[#allocation39_spill] sm:$0xff] }
 0x190   : > { %1053 = vst.msk [vmem:[#allocation3] sm:$0xff] %vm1052_vm6, %v957_v2  ;;  %v7530_v2 = vld [vmem:[#allocation43_spill] sm:$0xff] }
 0x191   : > { %v977_v18 = vpop.permute.xlu2 %976 }
 0x192   : > { %1063 = vst.msk [vmem:[#allocation3 + $0x50] sm:$0xff] %vm1052_vm6, %v977_v18  ;;  %v7532_v18 = vld [vmem:[#allocation53_spill] sm:$0xff] }
 0x194   : > { %1127 = vrot.lane.b32.xlu0 %v7529_v47, %s4119_s10 }
 0x195   : > { %1117 = vrot.lane.b32.xlu1 %v7528_v58, %s4119_s10 }
 0x196   : > { %v973_v40 = vpop.permute.xlu0 %972 }
 0x197   : > { %v963_v17 = vpop.permute.xlu1 %962  ;;  %1061 = vst.msk [vmem:[#allocation3 + $0x40] sm:$0xff] %vm1052_vm6, %v973_v40  ;;  %1119 = vrot.lane.b32.xlu2 %v7530_v2, %s4119_s10  ;;  %v7534_v40 = vld [vmem:[#allocation45_spill] sm:$0xff] }
 0x198   : > { %1056 = vst.msk [vmem:[#allocation3 + $0x18] sm:$0xff] %vm1052_vm6, %v963_v17  ;;  %v7533_v17 = vld [vmem:[#allocation48_spill] sm:$0xff] }
 0x199   : > { %v983_v25 = vpop.permute.xlu2 %982 }
 0x19a   : > { %1066 = vst.msk [vmem:[#allocation3 + $0x68] sm:$0xff] %vm1052_vm6, %v983_v25  ;;  %v7535_v25 = vld [vmem:[#allocation56_spill] sm:$0xff] }
 0x19c   : > { %1133 = vrot.lane.b32.xlu0 %v7532_v18, %s4119_s10 }
 0x19d   : > { %1123 = vrot.lane.b32.xlu1 %v7531_v43, %s4119_s10 }
 0x19e   : > { %v979_v47 = vpop.permute.xlu0 %978 }
 0x19f   : > { %v969_v58 = vpop.permute.xlu1 %968  ;;  %1064 = vst.msk [vmem:[#allocation3 + $0x58] sm:$0xff] %vm1052_vm6, %v979_v47  ;;  %1125 = vrot.lane.b32.xlu2 %v7533_v17, %s4119_s10  ;;  %v7537_v47 = vld [vmem:[#allocation49_spill] sm:$0xff] }
 0x1a0   : > { %1059 = vst.msk [vmem:[#allocation3 + $0x30] sm:$0xff] %vm1052_vm6, %v969_v58  ;;  %v7536_v58 = vld [vmem:[#allocation51_spill] sm:$0xff] }
 0x1a1   : > { %v989_v2 = vpop.permute.xlu2 %988 }
 0x1a2   : > { %1069 = vst.msk [vmem:[#allocation3 + $0x80] sm:$0xff] %vm1052_vm6, %v989_v2  ;;  %v1086_v2 = vrot.slane %v5130_v15, 1 }
 0x1a4   : > { %1139 = vrot.lane.b32.xlu0 %v7535_v25, %s4119_s10  ;;  %v7538_v25 = vld [vmem:[#allocation54_spill] sm:$0xff] }
 0x1a5   : > { %1129 = vrot.lane.b32.xlu1 %v7534_v40, %s4119_s10 }
 0x1a6   : > { %v985_v18 = vpop.permute.xlu0 %984 }
 0x1a7   : > { %v975_v43 = vpop.permute.xlu1 %974  ;;  %1067 = vst.msk [vmem:[#allocation3 + $0x70] sm:$0xff] %vm1052_vm6, %v985_v18  ;;  %1131 = vrot.lane.b32.xlu2 %v7536_v58, %s4119_s10 }
 0x1a8   : > { %1062 = vst.msk [vmem:[#allocation3 + $0x48] sm:$0xff] %vm1052_vm6, %v975_v43  ;;  %v1087_v43 = vrot.slane %v5141_v26, 1 }
 0x1a9   : > { %v995_v17 = vpop.permute.xlu2 %994 }
 0x1aa   : > { %1072 = vst.msk [vmem:[#allocation3 + $0x98] sm:$0xff] %vm1052_vm6, %v995_v17  ;;  %v7540_v17 = vld [vmem:[#allocation52_spill] sm:$0xff] }
 0x1ac   : > { %1145 = vrot.lane.b32.xlu0 %v4802_v59, %s4119_s10 }
 0x1ad   : > { %1135 = vrot.lane.b32.xlu1 %v7537_v47, %s4119_s10  ;;  %v5221_v47 = vsel %vm534_vm1, %v1086_v2, %v1087_v43  ;;  %v5232_v2 = vld [vmem:[#allocation2 + $0x190] sm:$0x3] }
 0x1ae   : > { %v991_v18 = vpop.permute.xlu0 %990  ;;  %7539 = vst [vmem:[#allocation13_spill] sm:$0xff] %v5221_v47 }
 0x1af   : > { %v981_v40 = vpop.permute.xlu1 %980  ;;  %1070 = vst.msk [vmem:[#allocation3 + $0x88] sm:$0xff] %vm1052_vm6, %v991_v18  ;;  %1137 = vrot.lane.b32.xlu2 %v7538_v25, %s4119_s10  ;;  %v7541_v18 = vld [vmem:[#allocation57_spill] sm:$0xff]  ;;  %v7542_v25 = vld [vmem:[#allocation55_spill] sm:$0xff] }
 0x1b0   : > { %1065 = vst.msk [vmem:[#allocation3 + $0x60] sm:$0xff] %vm1052_vm6, %v981_v40 }
 0x1b1   : > { %v1001_v58 = vpop.permute.xlu2 %1000 }
 0x1b2   : > { %1075 = vst.msk [vmem:[#allocation3 + $0xb0] sm:$0xff] %vm1052_vm6, %v1001_v58  ;;  %v1089_v58 = vrot.slane %v5232_v2, 1 }
 0x1b4   : > { %1151 = vrot.lane.b32.xlu0 %v5221_v47, %s4119_s10 }
 0x1b5   : > { %1141 = vrot.lane.b32.xlu1 %v7540_v17, %s4119_s10 }
 0x1b6   : > { %v997_v59 = vpop.permute.xlu0 %996 }
 0x1b7   : > { %v987_v40 = vpop.permute.xlu1 %986  ;;  %1073 = vst.msk [vmem:[#allocation3 + $0xa0] sm:$0xff] %vm1052_vm6, %v997_v59  ;;  %1143 = vrot.lane.b32.xlu2 %v7541_v18, %s4119_s10 }
 0x1b8   : > { %1068 = vst.msk [vmem:[#allocation3 + $0x78] sm:$0xff] %vm1052_vm6, %v987_v40  ;;  %v5242_v40 = vsel %vm534_vm1, %v1087_v43, %v1089_v58 }
 0x1b9   : > { %v1007_v17 = vpop.permute.xlu2 %1006 }
 0x1ba   : > { %1078 = vst.msk [vmem:[#allocation3 + $0xc8] sm:$0xff] %vm1052_vm6, %v1007_v17 }
 0x1bc   : > { %1227 = vrot.lane.b32.xlu0 %v4838_v6, %s4120_s11  ;;  %v7543_v6 = vld [vmem:[#allocation59_spill] sm:$0xff] }
 0x1bd   : > { %1147 = vrot.lane.b32.xlu1 %v7542_v25, %s4119_s10 }
 0x1be   : > { %v1003_v59 = vpop.permute.xlu0 %1002 }
 0x1bf   : > { %v993_v31 = vpop.permute.xlu1 %992  ;;  %1076 = vst.msk [vmem:[#allocation3 + $0xb8] sm:$0xff] %vm1052_vm6, %v1003_v59  ;;  %1149 = vrot.lane.b32.xlu2 %v4805_v63, %s4119_s10 }
 0x1c0   : > { %1071 = vst.msk [vmem:[#allocation3 + $0x90] sm:$0xff] %vm1052_vm6, %v993_v31 }
 0x1c1   : > { %v1013_v17 = vpop.permute.xlu2 %1012 }
 0x1c2   : > { %1081 = vst.msk [vmem:[#allocation3 + $0xe0] sm:$0xff] %vm1052_vm6, %v1013_v17 }
 0x1c4   : > { %1233 = vrot.lane.b32.xlu0 %v4860_v45, %s4120_s11 }
 0x1c5   : > { %1153 = vrot.lane.b32.xlu1 %v5242_v40, %s4119_s10 }
 0x1c6   : > { %v1009_v31 = vpop.permute.xlu0 %1008 }
 0x1c7   : > { %v999_v47 = vpop.permute.xlu1 %998  ;;  %1079 = vst.msk [vmem:[#allocation3 + $0xd0] sm:$0xff] %vm1052_vm6, %v1009_v31  ;;  %1225 = vrot.lane.b32.xlu2 %v4823_v22, %s4120_s11  ;;  %v7544_v22 = vld [vmem:[#allocation60_spill] sm:$0xff] }
 0x1c8   : > { %1074 = vst.msk [vmem:[#allocation3 + $0xa8] sm:$0xff] %vm1052_vm6, %v999_v47 }
 0x1c9   : > { %v1019_v43 = vpop.permute.xlu2 %1018 }
 0x1ca   : > { %1084 = vst.msk [vmem:[#allocation3 + $0xf8] sm:$0xff] %vm1052_vm6, %v1019_v43  ;;  %v7545_v43 = vld [vmem:[#allocation62_spill] sm:$0xff] }
 0x1cc   : > { %1239 = vrot.lane.b32.xlu0 %v4880_v62, %s4120_s11 }
 0x1cd   : > { %1229 = vrot.lane.b32.xlu1 %v7543_v6, %s4120_s11 }
 0x1ce   : > { %v1015_v59 = vpop.permute.xlu0 %1014 }
 0x1cf   : > { %v1005_v58 = vpop.permute.xlu1 %1004  ;;  %1082 = vst.msk [vmem:[#allocation3 + $0xe8] sm:$0xff] %vm1052_vm6, %v1015_v59  ;;  %1231 = vrot.lane.b32.xlu2 %v4841_v46, %s4120_s11 }
 0x1d0   : > { %1077 = vst.msk [vmem:[#allocation3 + $0xc0] sm:$0xff] %vm1052_vm6, %v1005_v58  ;;  %v7546_v58 = vld [vmem:[#allocation61_spill] sm:$0xff] }
 0x1d1   : > { %v1096_v47 = vpop.permute.xlu2 %1095 }
 0x1d2   : > { %1190 = vst.msk [vmem:[#allocation3 + $0x10] sm:$0xff] %vm1187_vm7, %v1096_v47 }
 0x1d4   : > { %1245 = vrot.lane.b32.xlu0 %v4902_v30, %s4120_s11 }
 0x1d5   : > { %1235 = vrot.lane.b32.xlu1 %v7544_v22, %s4120_s11 }
 0x1d6   : > { %v1092_v31 = vpop.permute.xlu0 %1091 }
 0x1d7   : > { %v1011_v17 = vpop.permute.xlu1 %1010  ;;  %1188 = vst.msk [vmem:[#allocation3] sm:$0xff] %vm1187_vm7, %v1092_v31  ;;  %1237 = vrot.lane.b32.xlu2 %v7545_v43, %s4120_s11  ;;  %v7548_v31 = vld [vmem:[#allocation63_spill] sm:$0xff] }
 0x1d8   : > { %1080 = vst.msk [vmem:[#allocation3 + $0xd8] sm:$0xff] %vm1052_vm6, %v1011_v17  ;;  %v7547_v17 = vld [vmem:[#allocation65_spill] sm:$0xff] }
 0x1d9   : > { %v1102_v59 = vpop.permute.xlu2 %1101 }
 0x1da   : > { %1193 = vst.msk [vmem:[#allocation3 + $0x28] sm:$0xff] %vm1187_vm7, %v1102_v59 }
 0x1dc   : > { %1251 = vrot.lane.b32.xlu0 %v4924_v4, %s4120_s11 }
 0x1dd   : > { %1241 = vrot.lane.b32.xlu1 %v7546_v58, %s4120_s11 }
 0x1de   : > { %v1098_v47 = vpop.permute.xlu0 %1097 }
 0x1df   : > { %v1017_v62 = vpop.permute.xlu1 %1016  ;;  %1191 = vst.msk [vmem:[#allocation3 + $0x18] sm:$0xff] %vm1187_vm7, %v1098_v47  ;;  %1243 = vrot.lane.b32.xlu2 %v7547_v17, %s4120_s11 }
 0x1e0   : > { %1083 = vst.msk [vmem:[#allocation3 + $0xf0] sm:$0xff] %vm1052_vm6, %v1017_v62  ;;  %v7549_v62 = vld [vmem:[#allocation66_spill] sm:$0xff] }
 0x1e1   : > { %v1108_v30 = vpop.permute.xlu2 %1107 }
 0x1e2   : > { %1196 = vst.msk [vmem:[#allocation3 + $0x40] sm:$0xff] %vm1187_vm7, %v1108_v30 }
 0x1e4   : > { %1257 = vrot.lane.b32.xlu0 %v4947_v37, %s4120_s11 }
 0x1e5   : > { %1247 = vrot.lane.b32.xlu1 %v7548_v31, %s4120_s11 }
 0x1e6   : > { %v1104_v59 = vpop.permute.xlu0 %1103 }
 0x1e7   : > { %v1094_v58 = vpop.permute.xlu1 %1093  ;;  %1194 = vst.msk [vmem:[#allocation3 + $0x30] sm:$0xff] %vm1187_vm7, %v1104_v59  ;;  %1249 = vrot.lane.b32.xlu2 %v4905_v1, %s4120_s11  ;;  %v7551_v59 = vld [vmem:[#allocation68_spill] sm:$0xff] }
 0x1e8   : > { %1189 = vst.msk [vmem:[#allocation3 + $0x8] sm:$0xff] %vm1187_vm7, %v1094_v58  ;;  %v7550_v58 = vld [vmem:[#allocation70_spill] sm:$0xff] }
 0x1e9   : > { %v1114_v47 = vpop.permute.xlu2 %1113 }
 0x1ea   : > { %1199 = vst.msk [vmem:[#allocation3 + $0x58] sm:$0xff] %vm1187_vm7, %v1114_v47 }
 0x1ec   : > { %1263 = vrot.lane.b32.xlu0 %v4969_v56, %s4120_s11 }
 0x1ed   : > { %1253 = vrot.lane.b32.xlu1 %v7549_v62, %s4120_s11 }
 0x1ee   : > { %v1110_v30 = vpop.permute.xlu0 %1109 }
 0x1ef   : > { %v1100_v4 = vpop.permute.xlu1 %1099  ;;  %1197 = vst.msk [vmem:[#allocation3 + $0x48] sm:$0xff] %vm1187_vm7, %v1110_v30  ;;  %1255 = vrot.lane.b32.xlu2 %v7550_v58, %s4120_s11 }
 0x1f0   : > { %1192 = vst.msk [vmem:[#allocation3 + $0x20] sm:$0xff] %vm1187_vm7, %v1100_v4  ;;  %v7552_v4 = vld [vmem:[#allocation71_spill] sm:$0xff] }
 0x1f1   : > { %v1120_v37 = vpop.permute.xlu2 %1119 }
 0x1f2   : > { %1202 = vst.msk [vmem:[#allocation3 + $0x70] sm:$0xff] %vm1187_vm7, %v1120_v37 }
 0x1f4   : > { %1269 = vrot.lane.b32.xlu0 %v4992_v29, %s4120_s11 }
 0x1f5   : > { %1259 = vrot.lane.b32.xlu1 %v7551_v59, %s4120_s11 }
 0x1f6   : > { %v1116_v47 = vpop.permute.xlu0 %1115 }
 0x1f7   : > { %v1106_v62 = vpop.permute.xlu1 %1105  ;;  %1200 = vst.msk [vmem:[#allocation3 + $0x60] sm:$0xff] %vm1187_vm7, %v1116_v47  ;;  %1261 = vrot.lane.b32.xlu2 %v4950_v35, %s4120_s11  ;;  %v7554_v47 = vld [vmem:[#allocation73_spill] sm:$0xff] }
 0x1f8   : > { %1195 = vst.msk [vmem:[#allocation3 + $0x38] sm:$0xff] %vm1187_vm7, %v1106_v62  ;;  %v7553_v62 = vld [vmem:[#allocation75_spill] sm:$0xff] }
 0x1f9   : > { %v1126_v30 = vpop.permute.xlu2 %1125 }
 0x1fa   : > { %1205 = vst.msk [vmem:[#allocation3 + $0x88] sm:$0xff] %vm1187_vm7, %v1126_v30  ;;  %v1223_v30 = vrot.slane %v5232_v2, 2 }
 0x1fc   : > { %1275 = vrot.lane.b32.xlu0 %v5012_v51, %s4120_s11 }
 0x1fd   : > { %1265 = vrot.lane.b32.xlu1 %v7552_v4, %s4120_s11 }
 0x1fe   : > { %v1122_v37 = vpop.permute.xlu0 %1121 }
 0x1ff   : > { %v1112_v56 = vpop.permute.xlu1 %1111  ;;  %1203 = vst.msk [vmem:[#allocation3 + $0x78] sm:$0xff] %vm1187_vm7, %v1122_v37  ;;  %1267 = vrot.lane.b32.xlu2 %v7553_v62, %s4120_s11 }
 0x200   : > { %1198 = vst.msk [vmem:[#allocation3 + $0x50] sm:$0xff] %vm1187_vm7, %v1112_v56  ;;  %v1221_v56 = vrot.slane %v5141_v26, 2 }
 0x201   : > { %v1132_v29 = vpop.permute.xlu2 %1131 }
 0x202   : > { %1208 = vst.msk [vmem:[#allocation3 + $0xa0] sm:$0xff] %vm1187_vm7, %v1132_v29  ;;  %v5331_v51 = vsel %vm744_vm3, %v1221_v56, %v1223_v30  ;;  %v1220_v30 = vrot.slane %v5130_v15, 2 }
 0x203   : > { %7555 = vst [vmem:[#allocation22_spill] sm:$0xff] %v5331_v51 }
 0x204   : > { %1281 = vrot.lane.b32.xlu0 %v5028_v42, %s4120_s11 }
 0x205   : > { %1271 = vrot.lane.b32.xlu1 %v7554_v47, %s4120_s11 }
 0x206   : > { %v1128_v37 = vpop.permute.xlu0 %1127 }
 0x207   : > { %v1118_v4 = vpop.permute.xlu1 %1117  ;;  %1206 = vst.msk [vmem:[#allocation3 + $0x90] sm:$0xff] %vm1187_vm7, %v1128_v37  ;;  %1273 = vrot.lane.b32.xlu2 %v4995_v20, %s4120_s11 }
 0x208   : > { %1201 = vst.msk [vmem:[#allocation3 + $0x68] sm:$0xff] %vm1187_vm7, %v1118_v4 }
 0x209   : > { %v1138_v29 = vpop.permute.xlu2 %1137 }
 0x20a   : > { %1211 = vst.msk [vmem:[#allocation3 + $0xb8] sm:$0xff] %vm1187_vm7, %v1138_v29 }
 0x20c   : > { %1287 = vrot.lane.b32.xlu0 %v5331_v51, %s4120_s11 }
 0x20d   : > { %1277 = vrot.lane.b32.xlu1 %v4978_v38, %s4120_s11 }
 0x20e   : > { %v1134_v2 = vpop.permute.xlu0 %1133 }
 0x20f   : > { %v1124_v4 = vpop.permute.xlu1 %1123  ;;  %1209 = vst.msk [vmem:[#allocation3 + $0xa8] sm:$0xff] %vm1187_vm7, %v1134_v2  ;;  %1279 = vrot.lane.b32.xlu2 %v5015_v9, %s4120_s11 }
 0x210   : > { %1204 = vst.msk [vmem:[#allocation3 + $0x80] sm:$0xff] %vm1187_vm7, %v1124_v4  ;;  %v5350_v4 = vsel %vm744_vm3, %v1220_v30, %v1221_v56 }
 0x211   : > { %v1144_v37 = vpop.permute.xlu2 %1143 }
 0x212   : > { %1214 = vst.msk [vmem:[#allocation3 + $0xd0] sm:$0xff] %vm1187_vm7, %v1144_v37 }
 0x214   : > { %1360 = vrot.lane.b32.xlu0 %v4359_v21, %s4121_s12 }
 0x215   : > { %1283 = vrot.lane.b32.xlu1 %v5001_v0, %s4120_s11 }
 0x216   : > { %v1140_v2 = vpop.permute.xlu0 %1139 }
 0x217   : > { %v1130_v29 = vpop.permute.xlu1 %1129  ;;  %1212 = vst.msk [vmem:[#allocation3 + $0xc0] sm:$0xff] %vm1187_vm7, %v1140_v2  ;;  %1285 = vrot.lane.b32.xlu2 %v5350_v4, %s4120_s11  ;;  %v7556_v2 = vld [vmem:[#allocation28_spill] sm:$0xff] }
 0x218   : > { %1207 = vst.msk [vmem:[#allocation3 + $0x98] sm:$0xff] %vm1187_vm7, %v1130_v29 }
 0x219   : > { %v1150_v37 = vpop.permute.xlu2 %1149 }
 0x21a   : > { %1217 = vst.msk [vmem:[#allocation3 + $0xe8] sm:$0xff] %vm1187_vm7, %v1150_v37 }
 0x21c   : > { %1366 = vrot.lane.b32.xlu0 %v4379_v28, %s4121_s12 }
 0x21d   : > { %1356 = vrot.lane.b32.xlu1 %v4391_v32, %s4121_s12 }
 0x21e   : > { %v1146_v21 = vpop.permute.xlu0 %1145 }
 0x21f   : > { %v1136_v51 = vpop.permute.xlu1 %1135  ;;  %1215 = vst.msk [vmem:[#allocation3 + $0xd8] sm:$0xff] %vm1187_vm7, %v1146_v21  ;;  %1358 = vrot.lane.b32.xlu2 %v4398_v34, %s4121_s12  ;;  %v7557_v21 = vld [vmem:[#allocation37_spill] sm:$0xff] }
 0x220   : > { %1210 = vst.msk [vmem:[#allocation3 + $0xb0] sm:$0xff] %vm1187_vm7, %v1136_v51 }
 0x221   : > { %v1226_v32 = vpop.permute.xlu2 %1225 }
 0x222   : > { %1322 = vst.msk [vmem:[#allocation3] sm:$0xff] %vm1321_vm8, %v1226_v32  ;;  %v7558_v32 = vld [vmem:[#allocation19_spill] sm:$0xff] }
 0x224   : > { %1372 = vrot.lane.b32.xlu0 %v4441_v48, %s4121_s12 }
 0x225   : > { %1362 = vrot.lane.b32.xlu1 %v4364_v23, %s4121_s12 }
 0x226   : > { %v1152_v28 = vpop.permute.xlu0 %1151 }
 0x227   : > { %v1142_v56 = vpop.permute.xlu1 %1141  ;;  %1218 = vst.msk [vmem:[#allocation3 + $0xf0] sm:$0xff] %vm1187_vm7, %v1152_v28  ;;  %1364 = vrot.lane.b32.xlu2 %v4456_v52, %s4121_s12 }
 0x228   : > { %1213 = vst.msk [vmem:[#allocation3 + $0xc8] sm:$0xff] %vm1187_vm7, %v1142_v56 }
 0x229   : > { %v1232_v34 = vpop.permute.xlu2 %1231 }
 0x22a   : > { %1325 = vst.msk [vmem:[#allocation3 + $0x18] sm:$0xff] %vm1321_vm8, %v1232_v34  ;;  %v7560_v34 = vld [vmem:[#allocation43_spill] sm:$0xff] }
 0x22c   : > { %1378 = vrot.lane.b32.xlu0 %v4503_v3, %s4121_s12 }
 0x22d   : > { %1368 = vrot.lane.b32.xlu1 %v4473_v57, %s4121_s12 }
 0x22e   : > { %v1228_v48 = vpop.permute.xlu0 %1227 }
 0x22f   : > { %v1148_v23 = vpop.permute.xlu1 %1147  ;;  %1323 = vst.msk [vmem:[#allocation3 + $0x8] sm:$0xff] %vm1321_vm8, %v1228_v48  ;;  %1370 = vrot.lane.b32.xlu2 %v4481_v60, %s4121_s12  ;;  %v7561_v48 = vld [vmem:[#allocation24_spill] sm:$0xff] }
 0x230   : > { %1216 = vst.msk [vmem:[#allocation3 + $0xe0] sm:$0xff] %vm1187_vm7, %v1148_v23 }
 0x231   : > { %v1238_v52 = vpop.permute.xlu2 %1237 }
 0x232   : > { %1328 = vst.msk [vmem:[#allocation3 + $0x30] sm:$0xff] %vm1321_vm8, %v1238_v52  ;;  %v7562_v52 = vld [vmem:[#allocation41_spill] sm:$0xff] }
 0x234   : > { %1384 = vrot.lane.b32.xlu0 %v4518_v19, %s4121_s12 }
 0x235   : > { %1374 = vrot.lane.b32.xlu1 %v4462_v53, %s4121_s12 }
 0x236   : > { %v1234_v3 = vpop.permute.xlu0 %1233 }
 0x237   : > { %v1154_v57 = vpop.permute.xlu1 %1153  ;;  %1326 = vst.msk [vmem:[#allocation3 + $0x20] sm:$0xff] %vm1321_vm8, %v1234_v3  ;;  %1376 = vrot.lane.b32.xlu2 %v4541_v39, %s4121_s12 }
 0x238   : > { %1219 = vst.msk [vmem:[#allocation3 + $0xf8] sm:$0xff] %vm1187_vm7, %v1154_v57 }
 0x239   : > { %v1244_v60 = vpop.permute.xlu2 %1243 }
 0x23a   : > { %1331 = vst.msk [vmem:[#allocation3 + $0x48] sm:$0xff] %vm1321_vm8, %v1244_v60  ;;  %v7563_v60 = vld [vmem:[#allocation48_spill] sm:$0xff] }
 0x23c   : > { %1390 = vrot.lane.b32.xlu0 %v4591_v36, %s4121_s12 }
 0x23d   : > { %1380 = vrot.lane.b32.xlu1 %v4560_v5, %s4121_s12 }
 0x23e   : > { %v1240_v19 = vpop.permute.xlu0 %1239 }
 0x23f   : > { %v1230_v53 = vpop.permute.xlu1 %1229  ;;  %1329 = vst.msk [vmem:[#allocation3 + $0x38] sm:$0xff] %vm1321_vm8, %v1240_v19  ;;  %1382 = vrot.lane.b32.xlu2 %v4570_v61, %s4121_s12  ;;  %v7564_v19 = vld [vmem:[#allocation31_spill] sm:$0xff] }
 0x240   : > { %1324 = vst.msk [vmem:[#allocation3 + $0x10] sm:$0xff] %vm1321_vm8, %v1230_v53 }
 0x241   : > { %v1250_v39 = vpop.permute.xlu2 %1249 }
 0x242   : > { %1334 = vst.msk [vmem:[#allocation3 + $0x60] sm:$0xff] %vm1321_vm8, %v1250_v39 }
 0x244   : > { %1396 = vrot.lane.b32.xlu0 %v4620_v27, %s4121_s12 }
 0x245   : > { %1386 = vrot.lane.b32.xlu1 %v4547_v49, %s4121_s12 }
 0x246   : > { %v1246_v36 = vpop.permute.xlu0 %1245 }
 0x247   : > { %v1236_v5 = vpop.permute.xlu1 %1235  ;;  %1332 = vst.msk [vmem:[#allocation3 + $0x50] sm:$0xff] %vm1321_vm8, %v1246_v36  ;;  %1388 = vrot.lane.b32.xlu2 %v4628_v12, %s4121_s12  ;;  %v7565_v36 = vld [vmem:[#allocation47_spill] sm:$0xff] }
 0x248   : > { %1327 = vst.msk [vmem:[#allocation3 + $0x28] sm:$0xff] %vm1321_vm8, %v1236_v5 }
 0x249   : > { %v1256_v61 = vpop.permute.xlu2 %1255 }
 0x24a   : > { %1337 = vst.msk [vmem:[#allocation3 + $0x78] sm:$0xff] %vm1321_vm8, %v1256_v61 }
 0x24c   : > { %1402 = vrot.lane.b32.xlu0 %v4675_v50, %s4121_s12 }
 0x24d   : > { %1392 = vrot.lane.b32.xlu1 %v4646_v16, %s4121_s12 }
 0x24e   : > { %v1252_v27 = vpop.permute.xlu0 %1251 }
 0x24f   : > { %v1242_v49 = vpop.permute.xlu1 %1241  ;;  %1335 = vst.msk [vmem:[#allocation3 + $0x68] sm:$0xff] %vm1321_vm8, %v1252_v27  ;;  %1394 = vrot.lane.b32.xlu2 %v4658_v10, %s4121_s12  ;;  %v7566_v27 = vld [vmem:[#allocation51_spill] sm:$0xff] }
 0x250   : > { %1330 = vst.msk [vmem:[#allocation3 + $0x40] sm:$0xff] %vm1321_vm8, %v1242_v49 }
 0x251   : > { %v1262_v12 = vpop.permute.xlu2 %1261 }
 0x252   : > { %1340 = vst.msk [vmem:[#allocation3 + $0x90] sm:$0xff] %vm1321_vm8, %v1262_v12 }
 0x254   : > { %1408 = vrot.lane.b32.xlu0 %v4702_v54, %s4121_s12 }
 0x255   : > { %1398 = vrot.lane.b32.xlu1 %v4632_v14, %s4121_s12 }
 0x256   : > { %v1258_v50 = vpop.permute.xlu0 %1257 }
 0x257   : > { %v1248_v16 = vpop.permute.xlu1 %1247  ;;  %1338 = vst.msk [vmem:[#allocation3 + $0x80] sm:$0xff] %vm1321_vm8, %v1258_v50  ;;  %1400 = vrot.lane.b32.xlu2 %v4693_v11, %s4121_s12  ;;  %v7567_v50 = vld [vmem:[#allocation39_spill] sm:$0xff] }
 0x258   : > { %1333 = vst.msk [vmem:[#allocation3 + $0x58] sm:$0xff] %vm1321_vm8, %v1248_v16 }
 0x259   : > { %v1268_v10 = vpop.permute.xlu2 %1267 }
 0x25a   : > { %1343 = vst.msk [vmem:[#allocation3 + $0xa8] sm:$0xff] %vm1321_vm8, %v1268_v10  ;;  %v7568_v10 = vld [vmem:[#allocation50_spill] sm:$0xff] }
 0x25c   : > { %1414 = vrot.lane.b32.xlu0 %v5141_v26, %s4121_s12  ;;  %v5442_v26 = vld [vmem:[#allocation2 + $0x198] sm:$0xff] }
 0x25d   : > { %1404 = vrot.lane.b32.xlu1 %v4723_v33, %s4121_s12  ;;  %v1486_v39 = vrot.slane %v5442_v26, 1 }
 0x25e   : > { %v1264_v54 = vpop.permute.xlu0 %1263 }
 0x25f   : > { %v1254_v14 = vpop.permute.xlu1 %1253  ;;  %1341 = vst.msk [vmem:[#allocation3 + $0x98] sm:$0xff] %vm1321_vm8, %v1264_v54  ;;  %1406 = vrot.lane.b32.xlu2 %v4727_v8, %s4121_s12 }
 0x260   : > { %1336 = vst.msk [vmem:[#allocation3 + $0x70] sm:$0xff] %vm1321_vm8, %v1254_v14 }
 0x261   : > { %v1274_v11 = vpop.permute.xlu2 %1273 }
 0x262   : > { %1346 = vst.msk [vmem:[#allocation3 + $0xc0] sm:$0xff] %vm1321_vm8, %v1274_v11  ;;  %v7569_v11 = vld [vmem:[#allocation54_spill] sm:$0xff] }
 0x264   : > { %1491 = vrot.lane.b32.xlu0 %v4425_v44, %s4122_s13  ;;  %v5453_v44 = vld [vmem:[#allocation2 + $0x1a0] sm:$0xff] }
 0x265   : > { %1410 = vrot.lane.b32.xlu1 %v4711_v7, %s4121_s12  ;;  %v1487_v5 = vrot.slane %v5453_v44, 1 }
 0x266   : > { %v1270_v51 = vpop.permute.xlu0 %1269 }
 0x267   : > { %v1260_v33 = vpop.permute.xlu1 %1259  ;;  %1344 = vst.msk [vmem:[#allocation3 + $0xb0] sm:$0xff] %vm1321_vm8, %v1270_v51  ;;  %1412 = vrot.lane.b32.xlu2 %v5130_v15, %s4121_s12  ;;  %v1488_v12 = vsel %vm534_vm1, %v1486_v39, %v1487_v5  ;;  %v7570_v51 = vld [vmem:[#allocation45_spill] sm:$0xff] }
 0x268   : > { %1339 = vst.msk [vmem:[#allocation3 + $0x88] sm:$0xff] %vm1321_vm8, %v1260_v33 }
 0x269   : > { %v1280_v8 = vpop.permute.xlu2 %1279 }
 0x26a   : > { %1349 = vst.msk [vmem:[#allocation3 + $0xd8] sm:$0xff] %vm1321_vm8, %v1280_v8  ;;  %v7571_v8 = vld [vmem:[#allocation53_spill] sm:$0xff] }
 0x26c   : > { %1497 = vrot.lane.b32.xlu0 %v7521_v13, %s4122_s13 }
 0x26d   : > { %1416 = vrot.lane.b32.xlu1 %v5442_v26, %s4121_s12 }
 0x26e   : > { %v1276_v30 = vpop.permute.xlu0 %1275 }
 0x26f   : > { %v1266_v7 = vpop.permute.xlu1 %1265  ;;  %1347 = vst.msk [vmem:[#allocation3 + $0xc8] sm:$0xff] %vm1321_vm8, %v1276_v30  ;;  %1418 = vrot.lane.b32.xlu2 %v5453_v44, %s4121_s12 }
 0x270   : > { %1342 = vst.msk [vmem:[#allocation3 + $0xa0] sm:$0xff] %vm1321_vm8, %v1266_v7 }
 0x271   : > { %v1286_v15 = vpop.permute.xlu2 %1285 }
 0x272   : > { %1352 = vst.msk [vmem:[#allocation3 + $0xf0] sm:$0xff] %vm1321_vm8, %v1286_v15 }
 0x274   : > { %1503 = vrot.lane.b32.xlu0 %v7524_v41, %s4122_s13 }
 0x275   : > { %1493 = vrot.lane.b32.xlu1 %v4466_v55, %s4122_s13 }
 0x276   : > { %v1282_v13 = vpop.permute.xlu0 %1281 }
 0x277   : > { %v1272_v29 = vpop.permute.xlu1 %1271  ;;  %1350 = vst.msk [vmem:[#allocation3 + $0xe0] sm:$0xff] %vm1321_vm8, %v1282_v13  ;;  %1495 = vrot.lane.b32.xlu2 %v7519_v24, %s4122_s13  ;;  %v7559_v24 = vld [vmem:[#allocation34_spill] sm:$0xff]  ;;  %v7573_v13 = vld [vmem:[#allocation56_spill] sm:$0xff] }
 0x278   : > { %1345 = vst.msk [vmem:[#allocation3 + $0xb8] sm:$0xff] %vm1321_vm8, %v1272_v29  ;;  %v7572_v29 = vld [vmem:[#allocation49_spill] sm:$0xff] }
 0x279   : > { %v1359_v55 = vpop.permute.xlu2 %1358 }
 0x27a   : > { %1454 = vst.msk [vmem:[#allocation3 + $0x8] sm:$0xff] %vm1452_vm9, %v1359_v55 }
 0x27c   : > { %1509 = vrot.lane.b32.xlu0 %v7557_v21, %s4122_s13  ;;  %v7575_v21 = vld [vmem:[#allocation58_spill] sm:$0xff] }
 0x27d   : > { %1499 = vrot.lane.b32.xlu1 %v7556_v2, %s4122_s13 }
 0x27e   : > { %v1288_v41 = vpop.permute.xlu0 %1287 }
 0x27f   : > { %v1278_v37 = vpop.permute.xlu1 %1277  ;;  %1353 = vst.msk [vmem:[#allocation3 + $0xf8] sm:$0xff] %vm1321_vm8, %v1288_v41  ;;  %1501 = vrot.lane.b32.xlu2 %v7558_v32, %s4122_s13 }
 0x280   : > { %1348 = vst.msk [vmem:[#allocation3 + $0xd0] sm:$0xff] %vm1321_vm8, %v1278_v37  ;;  %v7574_v37 = vld [vmem:[#allocation52_spill] sm:$0xff] }
 0x281   : > { %v1365_v56 = vpop.permute.xlu2 %1364 }
 0x282   : > { %1457 = vst.msk [vmem:[#allocation3 + $0x20] sm:$0xff] %vm1452_vm9, %v1365_v56  ;;  %v7576_v56 = vld [vmem:[#allocation13_spill] sm:$0xff] }
 0x284   : > { %1515 = vrot.lane.b32.xlu0 %v7560_v34, %s4122_s13 }
 0x285   : > { %1505 = vrot.lane.b32.xlu1 %v7559_v24, %s4122_s13  ;;  %v5541_v24 = vld [vmem:[#allocation2 + $0x1a8] sm:$0x3] }
 0x286   : > { %v1361_v23 = vpop.permute.xlu0 %1360  ;;  %v1489_v34 = vrot.slane %v5541_v24, 1 }
 0x287   : > { %v1284_v28 = vpop.permute.xlu1 %1283  ;;  %1455 = vst.msk [vmem:[#allocation3 + $0x10] sm:$0xff] %vm1452_vm9, %v1361_v23  ;;  %1507 = vrot.lane.b32.xlu2 %v7561_v48, %s4122_s13 }
 0x288   : > { %1351 = vst.msk [vmem:[#allocation3 + $0xe8] sm:$0xff] %vm1321_vm8, %v1284_v28 }
 0x289   : > { %v1371_v57 = vpop.permute.xlu2 %1370 }
 0x28a   : > { %1460 = vst.msk [vmem:[#allocation3 + $0x38] sm:$0xff] %vm1452_vm9, %v1371_v57 }
 0x28c   : > { %1521 = vrot.lane.b32.xlu0 %v7563_v60, %s4122_s13 }
 0x28d   : > { %1511 = vrot.lane.b32.xlu1 %v7562_v52, %s4122_s13 }
 0x28e   : > { %v1367_v53 = vpop.permute.xlu0 %1366 }
 0x28f   : > { %v1357_v3 = vpop.permute.xlu1 %1356  ;;  %1458 = vst.msk [vmem:[#allocation3 + $0x28] sm:$0xff] %vm1452_vm9, %v1367_v53  ;;  %1513 = vrot.lane.b32.xlu2 %v7564_v19, %s4122_s13  ;;  %v7578_v53 = vld [vmem:[#allocation61_spill] sm:$0xff] }
 0x290   : > { %1453 = vst.msk [vmem:[#allocation3] sm:$0xff] %vm1452_vm9, %v1357_v3 }
 0x291   : > { %v1377_v61 = vpop.permute.xlu2 %1376 }
 0x292   : > { %1463 = vst.msk [vmem:[#allocation3 + $0x50] sm:$0xff] %vm1452_vm9, %v1377_v61 }
 0x294   : > { %1527 = vrot.lane.b32.xlu0 %v7566_v27, %s4122_s13 }
 0x295   : > { %1517 = vrot.lane.b32.xlu1 %v7565_v36, %s4122_s13 }
 0x296   : > { %v1373_v16 = vpop.permute.xlu0 %1372 }
 0x297   : > { %v1363_v49 = vpop.permute.xlu1 %1362  ;;  %1461 = vst.msk [vmem:[#allocation3 + $0x40] sm:$0xff] %vm1452_vm9, %v1373_v16  ;;  %1519 = vrot.lane.b32.xlu2 %v7567_v50, %s4122_s13  ;;  %v7583_v16 = vld [vmem:[#allocation74_spill] sm:$0xff] }
 0x298   : > { %1456 = vst.msk [vmem:[#allocation3 + $0x18] sm:$0xff] %vm1452_vm9, %v1363_v49  ;;  %v7581_v49 = vld [vmem:[#allocation66_spill] sm:$0xff] }
 0x299   : > { %v1383_v14 = vpop.permute.xlu2 %1382 }
 0x29a   : > { %1466 = vst.msk [vmem:[#allocation3 + $0x68] sm:$0xff] %vm1452_vm9, %v1383_v14  ;;  %v7584_v14 = vld [vmem:[#allocation71_spill] sm:$0xff] }
 0x29c   : > { %1533 = vrot.lane.b32.xlu0 %v7569_v11, %s4122_s13 }
 0x29d   : > { %1523 = vrot.lane.b32.xlu1 %v7568_v10, %s4122_s13 }
 0x29e   : > { %v1379_v33 = vpop.permute.xlu0 %1378 }
 0x29f   : > { %v1369_v54 = vpop.permute.xlu1 %1368  ;;  %1464 = vst.msk [vmem:[#allocation3 + $0x58] sm:$0xff] %vm1452_vm9, %v1379_v33  ;;  %1525 = vrot.lane.b32.xlu2 %v7570_v51, %s4122_s13  ;;  %v7586_v51 = vld [vmem:[#allocation77_spill] sm:$0xff] }
 0x2a0   : > { %1459 = vst.msk [vmem:[#allocation3 + $0x30] sm:$0xff] %vm1452_vm9, %v1369_v54 }
 0x2a1   : > { %v1389_v7 = vpop.permute.xlu2 %1388 }
 0x2a2   : > { %1469 = vst.msk [vmem:[#allocation3 + $0x80] sm:$0xff] %vm1452_vm9, %v1389_v7 }
 0x2a4   : > { %1539 = vrot.lane.b32.xlu0 %v7541_v18, %s4122_s13 }
 0x2a5   : > { %1529 = vrot.lane.b32.xlu1 %v7571_v8, %s4122_s13 }
 0x2a6   : > { %v1385_v15 = vpop.permute.xlu0 %1384 }
 0x2a7   : > { %v1375_v30 = vpop.permute.xlu1 %1374  ;;  %1467 = vst.msk [vmem:[#allocation3 + $0x70] sm:$0xff] %vm1452_vm9, %v1385_v15  ;;  %1531 = vrot.lane.b32.xlu2 %v7572_v29, %s4122_s13  ;;  %v1788_v15 = vld [vmem:[%s7239_s1 + $0x10] sm:$0xff] }
 0x2a8   : > { %1462 = vst.msk [vmem:[#allocation3 + $0x48] sm:$0xff] %vm1452_vm9, %v1375_v30  ;;  %v1789_v30 = vld [vmem:[%s7239_s1 + $0x18] sm:$0xff] }
 0x2a9   : > { %v1395_v2 = vpop.permute.xlu2 %1394 }
 0x2aa   : > { %1472 = vst.msk [vmem:[#allocation3 + $0x98] sm:$0xff] %vm1452_vm9, %v1395_v2  ;;  %v7587_v2 = vld [vmem:[#allocation22_spill] sm:$0xff] }
 0x2ac   : > { %1545 = vrot.lane.b32.xlu0 %v4805_v63, %s4122_s13 }
 0x2ad   : > { %1535 = vrot.lane.b32.xlu1 %v7573_v13, %s4122_s13 }
 0x2ae   : > { %v1391_v18 = vpop.permute.xlu0 %1390 }
 0x2af   : > { %v1381_v55 = vpop.permute.xlu1 %1380  ;;  %1470 = vst.msk [vmem:[#allocation3 + $0x88] sm:$0xff] %vm1452_vm9, %v1391_v18  ;;  %1537 = vrot.lane.b32.xlu2 %v7574_v37, %s4122_s13 }
 0x2b0   : > { %1465 = vst.msk [vmem:[#allocation3 + $0x60] sm:$0xff] %vm1452_vm9, %v1381_v55 }
 0x2b1   : > { %v1401_v41 = vpop.permute.xlu2 %1400 }
 0x2b2   : > { %1475 = vst.msk [vmem:[#allocation3 + $0xb0] sm:$0xff] %vm1452_vm9, %v1401_v41 }
 0x2b4   : > { %1551 = vrot.lane.b32.xlu0 %v1488_v12, %s4122_s13 }
 0x2b5   : > { %1541 = vrot.lane.b32.xlu1 %v7575_v21, %s4122_s13 }
 0x2b6   : > { %v1397_v63 = vpop.permute.xlu0 %1396 }
 0x2b7   : > { %v1387_v32 = vpop.permute.xlu1 %1386  ;;  %1473 = vst.msk [vmem:[#allocation3 + $0xa0] sm:$0xff] %vm1452_vm9, %v1397_v63  ;;  %1543 = vrot.lane.b32.xlu2 %v7542_v25, %s4122_s13  ;;  %v1490_v25 = vsel %vm534_vm1, %v1487_v5, %v1489_v34  ;;  %v7580_v5 = vld [vmem:[#allocation69_spill] sm:$0xff] }
 0x2b8   : > { %1468 = vst.msk [vmem:[#allocation3 + $0x78] sm:$0xff] %vm1452_vm9, %v1387_v32 }
 0x2b9   : > { %v1407_v28 = vpop.permute.xlu2 %1406 }
 0x2ba   : > { %1478 = vst.msk [vmem:[#allocation3 + $0xc8] sm:$0xff] %vm1452_vm9, %v1407_v28 }
 0x2bc   : > { %1627 = vrot.lane.b32.xlu0 %v4841_v46, %s4123_s14 }
 0x2bd   : > { %1547 = vrot.lane.b32.xlu1 %v7576_v56, %s4122_s13 }
 0x2be   : > { %v1403_v48 = vpop.permute.xlu0 %1402 }
 0x2bf   : > { %v1393_v23 = vpop.permute.xlu1 %1392  ;;  %1476 = vst.msk [vmem:[#allocation3 + $0xb8] sm:$0xff] %vm1452_vm9, %v1403_v48  ;;  %1549 = vrot.lane.b32.xlu2 %v5242_v40, %s4122_s13 }
 0x2c0   : > { %1471 = vst.msk [vmem:[#allocation3 + $0x90] sm:$0xff] %vm1452_vm9, %v1393_v23 }
 0x2c1   : > { %v1413_v52 = vpop.permute.xlu2 %1412 }
 0x2c2   : > { %1481 = vst.msk [vmem:[#allocation3 + $0xe0] sm:$0xff] %vm1452_vm9, %v1413_v52 }
 0x2c4   : > { %1633 = vrot.lane.b32.xlu0 %v7545_v43, %s4123_s14 }
 0x2c5   : > { %1553 = vrot.lane.b32.xlu1 %v1490_v25, %s4122_s13 }
 0x2c6   : > { %v1409_v46 = vpop.permute.xlu0 %1408 }
 0x2c7   : > { %v1399_v57 = vpop.permute.xlu1 %1398  ;;  %1479 = vst.msk [vmem:[#allocation3 + $0xd0] sm:$0xff] %vm1452_vm9, %v1409_v46  ;;  %1625 = vrot.lane.b32.xlu2 %v7543_v6, %s4123_s14  ;;  %v7577_v6 = vld [vmem:[#allocation64_spill] sm:$0xff] }
 0x2c8   : > { %1474 = vst.msk [vmem:[#allocation3 + $0xa8] sm:$0xff] %vm1452_vm9, %v1399_v57 }
 0x2c9   : > { %v1419_v40 = vpop.permute.xlu2 %1418 }
 0x2ca   : > { %1484 = vst.msk [vmem:[#allocation3 + $0xf8] sm:$0xff] %vm1452_vm9, %v1419_v40 }
 0x2cc   : > { %1639 = vrot.lane.b32.xlu0 %v7547_v17, %s4123_s14 }
 0x2cd   : > { %1629 = vrot.lane.b32.xlu1 %v4860_v45, %s4123_s14 }
 0x2ce   : > { %v1415_v43 = vpop.permute.xlu0 %1414 }
 0x2cf   : > { %v1405_v3 = vpop.permute.xlu1 %1404  ;;  %1482 = vst.msk [vmem:[#allocation3 + $0xe8] sm:$0xff] %vm1452_vm9, %v1415_v43  ;;  %1631 = vrot.lane.b32.xlu2 %v7544_v22, %s4123_s14  ;;  %v7579_v22 = vld [vmem:[#allocation67_spill] sm:$0xff] }
 0x2d0   : > { %1477 = vst.msk [vmem:[#allocation3 + $0xc0] sm:$0xff] %vm1452_vm9, %v1405_v3 }
 0x2d1   : > { %v1496_v45 = vpop.permute.xlu2 %1495 }
 0x2d2   : > { %1590 = vst.msk [vmem:[#allocation3 + $0x10] sm:$0xff] %vm1587_vm10, %v1496_v45 }
 0x2d4   : > { %1645 = vrot.lane.b32.xlu0 %v4905_v1, %s4123_s14 }
 0x2d5   : > { %1635 = vrot.lane.b32.xlu1 %v7577_v6, %s4123_s14 }
 0x2d6   : > { %v1492_v17 = vpop.permute.xlu0 %1491 }
 0x2d7   : > { %v1411_v60 = vpop.permute.xlu1 %1410  ;;  %1588 = vst.msk [vmem:[#allocation3] sm:$0xff] %vm1587_vm10, %v1492_v17  ;;  %1637 = vrot.lane.b32.xlu2 %v7578_v53, %s4123_s14 }
 0x2d8   : > { %1480 = vst.msk [vmem:[#allocation3 + $0xd8] sm:$0xff] %vm1452_vm9, %v1411_v60 }
 0x2d9   : > { %v1502_v19 = vpop.permute.xlu2 %1501 }
 0x2da   : > { %1593 = vst.msk [vmem:[#allocation3 + $0x28] sm:$0xff] %vm1587_vm10, %v1502_v19 }
 0x2dc   : > { %1651 = vrot.lane.b32.xlu0 %v7550_v58, %s4123_s14 }
 0x2dd   : > { %1641 = vrot.lane.b32.xlu1 %v7579_v22, %s4123_s14 }
 0x2de   : > { %v1498_v1 = vpop.permute.xlu0 %1497 }
 0x2df   : > { %v1417_v39 = vpop.permute.xlu1 %1416  ;;  %1591 = vst.msk [vmem:[#allocation3 + $0x18] sm:$0xff] %vm1587_vm10, %v1498_v1  ;;  %1643 = vrot.lane.b32.xlu2 %v7548_v31, %s4123_s14  ;;  %v7582_v31 = vld [vmem:[#allocation72_spill] sm:$0xff] }
 0x2e0   : > { %1483 = vst.msk [vmem:[#allocation3 + $0xf0] sm:$0xff] %vm1452_vm9, %v1417_v39 }
 0x2e1   : > { %v1508_v36 = vpop.permute.xlu2 %1507 }
 0x2e2   : > { %1596 = vst.msk [vmem:[#allocation3 + $0x40] sm:$0xff] %vm1587_vm10, %v1508_v36 }
 0x2e4   : > { %1657 = vrot.lane.b32.xlu0 %v4950_v35, %s4123_s14 }
 0x2e5   : > { %1647 = vrot.lane.b32.xlu1 %v7580_v5, %s4123_s14 }
 0x2e6   : > { %v1504_v58 = vpop.permute.xlu0 %1503 }
 0x2e7   : > { %v1494_v61 = vpop.permute.xlu1 %1493  ;;  %1594 = vst.msk [vmem:[#allocation3 + $0x30] sm:$0xff] %vm1587_vm10, %v1504_v58  ;;  %1649 = vrot.lane.b32.xlu2 %v7581_v49, %s4123_s14 }
 0x2e8   : > { %1589 = vst.msk [vmem:[#allocation3 + $0x8] sm:$0xff] %vm1587_vm10, %v1494_v61 }
 0x2e9   : > { %v1514_v27 = vpop.permute.xlu2 %1513 }
 0x2ea   : > { %1599 = vst.msk [vmem:[#allocation3 + $0x58] sm:$0xff] %vm1587_vm10, %v1514_v27 }
 0x2ec   : > { %1663 = vrot.lane.b32.xlu0 %v7553_v62, %s4123_s14 }
 0x2ed   : > { %1653 = vrot.lane.b32.xlu1 %v7582_v31, %s4123_s14 }
 0x2ee   : > { %v1510_v35 = vpop.permute.xlu0 %1509 }
 0x2ef   : > { %v1500_v12 = vpop.permute.xlu1 %1499  ;;  %1597 = vst.msk [vmem:[#allocation3 + $0x48] sm:$0xff] %vm1587_vm10, %v1510_v35  ;;  %1655 = vrot.lane.b32.xlu2 %v7551_v59, %s4123_s14  ;;  %v7585_v59 = vld [vmem:[#allocation76_spill] sm:$0xff] }
 0x2f0   : > { %1592 = vst.msk [vmem:[#allocation3 + $0x20] sm:$0xff] %vm1587_vm10, %v1500_v12 }
 0x2f1   : > { %v1520_v50 = vpop.permute.xlu2 %1519 }
 0x2f2   : > { %1602 = vst.msk [vmem:[#allocation3 + $0x70] sm:$0xff] %vm1587_vm10, %v1520_v50 }
 0x2f4   : > { %1669 = vrot.lane.b32.xlu0 %v4995_v20, %s4123_s14 }
 0x2f5   : > { %1659 = vrot.lane.b32.xlu1 %v7583_v16, %s4123_s14 }
 0x2f6   : > { %v1516_v62 = vpop.permute.xlu0 %1515 }
 0x2f7   : > { %v1506_v10 = vpop.permute.xlu1 %1505  ;;  %1600 = vst.msk [vmem:[#allocation3 + $0x60] sm:$0xff] %vm1587_vm10, %v1516_v62  ;;  %1661 = vrot.lane.b32.xlu2 %v7584_v14, %s4123_s14 }
 0x2f8   : > { %1595 = vst.msk [vmem:[#allocation3 + $0x38] sm:$0xff] %vm1587_vm10, %v1506_v10 }
 0x2f9   : > { %v1526_v54 = vpop.permute.xlu2 %1525 }
 0x2fa   : > { %1605 = vst.msk [vmem:[#allocation3 + $0x88] sm:$0xff] %vm1587_vm10, %v1526_v54 }
 0x2fc   : > { %1675 = vrot.lane.b32.xlu0 %v5015_v9, %s4123_s14  ;;  %v1790_v9 = vld [vmem:[%s7239_s1 + $0x20] sm:$0xf] }
 0x2fd   : > { %1665 = vrot.lane.b32.xlu1 %v7585_v59, %s4123_s14  ;;  %4004 = vmatpush.msk.msra.mxu0 %vm1888_vm11, %v1790_v9 }
 0x2fe   : > { %v1522_v20 = vpop.permute.xlu0 %1521  ;;  %4074 = vmatpush.msk.msra.mxu2 %vm1888_vm11, %v1790_v9 }
 0x2ff   : > { %v1512_v11 = vpop.permute.xlu1 %1511  ;;  %1603 = vst.msk [vmem:[#allocation3 + $0x78] sm:$0xff] %vm1587_vm10, %v1522_v20  ;;  %1667 = vrot.lane.b32.xlu2 %v7554_v47, %s4123_s14  ;;  %1904 = vmatpush.msra.mxu0 %v1789_v30 }
 0x300   : > { %1598 = vst.msk [vmem:[#allocation3 + $0x50] sm:$0xff] %vm1587_vm10, %v1512_v11  ;;  %4075 = vmatpush.msra.mxu2 %v1789_v30 }
 0x301   : > { %v1532_v33 = vpop.permute.xlu2 %1531  ;;  %1905 = vmatpush.msra.mxu0 %v1788_v15 }
 0x302   : > { %1608 = vst.msk [vmem:[#allocation3 + $0xa0] sm:$0xff] %vm1587_vm10, %v1532_v33  ;;  %4076 = vmatpush.msra.mxu2 %v1788_v15 }
 0x304   : > { %1681 = vrot.lane.b32.xlu0 %v5350_v4, %s4123_s14 }
 0x305   : > { %1671 = vrot.lane.b32.xlu1 %v7586_v51, %s4123_s14 }
 0x306   : > { %v1528_v7 = vpop.permute.xlu0 %1527 }
 0x307   : > { %v1518_v8 = vpop.permute.xlu1 %1517  ;;  %1606 = vst.msk [vmem:[#allocation3 + $0x90] sm:$0xff] %vm1587_vm10, %v1528_v7  ;;  %1673 = vrot.lane.b32.xlu2 %v4978_v38, %s4123_s14  ;;  %v1787_v38 = vld [vmem:[%s7239_s1 + $0x8] sm:$0xff] }
 0x308   : > { %1601 = vst.msk [vmem:[#allocation3 + $0x68] sm:$0xff] %vm1587_vm10, %v1518_v8  ;;  %1906 = vmatpush.msra.mxu0 %v1787_v38  ;;  %4077 = vmatpush.msra.mxu2 %v1787_v38 }
 0x309   : > { %v1538_v47 = vpop.permute.xlu2 %1537 }
 0x30a   : > { %1611 = vst.msk [vmem:[#allocation3 + $0xb8] sm:$0xff] %vm1587_vm10, %v1538_v47 }
 0x30d   : > { %1677 = vrot.lane.b32.xlu1 %v5028_v42, %s4123_s14  ;;  %v1786_v42 = vld [vmem:[%s7239_s1] sm:$0xff] }
 0x30e   : > { %v1534_v29 = vpop.permute.xlu0 %1533  ;;  %1907 = vmatpush.msra.mxu0 %v1786_v42  ;;  %4078 = vmatpush.msra.mxu2 %v1786_v42 }
 0x30f   : > { %v1524_v4 = vpop.permute.xlu1 %1523  ;;  %1609 = vst.msk [vmem:[#allocation3 + $0xa8] sm:$0xff] %vm1587_vm10, %v1534_v29  ;;  %1679 = vrot.lane.b32.xlu2 %v5001_v0, %s4123_s14 }
 0x310   : > { %1604 = vst.msk [vmem:[#allocation3 + $0x80] sm:$0xff] %vm1587_vm10, %v1524_v4 }
 0x311   : > { %v1544_v13 = vpop.permute.xlu2 %1543 }
 0x312   : > { %1614 = vst.msk [vmem:[#allocation3 + $0xd0] sm:$0xff] %vm1587_vm10, %v1544_v13 }
 0x315   : > { %1683 = vrot.lane.b32.xlu1 %v7587_v2, %s4123_s14  ;;  %v1621_v2 = vrot.slane %v5453_v44, 2 }
 0x316   : > { %v1540_v18 = vpop.permute.xlu0 %1539 }
 0x317   : > { %v1530_v55 = vpop.permute.xlu1 %1529  ;;  %1612 = vst.msk [vmem:[#allocation3 + $0xc0] sm:$0xff] %vm1587_vm10, %v1540_v18  ;;  %v5724_v18 = vld [vmem:[#allocation2 + $0x8] sm:$0xff] }
 0x318   : > { %1607 = vst.msk [vmem:[#allocation3 + $0x98] sm:$0xff] %vm1587_vm10, %v1530_v55  ;;  %v5722_v55 = vld [vmem:[#allocation2] sm:$0xff] }
 0x319   : > { %v1550_v0 = vpop.permute.xlu2 %1549 }
 0x31a   : > { %1617 = vst.msk [vmem:[#allocation3 + $0xe8] sm:$0xff] %vm1587_vm10, %v1550_v0  ;;  %v1623_v0 = vrot.slane %v5541_v24, 2 }
 0x31e   : > { %v1546_v21 = vpop.permute.xlu0 %1545 }
 0x31f   : > { %v1536_v37 = vpop.permute.xlu1 %1535  ;;  %1615 = vst.msk [vmem:[#allocation3 + $0xd8] sm:$0xff] %vm1587_vm10, %v1546_v21  ;;  %v2276_v21 = vrot.slane %v5724_v18, 1 }
 0x320   : > { %1610 = vst.msk [vmem:[#allocation3 + $0xb0] sm:$0xff] %vm1587_vm10, %v1536_v37  ;;  %v2275_v37 = vrot.slane %v5722_v55, 1 }
 0x321   : > { %v1626_v41 = vpop.permute.xlu2 %1625 }
 0x322   : > { %1722 = vst.msk [vmem:[#allocation3] sm:$0xff] %vm1721_vm12, %v1626_v41  ;;  %v2277_v44 = vsel %vm534_vm1, %v2275_v37, %v2276_v21 }
 0x323   : > { %2355 = vrot.lane.b32.xlu1 %v2277_v44, %s4116_s26 }
 0x326   : > { %v1552_v63 = vpop.permute.xlu0 %1551 }
 0x327   : > { %v1542_v32 = vpop.permute.xlu1 %1541  ;;  %1618 = vst.msk [vmem:[#allocation3 + $0xf0] sm:$0xff] %vm1587_vm10, %v1552_v63 }
 0x328   : > { %1613 = vst.msk [vmem:[#allocation3 + $0xc8] sm:$0xff] %vm1587_vm10, %v1542_v32  ;;  %v1624_v32 = vsel %vm744_vm3, %v1621_v2, %v1623_v0 }
 0x329   : > { %v1754_v56 = vld [vmem:[#allocation3] sm:$0xff]  ;;  %v1632_v28 = vpop.permute.xlu2 %1631  ;;  %1687 = vrot.lane.b32.xlu0 %v1624_v32, %s4123_s14 }
 0x32a   : > { %4005 = vmatmul.msk.f32.vlgmr.msra.gmra.mxu0 %vm1791_vm13, %v1754_v56  ;;  %1725 = vst.msk [vmem:[#allocation3 + $0x18] sm:$0xff] %vm1721_vm12, %v1632_v28  ;;  %v5742_v56 = vld [vmem:[%s7240_s2] ss:$0 sm:$0xff]  ;;  %v1620_v28 = vrot.slane %v5442_v26, 2 }
 0x32b   : > { %2195 = vst.msk [vmem:[#allocation3] sm:$0xff] %vm311_vm0, %v5722_v55 }
 0x32e   : > { %v1628_v23 = vpop.permute.xlu0 %1627 }
 0x32f   : > { %v1548_v34 = vpop.permute.xlu1 %1547  ;;  %1723 = vst.msk [vmem:[#allocation3 + $0x8] sm:$0xff] %vm1721_vm12, %v1628_v23 }
 0x330   : > { %1616 = vst.msk [vmem:[#allocation3 + $0xe0] sm:$0xff] %vm1587_vm10, %v1548_v34  ;;  %v5749_v34 = vld [vmem:[%s7241_s3] ss:$0 sm:$0xff] }
 0x331   : > { %v1638_v48 = vpop.permute.xlu2 %1637  ;;  %v1757_v17 = vld [vmem:[#allocation3 + $0x18] sm:$0xff] }
 0x332   : > { %1728 = vst.msk [vmem:[#allocation3 + $0x30] sm:$0xff] %vm1721_vm12, %v1638_v48 }
 0x336   : > { %v1634_v52 = vpop.permute.xlu0 %1633  ;;  %v1755_v57 = vld [vmem:[#allocation3 + $0x8] sm:$0xff] }
 0x337   : > { %v1554_v25 = vpop.permute.xlu1 %1553  ;;  %1726 = vst.msk [vmem:[#allocation3 + $0x20] sm:$0xff] %vm1721_vm12, %v1634_v52  ;;  %4006 = vmatmul.msk.f32.gmra.mxu0 %vm1791_vm13, %v1755_v57  ;;  %v1622_v57 = vsel %vm744_vm3, %v1620_v28, %v1621_v2 }
 0x338   : > { %1619 = vst.msk [vmem:[#allocation3 + $0xf8] sm:$0xff] %vm1587_vm10, %v1554_v25  ;;  %1685 = vrot.lane.b32.xlu2 %v1622_v57, %s4123_s14 }
 0x339   : > { %v1644_v46 = vpop.permute.xlu2 %1643  ;;  %v1760_v35 = vld [vmem:[#allocation3 + $0x30] sm:$0xff]  ;;  %2196 = vst.msk [vmem:[#allocation3 + $0x8] sm:$0xff] %vm311_vm0, %v5724_v18 }
 0x33a   : > { %1731 = vst.msk [vmem:[#allocation3 + $0x48] sm:$0xff] %vm1721_vm12, %v1644_v46 }
 0x33e   : > { %v1640_v3 = vpop.permute.xlu0 %1639  ;;  %v1758_v5 = vld [vmem:[#allocation3 + $0x20] sm:$0xff] }
 0x33f   : > { %v1630_v40 = vpop.permute.xlu1 %1629  ;;  %1729 = vst.msk [vmem:[#allocation3 + $0x38] sm:$0xff] %vm1721_vm12, %v1640_v3 }
 0x340   : > { %1724 = vst.msk [vmem:[#allocation3 + $0x10] sm:$0xff] %vm1721_vm12, %v1630_v40  ;;  %v5758_v40 = vld [vmem:[#allocation2 + $0x10] sm:$0x3] }
 0x341   : > { %v1650_v43 = vpop.permute.xlu2 %1649  ;;  %v1763_v33 = vld [vmem:[#allocation3 + $0x48] sm:$0xff]  ;;  %v2278_v3 = vrot.slane %v5758_v40, 1 }
 0x342   : > { %1734 = vst.msk [vmem:[#allocation3 + $0x60] sm:$0xff] %vm1721_vm12, %v1650_v43 }
 0x346   : > { %v1646_v60 = vpop.permute.xlu0 %1645  ;;  %v1761_v50 = vld [vmem:[#allocation3 + $0x38] sm:$0xff] }
 0x347   : > { %v1636_v6 = vpop.permute.xlu1 %1635  ;;  %v1756_v45 = vld [vmem:[#allocation3 + $0x10] sm:$0xff]  ;;  %1732 = vst.msk [vmem:[#allocation3 + $0x50] sm:$0xff] %vm1721_vm12, %v1646_v60 }
 0x348   : > { %1727 = vst.msk [vmem:[#allocation3 + $0x28] sm:$0xff] %vm1721_vm12, %v1636_v6  ;;  %4007 = vmatmul.msk.f32.gmra.mxu0 %vm1791_vm13, %v1756_v45  ;;  %v2279_v6 = vsel %vm534_vm1, %v2276_v21, %v2278_v3 }
 0x349   : > { %v1656_v53 = vpop.permute.xlu2 %1655  ;;  %v1766_v29 = vld [vmem:[#allocation3 + $0x60] sm:$0xff]  ;;  %2357 = vrot.lane.b32.xlu2 %v2279_v6, %s4116_s26 }
 0x34a   : > { %1737 = vst.msk [vmem:[#allocation3 + $0x78] sm:$0xff] %vm1721_vm12, %v1656_v53 }
 0x34e   : > { %v1652_v19 = vpop.permute.xlu0 %1651  ;;  %v1764_v9 = vld [vmem:[#allocation3 + $0x50] sm:$0xff] }
 0x34f   : > { %v1642_v22 = vpop.permute.xlu1 %1641  ;;  %1735 = vst.msk [vmem:[#allocation3 + $0x68] sm:$0xff] %vm1721_vm12, %v1652_v19  ;;  %v1759_v58 = vld [vmem:[#allocation3 + $0x28] sm:$0xff] }
 0x350   : > { %1730 = vst.msk [vmem:[#allocation3 + $0x40] sm:$0xff] %vm1721_vm12, %v1642_v22  ;;  %4008 = vmatmul.msk.f32.gmra.mxu0 %vm1791_vm13, %v1757_v17 }
 0x351   : > { %v1662_v39 = vpop.permute.xlu2 %1661  ;;  %v1769_v46 = vld [vmem:[#allocation3 + $0x78] sm:$0xff] }
 0x352   : > { %1740 = vst.msk [vmem:[#allocation3 + $0x90] sm:$0xff] %vm1721_vm12, %v1662_v39 }
 0x356   : > { %v1658_v36 = vpop.permute.xlu0 %1657  ;;  %v1767_v13 = vld [vmem:[#allocation3 + $0x68] sm:$0xff] }
 0x357   : > { %v1648_v1 = vpop.permute.xlu1 %1647  ;;  %1738 = vst.msk [vmem:[#allocation3 + $0x80] sm:$0xff] %vm1721_vm12, %v1658_v36  ;;  %v1762_v54 = vld [vmem:[#allocation3 + $0x40] sm:$0xff] }
 0x358   : > { %1733 = vst.msk [vmem:[#allocation3 + $0x58] sm:$0xff] %vm1721_vm12, %v1648_v1  ;;  %4009 = vmatmul.msk.f32.gmra.mxu0 %vm1791_vm13, %v1758_v5 }
 0x359   : > { %v1668_v49 = vpop.permute.xlu2 %1667  ;;  %v1772_v14 = vld [vmem:[#allocation3 + $0x90] sm:$0xff] }
 0x35a   : > { %1743 = vst.msk [vmem:[#allocation3 + $0xa8] sm:$0xff] %vm1721_vm12, %v1668_v49 }
 0x35e   : > { %v1770_v31 = vld [vmem:[#allocation3 + $0x80] sm:$0xff]  ;;  %v1664_v27 = vpop.permute.xlu0 %1663 }
 0x35f   : > { %v1654_v61 = vpop.permute.xlu1 %1653  ;;  %4021 = vmatmul.msk.f32.vlgmr.msra.gmra.mxu2 %vm1791_vm13, %v1770_v31  ;;  %1741 = vst.msk [vmem:[#allocation3 + $0x98] sm:$0xff] %vm1721_vm12, %v1664_v27  ;;  %v1765_v4 = vld [vmem:[#allocation3 + $0x58] sm:$0xff] }
 0x360   : > { %1736 = vst.msk [vmem:[#allocation3 + $0x70] sm:$0xff] %vm1721_vm12, %v1654_v61  ;;  %4010 = vmatmul.msk.f32.gmra.mxu0 %vm1791_vm13, %v1759_v58 }
 0x361   : > { %v1674_v11 = vpop.permute.xlu2 %1673  ;;  %v1775_v47 = vld [vmem:[#allocation3 + $0xa8] sm:$0xff] }
 0x362   : > { %1746 = vst.msk [vmem:[#allocation3 + $0xc0] sm:$0xff] %vm1721_vm12, %v1674_v11 }
 0x366   : > { %v1670_v16 = vpop.permute.xlu0 %1669  ;;  %v1773_v20 = vld [vmem:[#allocation3 + $0x98] sm:$0xff] }
 0x367   : > { %v1660_v12 = vpop.permute.xlu1 %1659  ;;  %1744 = vst.msk [vmem:[#allocation3 + $0xb0] sm:$0xff] %vm1721_vm12, %v1670_v16  ;;  %v1768_v63 = vld [vmem:[#allocation3 + $0x70] sm:$0xff] }
 0x368   : > { %1739 = vst.msk [vmem:[#allocation3 + $0x88] sm:$0xff] %vm1721_vm12, %v1660_v12  ;;  %4011 = vmatmul.msk.f32.gmra.mxu0 %vm1791_vm13, %v1760_v35 }
 0x369   : > { %v1680_v30 = vpop.permute.xlu2 %1679  ;;  %v1778_v41 = vld [vmem:[#allocation3 + $0xc0] sm:$0xff] }
 0x36a   : > { %1749 = vst.msk [vmem:[#allocation3 + $0xd8] sm:$0xff] %vm1721_vm12, %v1680_v30 }
 0x36e   : > { %v1676_v51 = vpop.permute.xlu0 %1675  ;;  %v1776_v15 = vld [vmem:[#allocation3 + $0xb0] sm:$0xff] }
 0x36f   : > { %v1771_v10 = vld [vmem:[#allocation3 + $0x88] sm:$0xff]  ;;  %v1666_v62 = vpop.permute.xlu1 %1665  ;;  %1747 = vst.msk [vmem:[#allocation3 + $0xc8] sm:$0xff] %vm1721_vm12, %v1676_v51 }
 0x370   : > { %4012 = vmatmul.msk.f32.gmra.mxu0 %vm1791_vm13, %v1761_v50  ;;  %4022 = vmatmul.msk.f32.gmra.mxu2 %vm1791_vm13, %v1771_v10  ;;  %1742 = vst.msk [vmem:[#allocation3 + $0xa0] sm:$0xff] %vm1721_vm12, %v1666_v62 }
 0x371   : > { %v1781_v19 = vld [vmem:[#allocation3 + $0xd8] sm:$0xff] }
 0x376   : > { %v1682_v42 = vpop.permute.xlu0 %1681  ;;  %v1779_v25 = vld [vmem:[#allocation3 + $0xc8] sm:$0xff] }
 0x377   : > { %v1672_v59 = vpop.permute.xlu1 %1671  ;;  %v1774_v8 = vld [vmem:[#allocation3 + $0xa0] sm:$0xff]  ;;  %1750 = vst.msk [vmem:[#allocation3 + $0xe0] sm:$0xff] %vm1721_vm12, %v1682_v42 }
 0x378   : > { %4013 = vmatmul.msk.f32.gmra.mxu0 %vm1791_vm13, %v1762_v54  ;;  %4023 = vmatmul.msk.f32.gmra.mxu2 %vm1791_vm13, %v1772_v14  ;;  %1745 = vst.msk [vmem:[#allocation3 + $0xb8] sm:$0xff] %vm1721_vm12, %v1672_v59 }
 0x37e   : > { %v1782_v1 = vld [vmem:[#allocation3 + $0xe0] sm:$0xff] }
 0x37f   : > { %v1678_v7 = vpop.permute.xlu1 %1677  ;;  %v1777_v38 = vld [vmem:[#allocation3 + $0xb8] sm:$0xff] }
 0x380   : > { %4014 = vmatmul.msk.f32.gmra.mxu0 %vm1791_vm13, %v1763_v33  ;;  %4024 = vmatmul.msk.f32.gmra.mxu2 %vm1791_vm13, %v1773_v20  ;;  %1748 = vst.msk [vmem:[#allocation3 + $0xd0] sm:$0xff] %vm1721_vm12, %v1678_v7 }
 0x387   : > { %v1684_v24 = vpop.permute.xlu1 %1683  ;;  %v1780_v43 = vld [vmem:[#allocation3 + $0xd0] sm:$0xff] }
 0x388   : > { %4015 = vmatmul.msk.f32.gmra.mxu0 %vm1791_vm13, %v1764_v9  ;;  %4025 = vmatmul.msk.f32.gmra.mxu2 %vm1791_vm13, %v1774_v8  ;;  %1751 = vst.msk [vmem:[#allocation3 + $0xe8] sm:$0xff] %vm1721_vm12, %v1684_v24 }
 0x38f   : > { %v1783_v10 = vld [vmem:[#allocation3 + $0xe8] sm:$0xff] }
 0x390   : > { %4016 = vmatmul.msk.f32.gmra.mxu0 %vm1791_vm13, %v1765_v4  ;;  %4026 = vmatmul.msk.f32.gmra.mxu2 %vm1791_vm13, %v1775_v47 }
 0x398   : > { %4017 = vmatmul.msk.f32.gmra.mxu0 %vm1791_vm13, %v1766_v29  ;;  %4027 = vmatmul.msk.f32.gmra.mxu2 %vm1791_vm13, %v1776_v15 }
 0x3a0   : > { %4018 = vmatmul.msk.f32.gmra.mxu0 %vm1791_vm13, %v1767_v13  ;;  %4028 = vmatmul.msk.f32.gmra.mxu2 %vm1791_vm13, %v1777_v38 }
 0x3a7   : > { %v1909_v23 = vpop.f32.mrf.mxu0 }
 0x3a8   : > { %4019 = vmatmul.msk.f32.gmra.mxu0 %vm1791_vm13, %v1768_v63  ;;  %4029 = vmatmul.msk.f32.gmra.mxu2 %vm1791_vm13, %v1778_v41  ;;  %v2009_v48 = vmul.f32 %v5742_v56, %v1909_v23 }
 0x3aa   : > { %v2045_v52 = vadd.f32 %v5749_v34, %v2009_v48 }
 0x3ac   : > { %v2077_v26 = vmax.f32 %v2045_v52, 0.0 }
 0x3ae   : > { %2109 = vst.msk [vmem:[#allocation2 + $0x19] sm:$0xff] %vm311_vm0, %v2077_v26 }
 0x3b0   : > { %4020 = vmatmul.msk.f32.gmra.mxu0 %vm1791_vm13, %v1769_v46  ;;  %4030 = vmatmul.msk.f32.gmra.mxu2 %vm1791_vm13, %v1779_v25 }
 0x3b4   : > { %v1912_v45 = vpop.f32.mrf.mxu0 }
 0x3b5   : > { %v2010_v60 = vmul.f32 %v5742_v56, %v1912_v45  ;;  %v5765_v17 = vld [vmem:[#allocation2 + $0x18] sm:$0xff] }
 0x3b6   : > { %2197 = vst.msk [vmem:[#allocation3 + $0x10] sm:$0xff] %vm311_vm0, %v5765_v17  ;;  %v2280_v31 = vrot.slane %v5765_v17, 1 }
 0x3b7   : > { %v2046_v53 = vadd.f32 %v5749_v34, %v2010_v60 }
 0x3b8   : > { %4031 = vmatmul.msk.f32.gmra.mxu2 %vm1791_vm13, %v1780_v43 }
 0x3b9   : > { %v2078_v22 = vmax.f32 %v2046_v53, 0.0 }
 0x3bb   : > { %2110 = vst.msk [vmem:[#allocation2 + $0x21] sm:$0xff] %vm311_vm0, %v2078_v22 }
 0x3c0   : > { %4032 = vmatmul.msk.f32.gmra.mxu2 %vm1791_vm13, %v1781_v19 }
 0x3c2   : > { %v5772_v5 = vld [vmem:[#allocation2 + $0x20] sm:$0xff]  ;;  %v5774_v36 = vld [vmem:[#allocation2 + $0x28] sm:$0x3] }
 0x3c3   : > { %v2281_v58 = vrot.slane %v5772_v5, 1  ;;  %v2283_v49 = vrot.slane %v5774_v36, 1  ;;  %2198 = vst.msk [vmem:[#allocation3 + $0x18] sm:$0xff] %vm311_vm0, %v5772_v5 }
 0x3c5   : > { %v1915_v39 = vpop.f32.mrf.mxu0  ;;  %v5785_v12 = vsel %vm534_vm1, %v2281_v58, %v2283_v49  ;;  %v5788_v35 = vsel %vm534_vm1, %v2280_v31, %v2281_v58 }
 0x3c6   : > { %v2011_v61 = vmul.f32 %v5742_v56, %v1915_v39  ;;  %2361 = vrot.lane.b32.xlu1 %v5785_v12, %s4116_s26  ;;  %2359 = vrot.lane.b32.xlu0 %v5788_v35, %s4116_s26 }
 0x3c8   : > { %v2047_v27 = vadd.f32 %v5749_v34, %v2011_v61  ;;  %4033 = vmatmul.msk.f32.gmra.mxu2 %vm1791_vm13, %v1782_v1 }
 0x3ca   : > { %v2079_v16 = vmax.f32 %v2047_v27, 0.0 }
 0x3cc   : > { %2111 = vst.msk [vmem:[#allocation2 + $0x31] sm:$0xff] %vm311_vm0, %v2079_v16 }
 0x3cd   : > { %v1918_v50 = vpop.f32.mrf.mxu0 }
 0x3ce   : > { %v2012_v62 = vmul.f32 %v5742_v56, %v1918_v50 }
 0x3d0   : > { %v2048_v14 = vadd.f32 %v5749_v34, %v2012_v62  ;;  %4034 = vmatmul.msk.f32.gmra.mxu2 %vm1791_vm13, %v1783_v10 }
 0x3d2   : > { %v2080_v54 = vmax.f32 %v2048_v14, 0.0 }
 0x3d3   : > { %v5798_v59 = vld [vmem:[#allocation2 + $0x30] sm:$0xff] }
 0x3d4   : > { %2112 = vst.msk [vmem:[#allocation2 + $0x39] sm:$0xff] %vm311_vm0, %v2080_v54  ;;  %v2285_v4 = vrot.slane %v5798_v59, 1 }
 0x3d5   : > { %v1921_v11 = vpop.f32.mrf.mxu0  ;;  %2199 = vst.msk [vmem:[#allocation3 + $0x20] sm:$0xff] %vm311_vm0, %v5798_v59 }
 0x3d6   : > { %v2013_v20 = vmul.f32 %v5742_v56, %v1921_v11 }
 0x3d8   : > { %v2049_v33 = vadd.f32 %v5749_v34, %v2013_v20 }
 0x3da   : > { %v2081_v51 = vmax.f32 %v2049_v33, 0.0 }
 0x3db   : > { %v5805_v8 = vld [vmem:[#allocation2 + $0x38] sm:$0xff]  ;;  %v5807_v9 = vld [vmem:[#allocation2 + $0x40] sm:$0x3] }
 0x3dc   : > { %2113 = vst.msk [vmem:[#allocation2 + $0x49] sm:$0xff] %vm311_vm0, %v2081_v51  ;;  %v2286_v7 = vrot.slane %v5805_v8, 1  ;;  %v2288_v47 = vrot.slane %v5807_v9, 1 }
 0x3dd   : > { %v1924_v30 = vpop.f32.mrf.mxu0  ;;  %2200 = vst.msk [vmem:[#allocation3 + $0x28] sm:$0xff] %vm311_vm0, %v5805_v8 }
 0x3de   : > { %v2014_v15 = vmul.f32 %v5742_v56, %v1924_v30  ;;  %v5817_v29 = vsel %vm534_vm1, %v2286_v7, %v2288_v47  ;;  %v5820_v38 = vsel %vm534_vm1, %v2285_v4, %v2286_v7 }
 0x3df   : > { %2365 = vrot.lane.b32.xlu0 %v5817_v29, %s4116_s26  ;;  %2363 = vrot.lane.b32.xlu2 %v5820_v38, %s4116_s26 }
 0x3e0   : > { %v2050_v42 = vadd.f32 %v5749_v34, %v2014_v15 }
 0x3e2   : > { %v2082_v13 = vmax.f32 %v2050_v42, 0.0  ;;  %v1957_v37 = vpop.f32.mrf.mxu2 }
 0x3e3   : > { %v5827_v2 = vld [vmem:[#allocation2 + $0x48] sm:$0xff]  ;;  %v2025_v41 = vmul.f32 %v5742_v56, %v1957_v37 }
 0x3e4   : > { %2114 = vst.msk [vmem:[#allocation2 + $0x51] sm:$0xff] %vm311_vm0, %v2082_v13  ;;  %v2290_v52 = vrot.slane %v5827_v2, 1 }
 0x3e5   : > { %v1927_v0 = vpop.f32.mrf.mxu0  ;;  %2201 = vst.msk [vmem:[#allocation3 + $0x30] sm:$0xff] %vm311_vm0, %v5827_v2  ;;  %v2061_v44 = vadd.f32 %v5749_v34, %v2025_v41 }
 0x3e6   : > { %v2015_v21 = vmul.f32 %v5742_v56, %v1927_v0 }
 0x3e7   : > { %v2093_v24 = vmax.f32 %v2061_v44, 0.0 }
 0x3e8   : > { %v2051_v32 = vadd.f32 %v5749_v34, %v2015_v21 }
 0x3e9   : > { %2125 = vst.msk [vmem:[#allocation2 + $0xd9] sm:$0xff] %vm311_vm0, %v2093_v24 }
 0x3ea   : > { %v2083_v63 = vmax.f32 %v2051_v32, 0.0 }
 0x3eb   : > { %v5836_v28 = vld [vmem:[#allocation2 + $0x50] sm:$0xff]  ;;  %v5838_v23 = vld [vmem:[#allocation2 + $0x58] sm:$0x3] }
 0x3ec   : > { %2115 = vst.msk [vmem:[#allocation2 + $0x61] sm:$0xff] %vm311_vm0, %v2083_v63  ;;  %v2291_v48 = vrot.slane %v5836_v28, 1  ;;  %v2293_v25 = vrot.slane %v5838_v23, 1 }
 0x3ed   : > { %v1930_v57 = vpop.f32.mrf.mxu0  ;;  %2202 = vst.msk [vmem:[#allocation3 + $0x38] sm:$0xff] %vm311_vm0, %v5836_v28 }
 0x3ee   : > { %v2016_v46 = vmul.f32 %v5742_v56, %v1930_v57  ;;  %v5847_v26 = vsel %vm534_vm1, %v2291_v48, %v2293_v25  ;;  %v5852_v3 = vsel %vm534_vm1, %v2290_v52, %v2291_v48  ;;  %v1686_v52 = vpop.permute.xlu2 %1685 }
 0x3ef   : > { %2369 = vrot.lane.b32.xlu2 %v5847_v26, %s4116_s26  ;;  %2367 = vrot.lane.b32.xlu1 %v5852_v3, %s4116_s26  ;;  %1752 = vst.msk [vmem:[#allocation3 + $0xf0] sm:$0xff] %vm1721_vm12, %v1686_v52 }
 0x3f0   : > { %v2052_v43 = vadd.f32 %v5749_v34, %v2016_v46  ;;  %v5863_v22 = vld [vmem:[#allocation2 + $0xd8] sm:$0xff] }
 0x3f1   : > { %2213 = vst.msk [vmem:[#allocation3 + $0x90] sm:$0xff] %vm311_vm0, %v5863_v22 }
 0x3f2   : > { %v2084_v6 = vmax.f32 %v2052_v43, 0.0 }
 0x3f3   : > { %v1960_v45 = vpop.f32.mrf.mxu2  ;;  %v5859_v60 = vld [vmem:[#allocation2 + $0x60] sm:$0xff] }
 0x3f4   : > { %2116 = vst.msk [vmem:[#allocation2 + $0x69] sm:$0xff] %vm311_vm0, %v2084_v6  ;;  %v2026_v53 = vmul.f32 %v5742_v56, %v1960_v45  ;;  %v2295_v14 = vrot.slane %v5859_v60, 1 }
 0x3f5   : > { %v1933_v19 = vpop.f32.mrf.mxu0  ;;  %2203 = vst.msk [vmem:[#allocation3 + $0x40] sm:$0xff] %vm311_vm0, %v5859_v60 }
 0x3f6   : > { %v2062_v39 = vadd.f32 %v5749_v34, %v2026_v53  ;;  %v2017_v1 = vmul.f32 %v5742_v56, %v1933_v19 }
 0x3f8   : > { %v2094_v61 = vmax.f32 %v2062_v39, 0.0  ;;  %v2053_v58 = vadd.f32 %v5749_v34, %v2017_v1 }
 0x3fa   : > { %2126 = vst.msk [vmem:[#allocation2 + $0xe1] sm:$0xff] %vm311_vm0, %v2094_v61  ;;  %v2085_v49 = vmax.f32 %v2053_v58, 0.0 }
 0x3fb   : > { %v1963_v31 = vpop.f32.mrf.mxu2  ;;  %v5873_v27 = vld [vmem:[#allocation2 + $0x68] sm:$0xff]  ;;  %v5875_v16 = vld [vmem:[#allocation2 + $0x70] sm:$0x3] }
 0x3fc   : > { %2117 = vst.msk [vmem:[#allocation2 + $0x79] sm:$0xff] %vm311_vm0, %v2085_v49  ;;  %v2027_v50 = vmul.f32 %v5742_v56, %v1963_v31  ;;  %v2296_v10 = vrot.slane %v5873_v27, 1  ;;  %v2298_v62 = vrot.slane %v5875_v16, 1 }
 0x3fd   : > { %v1936_v54 = vpop.f32.mrf.mxu0  ;;  %2204 = vst.msk [vmem:[#allocation3 + $0x48] sm:$0xff] %vm311_vm0, %v5873_v27 }
 0x3fe   : > { %v2063_v11 = vadd.f32 %v5749_v34, %v2027_v50  ;;  %v2018_v20 = vmul.f32 %v5742_v56, %v1936_v54  ;;  %v5887_v33 = vsel %vm534_vm1, %v2296_v10, %v2298_v62  ;;  %v5890_v51 = vsel %vm534_vm1, %v2295_v14, %v2296_v10  ;;  %v2358_v54 = vpop.permute.xlu2 %2357 }
 0x3ff   : > { %7588 = vst [vmem:[#allocation29_spill] sm:$0xff] %v5887_v33  ;;  %2373 = vrot.lane.b32.xlu1 %v5887_v33, %s4116_s26  ;;  %2371 = vrot.lane.b32.xlu0 %v5890_v51, %s4116_s26 }
 0x400   : > { %v2095_v7 = vmax.f32 %v2063_v11, 0.0  ;;  %v2054_v47 = vadd.f32 %v5749_v34, %v2018_v20  ;;  %2452 = vst.msk [vmem:[#allocation3 + $0x8] sm:$0xff] %vm711_vm4, %v2358_v54 }
 0x401   : > { %v5897_v4 = vld [vmem:[#allocation2 + $0xe0] sm:$0xff] }
 0x402   : > { %2127 = vst.msk [vmem:[#allocation2 + $0xf1] sm:$0xff] %vm311_vm0, %v2095_v7  ;;  %v2086_v30 = vmax.f32 %v2054_v47, 0.0 }
 0x403   : > { %v1966_v15 = vpop.f32.mrf.mxu2  ;;  %v5900_v42 = vld [vmem:[#allocation2 + $0x78] sm:$0xff]  ;;  %2214 = vst.msk [vmem:[#allocation3 + $0x98] sm:$0xff] %vm311_vm0, %v5897_v4 }
 0x404   : > { %2118 = vst.msk [vmem:[#allocation2 + $0x81] sm:$0xff] %vm311_vm0, %v2086_v30  ;;  %v2028_v13 = vmul.f32 %v5742_v56, %v1966_v15  ;;  %v2300_v6 = vrot.slane %v5900_v42, 1  ;;  %v1688_v15 = vpop.permute.xlu0 %1687 }
 0x405   : > { %v1939_v0 = vpop.f32.mrf.mxu0  ;;  %2205 = vst.msk [vmem:[#allocation3 + $0x50] sm:$0xff] %vm311_vm0, %v5900_v42 }
 0x406   : > { %v2064_v37 = vadd.f32 %v5749_v34, %v2028_v13  ;;  %v2019_v21 = vmul.f32 %v5742_v56, %v1939_v0  ;;  %1753 = vst.msk [vmem:[#allocation3 + $0xf8] sm:$0xff] %vm1721_vm12, %v1688_v15 }
 0x408   : > { %v2096_v41 = vmax.f32 %v2064_v37, 0.0  ;;  %v2055_v32 = vadd.f32 %v5749_v34, %v2019_v21 }
 0x409   : > { %v5911_v44 = vld [vmem:[#allocation2 + $0xf0] sm:$0xff] }
 0x40a   : > { %2128 = vst.msk [vmem:[#allocation2 + $0xf9] sm:$0xff] %vm311_vm0, %v2096_v41  ;;  %v2087_v63 = vmax.f32 %v2055_v32, 0.0 }
 0x40b   : > { %v1969_v24 = vpop.f32.mrf.mxu2  ;;  %v5914_v48 = vld [vmem:[#allocation2 + $0x80] sm:$0xff]  ;;  %v5916_v25 = vld [vmem:[#allocation2 + $0x88] sm:$0x3]  ;;  %2215 = vst.msk [vmem:[#allocation3 + $0xa0] sm:$0xff] %vm311_vm0, %v5911_v44 }
 0x40c   : > { %2119 = vst.msk [vmem:[#allocation2 + $0x91] sm:$0xff] %vm311_vm0, %v2087_v63  ;;  %v2029_v57 = vmul.f32 %v5742_v56, %v1969_v24  ;;  %v2301_v46 = vrot.slane %v5914_v48, 1  ;;  %v2303_v43 = vrot.slane %v5916_v25, 1 }
 0x40d   : > { %v1942_v45 = vpop.f32.mrf.mxu0  ;;  %2206 = vst.msk [vmem:[#allocation3 + $0x58] sm:$0xff] %vm311_vm0, %v5914_v48 }
 0x40e   : > { %v2065_v53 = vadd.f32 %v5749_v34, %v2029_v57  ;;  %v2020_v19 = vmul.f32 %v5742_v56, %v1942_v45  ;;  %v5930_v39 = vsel %vm534_vm1, %v2301_v46, %v2303_v43  ;;  %v5933_v1 = vsel %vm534_vm1, %v2300_v6, %v2301_v46  ;;  %v2356_v57 = vpop.permute.xlu1 %2355 }
 0x40f   : > { %7589 = vst [vmem:[#allocation57_spill] sm:$0xff] %v5930_v39  ;;  %2377 = vrot.lane.b32.xlu0 %v5930_v39, %s4116_s26  ;;  %2375 = vrot.lane.b32.xlu2 %v5933_v1, %s4116_s26 }
 0x410   : > { %7590 = vst [vmem:[#allocation55_spill] sm:$0xff] %v5933_v1  ;;  %v2097_v61 = vmax.f32 %v2065_v53, 0.0  ;;  %v2056_v58 = vadd.f32 %v5749_v34, %v2020_v19 }
 0x411   : > { %v5941_v49 = vld [vmem:[#allocation2 + $0xf8] sm:$0xff]  ;;  %2451 = vst.msk [vmem:[#allocation3] sm:$0xff] %vm711_vm4, %v2356_v57 }
 0x412   : > { %2129 = vst.msk [vmem:[#allocation2 + $0x109] sm:$0xff] %vm311_vm0, %v2097_v61  ;;  %v2088_v31 = vmax.f32 %v2056_v58, 0.0 }
 0x413   : > { %v1972_v50 = vpop.f32.mrf.mxu2  ;;  %v5944_v10 = vld [vmem:[#allocation2 + $0x90] sm:$0xff]  ;;  %2216 = vst.msk [vmem:[#allocation3 + $0xa8] sm:$0xff] %vm311_vm0, %v5941_v49 }
 0x414   : > { %7591 = vst [vmem:[#allocation59_spill] sm:$0xff] %v5944_v10  ;;  %v2030_v62 = vmul.f32 %v5742_v56, %v1972_v50  ;;  %v2305_v63 = vrot.slane %v5944_v10, 1 }
 0x415   : > { %2120 = vst.msk [vmem:[#allocation2 + $0x99] sm:$0xff] %vm311_vm0, %v2088_v31  ;;  %v1945_v14 = vpop.f32.mrf.mxu0 }
 0x416   : > { %2207 = vst.msk [vmem:[#allocation3 + $0x60] sm:$0xff] %vm311_vm0, %v5944_v10  ;;  %v2066_v11 = vadd.f32 %v5749_v34, %v2030_v62  ;;  %v2021_v20 = vmul.f32 %v5742_v56, %v1945_v14 }
 0x418   : > { %v2098_v7 = vmax.f32 %v2066_v11, 0.0  ;;  %v2057_v47 = vadd.f32 %v5749_v34, %v2021_v20 }
 0x419   : > { %v5967_v24 = vld [vmem:[#allocation2 + $0x108] sm:$0xff] }
 0x41a   : > { %2130 = vst.msk [vmem:[#allocation2 + $0x111] sm:$0xff] %vm311_vm0, %v2098_v7  ;;  %v2089_v30 = vmax.f32 %v2057_v47, 0.0 }
 0x41b   : > { %v1975_v13 = vpop.f32.mrf.mxu2  ;;  %2217 = vst.msk [vmem:[#allocation3 + $0xb0] sm:$0xff] %vm311_vm0, %v5967_v24 }
 0x41c   : > { %v5957_v0 = vld [vmem:[#allocation2 + $0x98] sm:$0xff]  ;;  %v5959_v37 = vld [vmem:[#allocation2 + $0xa0] sm:$0x3]  ;;  %2121 = vst.msk [vmem:[#allocation2 + $0xa9] sm:$0xff] %vm311_vm0, %v2089_v30  ;;  %v2031_v21 = vmul.f32 %v5742_v56, %v1975_v13 }
 0x41d   : > { %v2306_v41 = vrot.slane %v5957_v0, 1  ;;  %v2308_v32 = vrot.slane %v5959_v37, 1  ;;  %v1948_v52 = vpop.f32.mrf.mxu0  ;;  %2208 = vst.msk [vmem:[#allocation3 + $0x68] sm:$0xff] %vm311_vm0, %v5957_v0 }
 0x41e   : > { %v2067_v46 = vadd.f32 %v5749_v34, %v2031_v21  ;;  %v2022_v43 = vmul.f32 %v5742_v56, %v1948_v52 }
 0x41f   : > { %v5974_v6 = vsel %vm534_vm1, %v2306_v41, %v2308_v32  ;;  %v5977_v45 = vsel %vm534_vm1, %v2305_v63, %v2306_v41 }
 0x420   : > { %7592 = vst [vmem:[#allocation60_spill] sm:$0xff] %v5974_v6  ;;  %2381 = vrot.lane.b32.xlu2 %v5974_v6, %s4116_s26  ;;  %2379 = vrot.lane.b32.xlu1 %v5977_v45, %s4116_s26  ;;  %v2099_v53 = vmax.f32 %v2067_v46, 0.0  ;;  %v2058_v19 = vadd.f32 %v5749_v34, %v2022_v43 }
 0x421   : > { %7593 = vst [vmem:[#allocation62_spill] sm:$0xff] %v5977_v45  ;;  %v5987_v61 = vld [vmem:[#allocation2 + $0x110] sm:$0xff]  ;;  %v6116_v6 = vld [vmem:[#allocation2 + $0x118] sm:$0x3] }
 0x422   : > { %2131 = vst.msk [vmem:[#allocation2 + $0x121] sm:$0xff] %vm311_vm0, %v2099_v53  ;;  %v2090_v58 = vmax.f32 %v2058_v19, 0.0 }
 0x423   : > { %v1978_v31 = vpop.f32.mrf.mxu2  ;;  %v5990_v50 = vld [vmem:[#allocation2 + $0xa8] sm:$0xff]  ;;  %2218 = vst.msk [vmem:[#allocation3 + $0xb8] sm:$0xff] %vm311_vm0, %v5987_v61 }
 0x424   : > { %2122 = vst.msk [vmem:[#allocation2 + $0xb1] sm:$0xff] %vm311_vm0, %v2090_v58  ;;  %v2032_v62 = vmul.f32 %v5742_v56, %v1978_v31  ;;  %v2310_v52 = vrot.slane %v5990_v50, 1 }
 0x425   : > { %v1951_v14 = vpop.f32.mrf.mxu0  ;;  %2209 = vst.msk [vmem:[#allocation3 + $0x70] sm:$0xff] %vm311_vm0, %v5990_v50 }
 0x426   : > { %v2068_v54 = vadd.f32 %v5749_v34, %v2032_v62  ;;  %v2023_v11 = vmul.f32 %v5742_v56, %v1951_v14 }
 0x428   : > { %v2100_v20 = vmax.f32 %v2068_v54, 0.0  ;;  %v2059_v7 = vadd.f32 %v5749_v34, %v2023_v11  ;;  %v2321_v54 = vrot.slane %v5897_v4, 1 }
 0x429   : > { %v6001_v47 = vld [vmem:[#allocation2 + $0x120] sm:$0xff] }
 0x42a   : > { %2132 = vst.msk [vmem:[#allocation2 + $0x129] sm:$0xff] %vm311_vm0, %v2100_v20  ;;  %v2091_v30 = vmax.f32 %v2059_v7, 0.0 }
 0x42b   : > { %v1981_v15 = vpop.f32.mrf.mxu2  ;;  %v6004_v13 = vld [vmem:[#allocation2 + $0xb0] sm:$0xff]  ;;  %v6006_v21 = vld [vmem:[#allocation2 + $0xb8] sm:$0x3]  ;;  %2219 = vst.msk [vmem:[#allocation3 + $0xc0] sm:$0xff] %vm311_vm0, %v6001_v47 }
 0x42c   : > { %2123 = vst.msk [vmem:[#allocation2 + $0xc1] sm:$0xff] %vm311_vm0, %v2091_v30  ;;  %v2033_v41 = vmul.f32 %v5742_v56, %v1981_v15  ;;  %v2311_v32 = vrot.slane %v6004_v13, 1  ;;  %v2313_v63 = vrot.slane %v6006_v21, 1  ;;  %v2320_v30 = vrot.slane %v5863_v22, 1 }
 0x42d   : > { %v1954_v57 = vpop.f32.mrf.mxu0  ;;  %2210 = vst.msk [vmem:[#allocation3 + $0x78] sm:$0xff] %vm311_vm0, %v6004_v13 }
 0x42e   : > { %v2069_v46 = vadd.f32 %v5749_v34, %v2033_v41  ;;  %v2024_v43 = vmul.f32 %v5742_v56, %v1954_v57  ;;  %v6020_v53 = vsel %vm534_vm1, %v2311_v32, %v2313_v63  ;;  %v6023_v19 = vsel %vm534_vm1, %v2310_v52, %v2311_v32  ;;  %v6049_v32 = vld [vmem:[#allocation2 + $0x100] sm:$0x3] }
 0x42f   : > { %7594 = vst [vmem:[#allocation65_spill] sm:$0xff] %v6020_v53  ;;  %2385 = vrot.lane.b32.xlu1 %v6020_v53, %s4116_s26  ;;  %2383 = vrot.lane.b32.xlu0 %v6023_v19, %s4116_s26  ;;  %v6045_v41 = vsel %vm534_vm1, %v2320_v30, %v2321_v54  ;;  %v2326_v57 = vrot.slane %v5941_v49, 1 }
 0x430   : > { %7595 = vst [vmem:[#allocation63_spill] sm:$0xff] %v6023_v19  ;;  %v2101_v58 = vmax.f32 %v2069_v46, 0.0  ;;  %v2060_v31 = vadd.f32 %v5749_v34, %v2024_v43  ;;  %v2328_v46 = vrot.slane %v6049_v32, 1 }
 0x431   : > { %v6030_v62 = vld [vmem:[#allocation2 + $0x128] sm:$0xff]  ;;  %7596 = vst [vmem:[#allocation70_spill] sm:$0xff] %v6045_v41 }
 0x432   : > { %2133 = vst.msk [vmem:[#allocation2 + $0x139] sm:$0xff] %vm311_vm0, %v2101_v58  ;;  %v2092_v14 = vmax.f32 %v2060_v31, 0.0  ;;  %v6070_v53 = vsel %vm534_vm1, %v2326_v57, %v2328_v46 }
 0x433   : > { %v1984_v11 = vpop.f32.mrf.mxu2  ;;  %v6034_v20 = vld [vmem:[#allocation2 + $0xc0] sm:$0xff]  ;;  %2220 = vst.msk [vmem:[#allocation3 + $0xc8] sm:$0xff] %vm311_vm0, %v6030_v62 }
 0x434   : > { %2124 = vst.msk [vmem:[#allocation2 + $0xc9] sm:$0xff] %vm311_vm0, %v2092_v14  ;;  %v2034_v7 = vmul.f32 %v5742_v56, %v1984_v11 }
 0x435   : > { %2211 = vst.msk [vmem:[#allocation3 + $0x80] sm:$0xff] %vm311_vm0, %v6034_v20 }
 0x436   : > { %v2070_v15 = vadd.f32 %v5749_v34, %v2034_v7  ;;  %7597 = vst [vmem:[#allocation68_spill] sm:$0xff] %v6070_v53 }
 0x437   : > { %2391 = vrot.lane.b32.xlu1 %v6045_v41, %s4116_s26 }
 0x438   : > { %v2102_v63 = vmax.f32 %v2070_v15, 0.0  ;;  %v2360_v14 = vpop.permute.xlu0 %2359  ;;  %v2315_v15 = vrot.slane %v6034_v20, 1 }
 0x439   : > { %v2364_v52 = vpop.permute.xlu2 %2363  ;;  %v6065_v41 = vld [vmem:[#allocation2 + $0x138] sm:$0xff]  ;;  %2453 = vst.msk [vmem:[#allocation3 + $0x10] sm:$0xff] %vm711_vm4, %v2360_v14  ;;  %v1784_v14 = vld [vmem:[#allocation3 + $0xf0] sm:$0xff] }
 0x43a   : > { %2134 = vst.msk [vmem:[#allocation2 + $0x141] sm:$0xff] %vm311_vm0, %v2102_v63  ;;  %v2362_v63 = vpop.permute.xlu1 %2361  ;;  %4035 = vmatmul.msk.f32.gmra.mxu2 %vm1791_vm13, %v1784_v14 }
 0x43b   : > { %2455 = vst.msk [vmem:[#allocation3 + $0x20] sm:$0xff] %vm711_vm4, %v2364_v52  ;;  %v1987_v43 = vpop.f32.mrf.mxu2  ;;  %v6055_v58 = vld [vmem:[#allocation2 + $0xc8] sm:$0xff]  ;;  %v6057_v31 = vld [vmem:[#allocation2 + $0xd0] sm:$0x3] }
 0x43c   : > { %v2035_v11 = vmul.f32 %v5742_v56, %v1987_v43  ;;  %v2316_v7 = vrot.slane %v6055_v58, 1  ;;  %v2318_v30 = vrot.slane %v6057_v31, 1  ;;  %2212 = vst.msk [vmem:[#allocation3 + $0x88] sm:$0xff] %vm311_vm0, %v6055_v58 }
 0x43d   : > { %2454 = vst.msk [vmem:[#allocation3 + $0x18] sm:$0xff] %vm711_vm4, %v2362_v63 }
 0x43e   : > { %v2071_v52 = vadd.f32 %v5749_v34, %v2035_v11  ;;  %v6073_v43 = vsel %vm534_vm1, %v2316_v7, %v2318_v30  ;;  %v6076_v19 = vsel %vm534_vm1, %v2315_v15, %v2316_v7  ;;  %2221 = vst.msk [vmem:[#allocation3 + $0xd0] sm:$0xff] %vm311_vm0, %v6065_v41  ;;  %v6087_v11 = vld [vmem:[#allocation2 + $0xe8] sm:$0x3]  ;;  %v2336_v30 = vrot.slane %v6030_v62, 1 }
 0x43f   : > { %7598 = vst [vmem:[#allocation75_spill] sm:$0xff] %v6073_v43  ;;  %2397 = vrot.lane.b32.xlu1 %v6070_v53, %s4116_s26  ;;  %2389 = vrot.lane.b32.xlu0 %v6073_v43, %s4116_s26  ;;  %v2323_v63 = vrot.slane %v6087_v11, 1  ;;  %v2335_v53 = vrot.slane %v6001_v47, 1  ;;  %v2325_v43 = vrot.slane %v5911_v44, 1 }
 0x440   : > { %7599 = vst [vmem:[#allocation73_spill] sm:$0xff] %v6076_v19  ;;  %v2103_v46 = vmax.f32 %v2071_v52, 0.0  ;;  %2387 = vrot.lane.b32.xlu2 %v6076_v19, %s4116_s26 }
 0x441   : > { %v6090_v7 = vld [vmem:[#allocation2 + $0x140] sm:$0xff]  ;;  %v6102_v19 = vsel %vm534_vm1, %v2335_v53, %v2336_v30  ;;  %v6114_v45 = vld [vmem:[#allocation2 + $0x148] sm:$0x3] }
 0x442   : > { %2135 = vst.msk [vmem:[#allocation2 + $0x151] sm:$0xff] %vm311_vm0, %v2103_v46  ;;  %v6105_v46 = vsel %vm534_vm1, %v2325_v43, %v2326_v57  ;;  %v2341_v43 = vrot.slane %v6090_v7, 1 }
 0x443   : > { %v1990_v15 = vpop.f32.mrf.mxu2  ;;  %2222 = vst.msk [vmem:[#allocation3 + $0xd8] sm:$0xff] %vm311_vm0, %v6090_v7 }
 0x444   : > { %v2036_v52 = vmul.f32 %v5742_v56, %v1990_v15  ;;  %7600 = vst [vmem:[#allocation28_spill] sm:$0xff] %v6102_v19  ;;  %v6112_v15 = vsel %vm534_vm1, %v2321_v54, %v2323_v63  ;;  %v2343_v54 = vrot.slane %v6114_v45, 1  ;;  %v2331_v63 = vrot.slane %v5987_v61, 1 }
 0x445   : > { %7601 = vst [vmem:[#allocation37_spill] sm:$0xff] %v6105_v46 }
 0x446   : > { %v2072_v14 = vadd.f32 %v5749_v34, %v2036_v52  ;;  %7602 = vst [vmem:[#allocation19_spill] sm:$0xff] %v6112_v15  ;;  %v1785_v52 = vld [vmem:[#allocation3 + $0xf8] sm:$0xff] }
 0x447   : > { %2403 = vrot.lane.b32.xlu1 %v6102_v19, %s4116_s26  ;;  %2395 = vrot.lane.b32.xlu0 %v6105_v46, %s4116_s26  ;;  %v2333_v19 = vrot.slane %v6116_v6, 1 }
 0x448   : > { %v2104_v39 = vmax.f32 %v2072_v14, 0.0  ;;  %2393 = vrot.lane.b32.xlu2 %v6112_v15, %s4116_s26  ;;  %4036 = vmatmul.msk.f32.gmra.mxu2 %vm1791_vm13, %v1785_v52  ;;  %v2330_v52 = vrot.slane %v5967_v24, 1  ;;  %v6135_v15 = vsel %vm534_vm1, %v2341_v43, %v2343_v54 }
 0x449   : > { %v2370_v53 = vpop.permute.xlu2 %2369  ;;  %v6121_v57 = vld [vmem:[#allocation2 + $0x150] sm:$0xff]  ;;  %7604 = vst [vmem:[#allocation43_spill] sm:$0xff] %v6135_v15  ;;  %v6138_v33 = vsel %vm534_vm1, %v2331_v63, %v2333_v19 }
 0x44a   : > { %7603 = vst [vmem:[#allocation34_spill] sm:$0xff] %v6121_v57 }
 0x44b   : > { %2136 = vst.msk [vmem:[#allocation2 + $0x159] sm:$0xff] %vm311_vm0, %v2104_v39  ;;  %v1993_v14 = vpop.f32.mrf.mxu2 }
 0x44c   : > { %2458 = vst.msk [vmem:[#allocation3 + $0x38] sm:$0xff] %vm711_vm4, %v2370_v53  ;;  %v2037_v46 = vmul.f32 %v5742_v56, %v1993_v14  ;;  %v6145_v53 = vsel %vm534_vm1, %v2330_v52, %v2331_v63  ;;  %v2340_v63 = vrot.slane %v6065_v41, 1 }
 0x44d   : > { %2223 = vst.msk [vmem:[#allocation3 + $0xe0] sm:$0xff] %vm311_vm0, %v6121_v57 }
 0x44e   : > { %v2073_v39 = vadd.f32 %v5749_v34, %v2037_v46  ;;  %7605 = vst [vmem:[#allocation24_spill] sm:$0xff] %v6138_v33  ;;  %v6149_v46 = vld [vmem:[#allocation2 + $0x130] sm:$0x3] }
 0x44f   : > { %2409 = vrot.lane.b32.xlu1 %v6135_v15, %s4116_s26  ;;  %2401 = vrot.lane.b32.xlu0 %v6138_v33, %s4116_s26  ;;  %7606 = vst [vmem:[#allocation41_spill] sm:$0xff] %v6145_v53  ;;  %v2338_v15 = vrot.slane %v6149_v46, 1 }
 0x450   : > { %v2105_v14 = vmax.f32 %v2073_v39, 0.0  ;;  %2399 = vrot.lane.b32.xlu2 %v6145_v53, %s4116_s26  ;;  %v6162_v39 = vsel %vm534_vm1, %v2340_v63, %v2341_v43 }
 0x451   : > { %v2366_v54 = vpop.permute.xlu0 %2365  ;;  %7608 = vst [vmem:[#allocation31_spill] sm:$0xff] %v6162_v39 }
 0x452   : > { %v6151_v1 = vld [vmem:[#allocation2 + $0x158] sm:$0xff]  ;;  %2137 = vst.msk [vmem:[#allocation2 + $0x169] sm:$0xff] %vm311_vm0, %v2105_v14  ;;  %v6167_v14 = vsel %vm534_vm1, %v2336_v30, %v2338_v15  ;;  %v2345_v30 = vrot.slane %v6121_v57, 1 }
 0x453   : > { %7607 = vst [vmem:[#allocation48_spill] sm:$0xff] %v6151_v1  ;;  %v1996_v19 = vpop.f32.mrf.mxu2 }
 0x454   : > { %2456 = vst.msk [vmem:[#allocation3 + $0x28] sm:$0xff] %vm711_vm4, %v2366_v54  ;;  %v2038_v33 = vmul.f32 %v5742_v56, %v1996_v19  ;;  %v6169_v54 = vld [vmem:[#allocation2 + $0x160] sm:$0x3]  ;;  %v2484_v19 = vrot.slane %v5724_v18, 2 }
 0x455   : > { %2224 = vst.msk [vmem:[#allocation3 + $0xe8] sm:$0xff] %vm311_vm0, %v6151_v1 }
 0x456   : > { %v2074_v52 = vadd.f32 %v5749_v34, %v2038_v33  ;;  %7609 = vst [vmem:[#allocation47_spill] sm:$0xff] %v6167_v14  ;;  %v2346_v34 = vrot.slane %v6151_v1, 1  ;;  %v2348_v33 = vrot.slane %v6169_v54, 1 }
 0x457   : > { %2407 = vrot.lane.b32.xlu0 %v6162_v39, %s4116_s26 }
 0x458   : > { %v2106_v53 = vmax.f32 %v2074_v52, 0.0  ;;  %2405 = vrot.lane.b32.xlu2 %v6167_v14, %s4116_s26  ;;  %v6182_v15 = vsel %vm534_vm1, %v2346_v34, %v2348_v33  ;;  %v6187_v43 = vsel %vm534_vm1, %v2345_v30, %v2346_v34  ;;  %v2486_v30 = vrot.slane %v5758_v40, 2 }
 0x459   : > { %v6173_v56 = vld [vmem:[#allocation2 + $0x168] sm:$0xff]  ;;  %7611 = vst [vmem:[#allocation39_spill] sm:$0xff] %v6182_v15  ;;  %v2491_v14 = vrot.slane %v5774_v36, 2  ;;  %v2488_v40 = vrot.slane %v5765_v17, 2 }
 0x45a   : > { %7610 = vst [vmem:[#allocation51_spill] sm:$0xff] %v6173_v56  ;;  %v2350_v33 = vrot.slane %v6173_v56, 1 }
 0x45b   : > { %2138 = vst.msk [vmem:[#allocation2 + $0x171] sm:$0xff] %vm311_vm0, %v2106_v53  ;;  %v2483_v53 = vrot.slane %v5722_v55, 2 }
 0x45c   : > { %2225 = vst.msk [vmem:[#allocation3 + $0xf0] sm:$0xff] %vm311_vm0, %v6173_v56 }
 0x45d   : > { %7612 = vst [vmem:[#allocation50_spill] sm:$0xff] %v6187_v43  ;;  %v2485_v18 = vsel %vm744_vm3, %v2483_v53, %v2484_v19  ;;  %v2489_v53 = vrot.slane %v5772_v5, 2 }
 0x45f   : > { %2413 = vrot.lane.b32.xlu0 %v6182_v15, %s4116_s26 }
 0x460   : > { %2411 = vrot.lane.b32.xlu2 %v6187_v43, %s4116_s26 }
 0x461   : > { %v2368_v63 = vpop.permute.xlu1 %2367 }
 0x462   : > { %v6193_v52 = vld [vmem:[#allocation2 + $0x170] sm:$0xff]  ;;  %v6195_v39 = vld [vmem:[#allocation2 + $0x178] sm:$0x3]  ;;  %2457 = vst.msk [vmem:[#allocation3 + $0x30] sm:$0xff] %vm711_vm4, %v2368_v63 }
 0x463   : > { %7613 = vst [vmem:[#allocation54_spill] sm:$0xff] %v6193_v52  ;;  %v2351_v15 = vrot.slane %v6193_v52, 1  ;;  %v2353_v34 = vrot.slane %v6195_v39, 1 }
 0x464   : > { %2226 = vst.msk [vmem:[#allocation3 + $0xf8] sm:$0xff] %vm311_vm0, %v6193_v52 }
 0x465   : > { %v6204_v55 = vsel %vm534_vm1, %v2350_v33, %v2351_v15  ;;  %v6212_v63 = vsel %vm534_vm1, %v2351_v15, %v2353_v34  ;;  %v2487_v33 = vsel %vm744_vm3, %v2484_v19, %v2486_v30  ;;  %v6228_v15 = vsel %vm744_vm3, %v2488_v40, %v2489_v53 }
 0x466   : > { %7614 = vst [vmem:[#allocation45_spill] sm:$0xff] %v6204_v55  ;;  %2415 = vrot.lane.b32.xlu1 %v6204_v55, %s4116_s26  ;;  %v2493_v34 = vrot.slane %v5798_v59, 2  ;;  %v2496_v30 = vrot.slane %v5807_v9, 2  ;;  %v2501_v9 = vrot.slane %v5838_v23, 2 }
 0x467   : > { %2563 = vrot.lane.b32.xlu0 %v2485_v18, %s4117_s8  ;;  %7615 = vst [vmem:[#allocation53_spill] sm:$0xff] %v6212_v63  ;;  %v6223_v18 = vsel %vm744_vm3, %v2489_v53, %v2491_v14  ;;  %v2499_v14 = vrot.slane %v5836_v28, 2  ;;  %v2498_v53 = vrot.slane %v5827_v2, 2 }
 0x468   : > { %2417 = vrot.lane.b32.xlu2 %v6212_v63, %s4116_s26  ;;  %s278_s26 = scalar_lea.vmem %s7245_s7, %s4073_s29 }
 0x469   : > { %v2376_v43 = vpop.permute.xlu2 %2375  ;;  %v6245_v40 = vsel %vm744_vm3, %v2498_v53, %v2499_v14  ;;  %v6259_v53 = vsel %vm744_vm3, %v2499_v14, %v2501_v9  ;;  %v2508_v9 = vrot.slane %v5900_v42, 2 }
 0x46a   : > { %2461 = vst.msk [vmem:[#allocation3 + $0x50] sm:$0xff] %vm711_vm4, %v2376_v43  ;;  %v2494_v43 = vrot.slane %v5805_v8, 2 }
 0x46b   : > { %7617 = vst [vmem:[#allocation56_spill] sm:$0xff] %v6259_v53 }
 0x46e   : > { %2565 = vrot.lane.b32.xlu1 %v2487_v33, %s4117_s8  ;;  %v6239_v33 = vsel %vm744_vm3, %v2493_v34, %v2494_v43  ;;  %v2504_v34 = vrot.slane %v5873_v27, 2 }
 0x46f   : > { %2569 = vrot.lane.b32.xlu0 %v6223_v18, %s4117_s8  ;;  %7616 = vst [vmem:[#allocation49_spill] sm:$0xff] %v6239_v33 }
 0x470   : > { %2567 = vrot.lane.b32.xlu2 %v6228_v15, %s4117_s8 }
 0x471   : > { %v2374_v19 = vpop.permute.xlu1 %2373  ;;  %v2372_v36 = vpop.permute.xlu0 %2371 }
 0x472   : > { %2460 = vst.msk [vmem:[#allocation3 + $0x48] sm:$0xff] %vm711_vm4, %v2374_v19  ;;  %v6250_v19 = vsel %vm744_vm3, %v2494_v43, %v2496_v30  ;;  %v2503_v43 = vrot.slane %v5859_v60, 2 }
 0x473   : > { %2459 = vst.msk [vmem:[#allocation3 + $0x40] sm:$0xff] %vm711_vm4, %v2372_v36 }
 0x474   : > { %v6270_v23 = vsel %vm744_vm3, %v2503_v43, %v2504_v34 }
 0x476   : > { %2571 = vrot.lane.b32.xlu1 %v6239_v33, %s4117_s8  ;;  %v2506_v33 = vrot.slane %v5875_v16, 2  ;;  %v2509_v16 = vrot.slane %v5914_v48, 2 }
 0x477   : > { %2575 = vrot.lane.b32.xlu0 %v6245_v40, %s4117_s8 }
 0x478   : > { %2573 = vrot.lane.b32.xlu2 %v6250_v19, %s4117_s8  ;;  %v6265_v30 = vsel %vm744_vm3, %v2504_v34, %v2506_v33  ;;  %v2511_v33 = vrot.slane %v5916_v25, 2  ;;  %v2513_v34 = vrot.slane %v5944_v10, 2  ;;  %v2516_v25 = vrot.slane %v5959_v37, 2 }
 0x479   : > { %7618 = vst [vmem:[#allocation52_spill] sm:$0xff] %v6265_v30 }
 0x47a   : > { %v2382_v36 = vpop.permute.xlu2 %2381 }
 0x47b   : > { %2464 = vst.msk [vmem:[#allocation3 + $0x68] sm:$0xff] %vm711_vm4, %v2382_v36  ;;  %v2514_v36 = vrot.slane %v5957_v0, 2 }
 0x47d   : > { %v6286_v43 = vsel %vm744_vm3, %v2513_v34, %v2514_v36  ;;  %v2518_v34 = vrot.slane %v5990_v50, 2 }
 0x47e   : > { %2577 = vrot.lane.b32.xlu1 %v6259_v53, %s4117_s8  ;;  %v6280_v53 = vsel %vm744_vm3, %v2508_v9, %v2509_v16  ;;  %v2519_v9 = vrot.slane %v6004_v13, 2 }
 0x47f   : > { %2581 = vrot.lane.b32.xlu0 %v6265_v30, %s4117_s8  ;;  %7619 = vst [vmem:[#allocation58_spill] sm:$0xff] %v6280_v53  ;;  %v2521_v30 = vrot.slane %v6006_v21, 2  ;;  %v2524_v21 = vrot.slane %v6055_v58, 2 }
 0x480   : > { %2579 = vrot.lane.b32.xlu2 %v6270_v23, %s4117_s8  ;;  %v6310_v37 = vsel %vm744_vm3, %v2518_v34, %v2519_v9 }
 0x481   : > { %v2378_v14 = vpop.permute.xlu0 %2377  ;;  %7623 = vst [vmem:[#allocation67_spill] sm:$0xff] %v6310_v37 }
 0x482   : > { %2462 = vst.msk [vmem:[#allocation3 + $0x58] sm:$0xff] %vm711_vm4, %v2378_v14  ;;  %v6291_v14 = vsel %vm744_vm3, %v2509_v16, %v2511_v33  ;;  %v6305_v16 = vsel %vm744_vm3, %v2519_v9, %v2521_v30  ;;  %v2523_v33 = vrot.slane %v6034_v20, 2  ;;  %v2526_v30 = vrot.slane %v6057_v31, 2 }
 0x483   : > { %7620 = vst [vmem:[#allocation13_spill] sm:$0xff] %v6291_v14  ;;  %v2528_v9 = vrot.slane %v5863_v22, 2  ;;  %v2531_v31 = vrot.slane %v6087_v11, 2 }
 0x484   : > { %7622 = vst [vmem:[#allocation61_spill] sm:$0xff] %v6305_v16 }
 0x486   : > { %2583 = vrot.lane.b32.xlu1 %v6280_v53, %s4117_s8  ;;  %v6299_v53 = vsel %vm744_vm3, %v2514_v36, %v2516_v25  ;;  %v2529_v25 = vrot.slane %v5897_v4, 2 }
 0x487   : > { %2587 = vrot.lane.b32.xlu0 %v6286_v43, %s4117_s8  ;;  %7621 = vst [vmem:[#allocation64_spill] sm:$0xff] %v6299_v53 }
 0x488   : > { %2585 = vrot.lane.b32.xlu2 %v6291_v14, %s4117_s8  ;;  %v6326_v34 = vsel %vm744_vm3, %v2528_v9, %v2529_v25  ;;  %v6340_v9 = vsel %vm744_vm3, %v2529_v25, %v2531_v31 }
 0x489   : > { %7625 = vst [vmem:[#allocation66_spill] sm:$0xff] %v6326_v34 }
 0x48a   : > { %7627 = vst [vmem:[#allocation74_spill] sm:$0xff] %v6340_v9 }
 0x48e   : > { %2589 = vrot.lane.b32.xlu1 %v6299_v53, %s4117_s8  ;;  %v6320_v53 = vsel %vm744_vm3, %v2523_v33, %v2524_v21 }
 0x48f   : > { %2593 = vrot.lane.b32.xlu0 %v6305_v16, %s4117_s8  ;;  %7624 = vst [vmem:[#allocation69_spill] sm:$0xff] %v6320_v53  ;;  %v2534_v16 = vrot.slane %v5941_v49, 2 }
 0x490   : > { %2591 = vrot.lane.b32.xlu2 %v6310_v37, %s4117_s8  ;;  %v2536_v37 = vrot.slane %v6049_v32, 2  ;;  %v2539_v32 = vrot.slane %v5987_v61, 2 }
 0x492   : > { %v2380_v36 = vpop.permute.xlu1 %2379 }
 0x493   : > { %2463 = vst.msk [vmem:[#allocation3 + $0x60] sm:$0xff] %vm711_vm4, %v2380_v36  ;;  %v6331_v36 = vsel %vm744_vm3, %v2524_v21, %v2526_v30  ;;  %v2533_v21 = vrot.slane %v5911_v44, 2  ;;  %v6346_v30 = vsel %vm744_vm3, %v2534_v16, %v2536_v37  ;;  %v2544_v37 = vrot.slane %v6030_v62, 2 }
 0x494   : > { %7626 = vst [vmem:[#allocation72_spill] sm:$0xff] %v6331_v36 }
 0x495   : > { %7628 = vst [vmem:[#allocation71_spill] sm:$0xff] %v6346_v30  ;;  %v6351_v11 = vsel %vm744_vm3, %v2533_v21, %v2534_v16  ;;  %v2543_v21 = vrot.slane %v6001_v47, 2 }
 0x496   : > { %2595 = vrot.lane.b32.xlu1 %v6320_v53, %s4117_s8 }
 0x497   : > { %2599 = vrot.lane.b32.xlu0 %v6326_v34, %s4117_s8 }
 0x498   : > { %2597 = vrot.lane.b32.xlu2 %v6331_v36, %s4117_s8 }
 0x49a   : > { %v2388_v33 = vpop.permute.xlu2 %2387 }
 0x49b   : > { %2467 = vst.msk [vmem:[#allocation3 + $0x80] sm:$0xff] %vm711_vm4, %v2388_v33 }
 0x49e   : > { %2601 = vrot.lane.b32.xlu1 %v6340_v9, %s4117_s8  ;;  %v2538_v9 = vrot.slane %v5967_v24, 2 }
 0x49f   : > { %2605 = vrot.lane.b32.xlu0 %v6346_v30, %s4117_s8  ;;  %v2541_v30 = vrot.slane %v6116_v6, 2  ;;  %v2546_v6 = vrot.slane %v6149_v46, 2 }
 0x4a0   : > { %2603 = vrot.lane.b32.xlu2 %v6351_v11, %s4117_s8  ;;  %v6363_v16 = vsel %vm744_vm3, %v2538_v9, %v2539_v32 }
 0x4a1   : > { %v2386_v25 = vpop.permute.xlu1 %2385  ;;  %v2384_v31 = vpop.permute.xlu0 %2383  ;;  %7629 = vst [vmem:[#allocation76_spill] sm:$0xff] %v6363_v16 }
 0x4a2   : > { %2466 = vst.msk [vmem:[#allocation3 + $0x78] sm:$0xff] %vm711_vm4, %v2386_v25  ;;  %v2394_v33 = vpop.permute.xlu2 %2393  ;;  %v6369_v25 = vsel %vm744_vm3, %v2543_v21, %v2544_v37  ;;  %v2551_v21 = vrot.slane %v6114_v45, 2  ;;  %v2554_v45 = vrot.slane %v6151_v1, 2 }
 0x4a3   : > { %2465 = vst.msk [vmem:[#allocation3 + $0x70] sm:$0xff] %vm711_vm4, %v2384_v31  ;;  %v6374_v31 = vsel %vm744_vm3, %v2539_v32, %v2541_v30  ;;  %v2548_v30 = vrot.slane %v6065_v41, 2 }
 0x4a4   : > { %2470 = vst.msk [vmem:[#allocation3 + $0x98] sm:$0xff] %vm711_vm4, %v2394_v33 }
 0x4a5   : > { %7630 = vst [vmem:[#allocation77_spill] sm:$0xff] %v6369_v25 }
 0x4a6   : > { %2607 = vrot.lane.b32.xlu1 %v6363_v16, %s4117_s8  ;;  %v2549_v16 = vrot.slane %v6090_v7, 2 }
 0x4a7   : > { %2611 = vrot.lane.b32.xlu0 %v6369_v25, %s4117_s8  ;;  %v6384_v25 = vsel %vm744_vm3, %v2544_v37, %v2546_v6 }
 0x4a8   : > { %2609 = vrot.lane.b32.xlu2 %v6374_v31, %s4117_s8  ;;  %7631 = vst [vmem:[#allocation22_spill] sm:$0xff] %v6384_v25  ;;  %v6390_v46 = vsel %vm744_vm3, %v2549_v16, %v2551_v21  ;;  %v6395_v32 = vsel %vm744_vm3, %v2548_v30, %v2549_v16  ;;  %v2559_v21 = vrot.slane %v6193_v52, 2  ;;  %v2558_v30 = vrot.slane %v6173_v56, 2 }
 0x4a9   : > { %v2392_v9 = vpop.permute.xlu1 %2391  ;;  %7632 = vst [vmem:[#allocation80_spill] sm:$0xff] %v6390_v46 }
 0x4aa   : > { %2469 = vst.msk [vmem:[#allocation3 + $0x90] sm:$0xff] %vm711_vm4, %v2392_v9  ;;  %v2400_v33 = vpop.permute.xlu2 %2399 }
 0x4ab   : > { %2473 = vst.msk [vmem:[#allocation3 + $0xb0] sm:$0xff] %vm711_vm4, %v2400_v33  ;;  %v2553_v33 = vrot.slane %v6121_v57, 2 }
 0x4ad   : > { %v6407_v16 = vsel %vm744_vm3, %v2553_v33, %v2554_v45 }
 0x4ae   : > { %2613 = vrot.lane.b32.xlu1 %v6384_v25, %s4117_s8 }
 0x4af   : > { %2617 = vrot.lane.b32.xlu0 %v6390_v46, %s4117_s8  ;;  %v2556_v46 = vrot.slane %v6169_v54, 2  ;;  %v2561_v54 = vrot.slane %v6195_v39, 2 }
 0x4b0   : > { %2615 = vrot.lane.b32.xlu2 %v6395_v32, %s4117_s8 }
 0x4b1   : > { %v2398_v37 = vpop.permute.xlu1 %2397  ;;  %v2390_v6 = vpop.permute.xlu0 %2389 }
 0x4b2   : > { %2472 = vst.msk [vmem:[#allocation3 + $0xa8] sm:$0xff] %vm711_vm4, %v2398_v37  ;;  %v2406_v9 = vpop.permute.xlu2 %2405  ;;  %v6413_v37 = vsel %vm744_vm3, %v2558_v30, %v2559_v21  ;;  %v6427_v30 = vsel %vm744_vm3, %v2559_v21, %v2561_v54  ;;  %v4105_v54 = vld [vmem:[%s7240_s2] ss:$0 sm:$0xff] }
 0x4b3   : > { %2468 = vst.msk [vmem:[#allocation3 + $0x88] sm:$0xff] %vm711_vm4, %v2390_v6  ;;  %v6418_v6 = vsel %vm744_vm3, %v2554_v45, %v2556_v46 }
 0x4b4   : > { %2476 = vst.msk [vmem:[#allocation3 + $0xc8] sm:$0xff] %vm711_vm4, %v2406_v9 }
 0x4b5   : > { %7633 = vst [vmem:[#allocation81_spill] sm:$0xff] %v6418_v6 }
 0x4b6   : > { %2619 = vrot.lane.b32.xlu1 %v6407_v16, %s4117_s8 }
 0x4b7   : > { %2623 = vrot.lane.b32.xlu0 %v6413_v37, %s4117_s8 }
 0x4b8   : > { %2621 = vrot.lane.b32.xlu2 %v6418_v6, %s4117_s8 }
 0x4b9   : > { %v2404_v9 = vpop.permute.xlu1 %2403  ;;  %v2396_v33 = vpop.permute.xlu0 %2395 }
 0x4ba   : > { %2475 = vst.msk [vmem:[#allocation3 + $0xc0] sm:$0xff] %vm711_vm4, %v2404_v9  ;;  %v2412_v25 = vpop.permute.xlu2 %2411 }
 0x4bb   : > { %2471 = vst.msk [vmem:[#allocation3 + $0xa0] sm:$0xff] %vm711_vm4, %v2396_v33 }
 0x4bc   : > { %2479 = vst.msk [vmem:[#allocation3 + $0xe0] sm:$0xff] %vm711_vm4, %v2412_v25 }
 0x4bd   : > { %v1999_v25 = vpop.f32.mrf.mxu2 }
 0x4be   : > { %2625 = vrot.lane.b32.xlu1 %v6427_v30, %s4117_s8  ;;  %v2039_v9 = vmul.f32 %v4105_v54, %v1999_v25 }
 0x4bf   : > { %2695 = vrot.lane.b32.xlu0 %v5772_v5, %s4118_s9 }
 0x4c0   : > { %2693 = vrot.lane.b32.xlu2 %v5765_v17, %s4118_s9 }
 0x4c1   : > { %v2410_v39 = vpop.permute.xlu1 %2409  ;;  %v2402_v46 = vpop.permute.xlu0 %2401 }
 0x4c2   : > { %2478 = vst.msk [vmem:[#allocation3 + $0xd8] sm:$0xff] %vm711_vm4, %v2410_v39  ;;  %v2418_v45 = vpop.permute.xlu2 %2417  ;;  %v4106_v39 = vld [vmem:[%s7241_s3] ss:$0 sm:$0xff] }
 0x4c3   : > { %2474 = vst.msk [vmem:[#allocation3 + $0xb8] sm:$0xff] %vm711_vm4, %v2402_v46  ;;  %v2075_v46 = vadd.f32 %v4106_v39, %v2039_v9 }
 0x4c4   : > { %2482 = vst.msk [vmem:[#allocation3 + $0xf8] sm:$0xff] %vm711_vm4, %v2418_v45 }
 0x4c5   : > { %v2107_v45 = vmax.f32 %v2075_v46, 0.0 }
 0x4c6   : > { %2697 = vrot.lane.b32.xlu1 %v5798_v59, %s4118_s9 }
 0x4c7   : > { %2701 = vrot.lane.b32.xlu0 %v5827_v2, %s4118_s9  ;;  %2139 = vst.msk [vmem:[#allocation2 + $0x181] sm:$0xff] %vm311_vm0, %v2107_v45 }
 0x4c8   : > { %2699 = vrot.lane.b32.xlu2 %v5805_v8, %s4118_s9 }
 0x4c9   : > { %v2408_v5 = vpop.permute.xlu0 %2407 }
 0x4ca   : > { %2477 = vst.msk [vmem:[#allocation3 + $0xd0] sm:$0xff] %vm711_vm4, %v2408_v5  ;;  %v2568_v17 = vpop.permute.xlu2 %2567 }
 0x4cb   : > { %2661 = vst.msk [vmem:[#allocation3 + $0x10] sm:$0xff] %vm921_vm5, %v2568_v17  ;;  %v2002_v17 = vpop.f32.mrf.mxu2 }
 0x4ce   : > { %2703 = vrot.lane.b32.xlu1 %v5836_v28, %s4118_s9 }
 0x4cf   : > { %2707 = vrot.lane.b32.xlu0 %v5873_v27, %s4118_s9 }
 0x4d0   : > { %2705 = vrot.lane.b32.xlu2 %v5859_v60, %s4118_s9 }
 0x4d1   : > { %v2414_v21 = vpop.permute.xlu0 %2413 }
 0x4d2   : > { %2480 = vst.msk [vmem:[#allocation3 + $0xe8] sm:$0xff] %vm711_vm4, %v2414_v21  ;;  %v2574_v33 = vpop.permute.xlu2 %2573  ;;  %v2040_v21 = vmul.f32 %v4105_v54, %v2002_v17 }
 0x4d3   : > { %2664 = vst.msk [vmem:[#allocation3 + $0x28] sm:$0xff] %vm921_vm5, %v2574_v33 }
 0x4d4   : > { %v2076_v33 = vadd.f32 %v4106_v39, %v2040_v21 }
 0x4d6   : > { %2709 = vrot.lane.b32.xlu1 %v5900_v42, %s4118_s9  ;;  %v2108_v46 = vmax.f32 %v2076_v33, 0.0 }
 0x4d7   : > { %2713 = vrot.lane.b32.xlu0 %v5944_v10, %s4118_s9 }
 0x4d8   : > { %v2416_v5 = vpop.permute.xlu1 %2415  ;;  %2711 = vrot.lane.b32.xlu2 %v5914_v48, %s4118_s9  ;;  %2140 = vst.msk [vmem:[#allocation2 + $0x189] sm:$0xff] %vm311_vm0, %v2108_v46 }
 0x4d9   : > { %2481 = vst.msk [vmem:[#allocation3 + $0xf0] sm:$0xff] %vm711_vm4, %v2416_v5  ;;  %v2564_v25 = vpop.permute.xlu0 %2563 }
 0x4da   : > { %2659 = vst.msk [vmem:[#allocation3] sm:$0xff] %vm921_vm5, %v2564_v25  ;;  %v2580_v9 = vpop.permute.xlu2 %2579 }
 0x4db   : > { %2667 = vst.msk [vmem:[#allocation3 + $0x40] sm:$0xff] %vm921_vm5, %v2580_v9 }
 0x4de   : > { %2715 = vrot.lane.b32.xlu1 %v5957_v0, %s4118_s9 }
 0x4df   : > { %2719 = vrot.lane.b32.xlu0 %v6004_v13, %s4118_s9 }
 0x4e0   : > { %v2566_v10 = vpop.permute.xlu1 %2565  ;;  %2717 = vrot.lane.b32.xlu2 %v5990_v50, %s4118_s9 }
 0x4e1   : > { %2660 = vst.msk [vmem:[#allocation3 + $0x8] sm:$0xff] %vm921_vm5, %v2566_v10  ;;  %v2570_v54 = vpop.permute.xlu0 %2569 }
 0x4e2   : > { %2662 = vst.msk [vmem:[#allocation3 + $0x18] sm:$0xff] %vm921_vm5, %v2570_v54  ;;  %v2586_v45 = vpop.permute.xlu2 %2585 }
 0x4e3   : > { %2670 = vst.msk [vmem:[#allocation3 + $0x58] sm:$0xff] %vm921_vm5, %v2586_v45 }
 0x4e6   : > { %2721 = vrot.lane.b32.xlu1 %v6034_v20, %s4118_s9 }
 0x4e7   : > { %2725 = vrot.lane.b32.xlu0 %v5863_v22, %s4118_s9 }
 0x4e8   : > { %v2572_v39 = vpop.permute.xlu1 %2571  ;;  %2723 = vrot.lane.b32.xlu2 %v6055_v58, %s4118_s9 }
 0x4e9   : > { %2663 = vst.msk [vmem:[#allocation3 + $0x20] sm:$0xff] %vm921_vm5, %v2572_v39  ;;  %v2576_v10 = vpop.permute.xlu0 %2575 }
 0x4ea   : > { %2665 = vst.msk [vmem:[#allocation3 + $0x30] sm:$0xff] %vm921_vm5, %v2576_v10  ;;  %v2592_v5 = vpop.permute.xlu2 %2591 }
 0x4eb   : > { %2673 = vst.msk [vmem:[#allocation3 + $0x70] sm:$0xff] %vm921_vm5, %v2592_v5 }
 0x4ee   : > { %2727 = vrot.lane.b32.xlu1 %v5897_v4, %s4118_s9 }
 0x4ef   : > { %2731 = vrot.lane.b32.xlu0 %v5941_v49, %s4118_s9 }
 0x4f0   : > { %v2578_v17 = vpop.permute.xlu1 %2577  ;;  %2729 = vrot.lane.b32.xlu2 %v5911_v44, %s4118_s9 }
 0x4f1   : > { %2666 = vst.msk [vmem:[#allocation3 + $0x38] sm:$0xff] %vm921_vm5, %v2578_v17  ;;  %v2582_v25 = vpop.permute.xlu0 %2581 }
 0x4f2   : > { %2668 = vst.msk [vmem:[#allocation3 + $0x48] sm:$0xff] %vm921_vm5, %v2582_v25  ;;  %v2598_v21 = vpop.permute.xlu2 %2597  ;;  %v6527_v25 = vld [vmem:[#allocation2 + $0x188] sm:$0xff] }
 0x4f3   : > { %2676 = vst.msk [vmem:[#allocation3 + $0x88] sm:$0xff] %vm921_vm5, %v2598_v21 }
 0x4f4   : > { %7634 = vst [vmem:[#allocation82_spill] sm:$0xff] %v6527_v25 }
 0x4f6   : > { %2733 = vrot.lane.b32.xlu1 %v5967_v24, %s4118_s9 }
 0x4f7   : > { %2737 = vrot.lane.b32.xlu0 %v6001_v47, %s4118_s9 }
 0x4f8   : > { %v2584_v9 = vpop.permute.xlu1 %2583  ;;  %2735 = vrot.lane.b32.xlu2 %v5987_v61, %s4118_s9 }
 0x4f9   : > { %2669 = vst.msk [vmem:[#allocation3 + $0x50] sm:$0xff] %vm921_vm5, %v2584_v9  ;;  %v2588_v33 = vpop.permute.xlu0 %2587  ;;  %v6531_v9 = vld [vmem:[#allocation2 + $0x180] sm:$0xff] }
 0x4fa   : > { %2671 = vst.msk [vmem:[#allocation3 + $0x60] sm:$0xff] %vm921_vm5, %v2588_v33  ;;  %v2604_v46 = vpop.permute.xlu2 %2603 }
 0x4fb   : > { %2679 = vst.msk [vmem:[#allocation3 + $0xa0] sm:$0xff] %vm921_vm5, %v2604_v46 }
 0x4fe   : > { %2739 = vrot.lane.b32.xlu1 %v6030_v62, %s4118_s9 }
 0x4ff   : > { %2743 = vrot.lane.b32.xlu0 %v6090_v7, %s4118_s9 }
 0x500   : > { %v2590_v54 = vpop.permute.xlu1 %2589  ;;  %2741 = vrot.lane.b32.xlu2 %v6065_v41, %s4118_s9 }
 0x501   : > { %2672 = vst.msk [vmem:[#allocation3 + $0x68] sm:$0xff] %vm921_vm5, %v2590_v54  ;;  %v2594_v45 = vpop.permute.xlu0 %2593 }
 0x502   : > { %2674 = vst.msk [vmem:[#allocation3 + $0x78] sm:$0xff] %vm921_vm5, %v2594_v45  ;;  %v2610_v39 = vpop.permute.xlu2 %2609 }
 0x503   : > { %2682 = vst.msk [vmem:[#allocation3 + $0xb8] sm:$0xff] %vm921_vm5, %v2610_v39 }
 0x506   : > { %2745 = vrot.lane.b32.xlu1 %v6121_v57, %s4118_s9  ;;  %v7653_v57 = vld [vmem:[#allocation50_spill] sm:$0xff] }
 0x507   : > { %2749 = vrot.lane.b32.xlu0 %v6173_v56, %s4118_s9  ;;  %v7650_v56 = vld [vmem:[#allocation47_spill] sm:$0xff] }
 0x508   : > { %v2596_v10 = vpop.permute.xlu1 %2595  ;;  %2747 = vrot.lane.b32.xlu2 %v6151_v1, %s4118_s9 }
 0x509   : > { %2675 = vst.msk [vmem:[#allocation3 + $0x80] sm:$0xff] %vm921_vm5, %v2596_v10  ;;  %v2600_v5 = vpop.permute.xlu0 %2599 }
 0x50a   : > { %2677 = vst.msk [vmem:[#allocation3 + $0x90] sm:$0xff] %vm921_vm5, %v2600_v5  ;;  %v2616_v17 = vpop.permute.xlu2 %2615 }
 0x50b   : > { %2685 = vst.msk [vmem:[#allocation3 + $0xd0] sm:$0xff] %vm921_vm5, %v2616_v17  ;;  %v7635_v17 = vld [vmem:[#allocation55_spill] sm:$0xff] }
 0x50e   : > { %2751 = vrot.lane.b32.xlu1 %v6193_v52, %s4118_s9 }
 0x50f   : > { %2755 = vrot.lane.b32.xlu0 %v6527_v25, %s4118_s9 }
 0x510   : > { %v2602_v21 = vpop.permute.xlu1 %2601  ;;  %2753 = vrot.lane.b32.xlu2 %v6531_v9, %s4118_s9 }
 0x511   : > { %2678 = vst.msk [vmem:[#allocation3 + $0x98] sm:$0xff] %vm921_vm5, %v2602_v21  ;;  %v2606_v33 = vpop.permute.xlu0 %2605  ;;  %v7636_v21 = vld [vmem:[#allocation29_spill] sm:$0xff] }
 0x512   : > { %2680 = vst.msk [vmem:[#allocation3 + $0xa8] sm:$0xff] %vm921_vm5, %v2606_v33  ;;  %v2622_v46 = vpop.permute.xlu2 %2621 }
 0x513   : > { %2688 = vst.msk [vmem:[#allocation3 + $0xe8] sm:$0xff] %vm921_vm5, %v2622_v46 }
 0x516   : > { %2827 = vrot.lane.b32.xlu1 %v5788_v35, %s4119_s10 }
 0x517   : > { %2831 = vrot.lane.b32.xlu0 %v5820_v38, %s4119_s10 }
 0x518   : > { %v2608_v54 = vpop.permute.xlu1 %2607  ;;  %2829 = vrot.lane.b32.xlu2 %v5785_v12, %s4119_s10 }
 0x519   : > { %2681 = vst.msk [vmem:[#allocation3 + $0xb0] sm:$0xff] %vm921_vm5, %v2608_v54  ;;  %v2612_v45 = vpop.permute.xlu0 %2611  ;;  %v7637_v54 = vld [vmem:[#allocation57_spill] sm:$0xff] }
 0x51a   : > { %2683 = vst.msk [vmem:[#allocation3 + $0xc0] sm:$0xff] %vm921_vm5, %v2612_v45  ;;  %v2694_v39 = vpop.permute.xlu2 %2693 }
 0x51b   : > { %2789 = vst.msk [vmem:[#allocation3] sm:$0xff] %vm1052_vm6, %v2694_v39  ;;  %v7638_v39 = vld [vmem:[#allocation60_spill] sm:$0xff] }
 0x51e   : > { %2833 = vrot.lane.b32.xlu1 %v5817_v29, %s4119_s10 }
 0x51f   : > { %2837 = vrot.lane.b32.xlu0 %v5847_v26, %s4119_s10 }
 0x520   : > { %v2614_v10 = vpop.permute.xlu1 %2613  ;;  %2835 = vrot.lane.b32.xlu2 %v5852_v3, %s4119_s10 }
 0x521   : > { %2684 = vst.msk [vmem:[#allocation3 + $0xc8] sm:$0xff] %vm921_vm5, %v2614_v10  ;;  %v2618_v35 = vpop.permute.xlu0 %2617  ;;  %v7639_v10 = vld [vmem:[#allocation62_spill] sm:$0xff] }
 0x522   : > { %2686 = vst.msk [vmem:[#allocation3 + $0xd8] sm:$0xff] %vm921_vm5, %v2618_v35  ;;  %v2700_v12 = vpop.permute.xlu2 %2699 }
 0x523   : > { %2792 = vst.msk [vmem:[#allocation3 + $0x18] sm:$0xff] %vm1052_vm6, %v2700_v12 }
 0x526   : > { %2839 = vrot.lane.b32.xlu1 %v5890_v51, %s4119_s10 }
 0x527   : > { %2843 = vrot.lane.b32.xlu0 %v7635_v17, %s4119_s10 }
 0x528   : > { %v2620_v5 = vpop.permute.xlu1 %2619  ;;  %2841 = vrot.lane.b32.xlu2 %v7636_v21, %s4119_s10 }
 0x529   : > { %2687 = vst.msk [vmem:[#allocation3 + $0xe0] sm:$0xff] %vm921_vm5, %v2620_v5  ;;  %v2624_v33 = vpop.permute.xlu0 %2623  ;;  %v7640_v5 = vld [vmem:[#allocation63_spill] sm:$0xff] }
 0x52a   : > { %2689 = vst.msk [vmem:[#allocation3 + $0xf0] sm:$0xff] %vm921_vm5, %v2624_v33  ;;  %v2706_v46 = vpop.permute.xlu2 %2705 }
 0x52b   : > { %2795 = vst.msk [vmem:[#allocation3 + $0x30] sm:$0xff] %vm1052_vm6, %v2706_v46  ;;  %v7641_v46 = vld [vmem:[#allocation73_spill] sm:$0xff] }
 0x52e   : > { %2845 = vrot.lane.b32.xlu1 %v7637_v54, %s4119_s10 }
 0x52f   : > { %2849 = vrot.lane.b32.xlu0 %v7638_v39, %s4119_s10 }
 0x530   : > { %v2626_v45 = vpop.permute.xlu1 %2625  ;;  %2847 = vrot.lane.b32.xlu2 %v7639_v10, %s4119_s10 }
 0x531   : > { %2690 = vst.msk [vmem:[#allocation3 + $0xf8] sm:$0xff] %vm921_vm5, %v2626_v45  ;;  %v2696_v35 = vpop.permute.xlu0 %2695  ;;  %v7642_v45 = vld [vmem:[#allocation65_spill] sm:$0xff] }
 0x532   : > { %2790 = vst.msk [vmem:[#allocation3 + $0x8] sm:$0xff] %vm1052_vm6, %v2696_v35  ;;  %v2712_v12 = vpop.permute.xlu2 %2711  ;;  %v7643_v35 = vld [vmem:[#allocation75_spill] sm:$0xff] }
 0x533   : > { %2798 = vst.msk [vmem:[#allocation3 + $0x48] sm:$0xff] %vm1052_vm6, %v2712_v12 }
 0x536   : > { %2851 = vrot.lane.b32.xlu1 %v7640_v5, %s4119_s10  ;;  %v7644_v5 = vld [vmem:[#allocation19_spill] sm:$0xff] }
 0x537   : > { %2855 = vrot.lane.b32.xlu0 %v7641_v46, %s4119_s10 }
 0x538   : > { %v2698_v33 = vpop.permute.xlu1 %2697  ;;  %2853 = vrot.lane.b32.xlu2 %v7642_v45, %s4119_s10 }
 0x539   : > { %2791 = vst.msk [vmem:[#allocation3 + $0x10] sm:$0xff] %vm1052_vm6, %v2698_v33  ;;  %v2702_v52 = vpop.permute.xlu0 %2701  ;;  %v7645_v33 = vld [vmem:[#allocation70_spill] sm:$0xff] }
 0x53a   : > { %2793 = vst.msk [vmem:[#allocation3 + $0x20] sm:$0xff] %vm1052_vm6, %v2702_v52  ;;  %v2718_v39 = vpop.permute.xlu2 %2717  ;;  %v7646_v52 = vld [vmem:[#allocation37_spill] sm:$0xff] }
 0x53b   : > { %2801 = vst.msk [vmem:[#allocation3 + $0x60] sm:$0xff] %vm1052_vm6, %v2718_v39 }
 0x53e   : > { %2857 = vrot.lane.b32.xlu1 %v7643_v35, %s4119_s10  ;;  %v7647_v35 = vld [vmem:[#allocation41_spill] sm:$0xff] }
 0x53f   : > { %2861 = vrot.lane.b32.xlu0 %v7644_v5, %s4119_s10 }
 0x540   : > { %v2704_v12 = vpop.permute.xlu1 %2703  ;;  %2859 = vrot.lane.b32.xlu2 %v7645_v33, %s4119_s10 }
 0x541   : > { %2794 = vst.msk [vmem:[#allocation3 + $0x28] sm:$0xff] %vm1052_vm6, %v2704_v12  ;;  %v2708_v46 = vpop.permute.xlu0 %2707  ;;  %v7648_v12 = vld [vmem:[#allocation68_spill] sm:$0xff] }
 0x542   : > { %2796 = vst.msk [vmem:[#allocation3 + $0x38] sm:$0xff] %vm1052_vm6, %v2708_v46  ;;  %v2724_v45 = vpop.permute.xlu2 %2723  ;;  %v7649_v46 = vld [vmem:[#allocation24_spill] sm:$0xff] }
 0x543   : > { %2804 = vst.msk [vmem:[#allocation3 + $0x78] sm:$0xff] %vm1052_vm6, %v2724_v45 }
 0x546   : > { %2863 = vrot.lane.b32.xlu1 %v7646_v52, %s4119_s10 }
 0x547   : > { %2867 = vrot.lane.b32.xlu0 %v7647_v35, %s4119_s10 }
 0x548   : > { %v2710_v39 = vpop.permute.xlu1 %2709  ;;  %2865 = vrot.lane.b32.xlu2 %v7648_v12, %s4119_s10 }
 0x549   : > { %2797 = vst.msk [vmem:[#allocation3 + $0x40] sm:$0xff] %vm1052_vm6, %v2710_v39  ;;  %v2714_v5 = vpop.permute.xlu0 %2713  ;;  %v7651_v39 = vld [vmem:[#allocation28_spill] sm:$0xff] }
 0x54a   : > { %2799 = vst.msk [vmem:[#allocation3 + $0x50] sm:$0xff] %vm1052_vm6, %v2714_v5  ;;  %v2730_v33 = vpop.permute.xlu2 %2729  ;;  %v7652_v5 = vld [vmem:[#allocation31_spill] sm:$0xff] }
 0x54b   : > { %2807 = vst.msk [vmem:[#allocation3 + $0x90] sm:$0xff] %vm1052_vm6, %v2730_v33 }
 0x54e   : > { %2869 = vrot.lane.b32.xlu1 %v7649_v46, %s4119_s10 }
 0x54f   : > { %2873 = vrot.lane.b32.xlu0 %v7650_v56, %s4119_s10 }
 0x550   : > { %v2716_v45 = vpop.permute.xlu1 %2715  ;;  %2871 = vrot.lane.b32.xlu2 %v7651_v39, %s4119_s10 }
 0x551   : > { %2800 = vst.msk [vmem:[#allocation3 + $0x58] sm:$0xff] %vm1052_vm6, %v2716_v45  ;;  %v2720_v10 = vpop.permute.xlu0 %2719  ;;  %v7654_v45 = vld [vmem:[#allocation43_spill] sm:$0xff] }
 0x552   : > { %2802 = vst.msk [vmem:[#allocation3 + $0x68] sm:$0xff] %vm1052_vm6, %v2720_v10  ;;  %v2736_v1 = vpop.permute.xlu2 %2735 }
 0x553   : > { %2810 = vst.msk [vmem:[#allocation3 + $0xa8] sm:$0xff] %vm1052_vm6, %v2736_v1  ;;  %v7655_v1 = vld [vmem:[#allocation39_spill] sm:$0xff] }
 0x556   : > { %2875 = vrot.lane.b32.xlu1 %v7652_v5, %s4119_s10 }
 0x557   : > { %2879 = vrot.lane.b32.xlu0 %v7653_v57, %s4119_s10  ;;  %v2823_v57 = vrot.slane %v6527_v25, 1 }
 0x558   : > { %v2722_v33 = vpop.permute.xlu1 %2721  ;;  %2877 = vrot.lane.b32.xlu2 %v7654_v45, %s4119_s10 }
 0x559   : > { %2803 = vst.msk [vmem:[#allocation3 + $0x70] sm:$0xff] %vm1052_vm6, %v2722_v33  ;;  %v2726_v54 = vpop.permute.xlu0 %2725  ;;  %v2822_v33 = vrot.slane %v6531_v9, 1 }
 0x55a   : > { %2805 = vst.msk [vmem:[#allocation3 + $0x80] sm:$0xff] %vm1052_vm6, %v2726_v54  ;;  %v2742_v17 = vpop.permute.xlu2 %2741  ;;  %v6628_v54 = vld [vmem:[#allocation2 + $0x190] sm:$0x3] }
 0x55b   : > { %2813 = vst.msk [vmem:[#allocation3 + $0xc0] sm:$0xff] %vm1052_vm6, %v2742_v17 }
 0x55e   : > { %2881 = vrot.lane.b32.xlu1 %v7655_v1, %s4119_s10  ;;  %v2825_v1 = vrot.slane %v6628_v54, 1 }
 0x55f   : > { %2885 = vrot.lane.b32.xlu0 %v6212_v63, %s4119_s10  ;;  %v6634_v63 = vsel %vm534_vm1, %v2822_v33, %v2823_v57 }
 0x560   : > { %v2728_v10 = vpop.permute.xlu1 %2727  ;;  %2883 = vrot.lane.b32.xlu2 %v6204_v55, %s4119_s10  ;;  %7656 = vst [vmem:[#allocation29_spill] sm:$0xff] %v6634_v63  ;;  %v6641_v55 = vsel %vm534_vm1, %v2823_v57, %v2825_v1  ;;  %v7658_v57 = vld [vmem:[#allocation49_spill] sm:$0xff] }
 0x561   : > { %2806 = vst.msk [vmem:[#allocation3 + $0x88] sm:$0xff] %vm1052_vm6, %v2728_v10  ;;  %v2732_v45 = vpop.permute.xlu0 %2731 }
 0x562   : > { %2808 = vst.msk [vmem:[#allocation3 + $0x98] sm:$0xff] %vm1052_vm6, %v2732_v45  ;;  %v2748_v17 = vpop.permute.xlu2 %2747 }
 0x563   : > { %2816 = vst.msk [vmem:[#allocation3 + $0xd8] sm:$0xff] %vm1052_vm6, %v2748_v17 }
 0x564   : > { %7657 = vst [vmem:[#allocation37_spill] sm:$0xff] %v6641_v55 }
 0x566   : > { %2887 = vrot.lane.b32.xlu1 %v6634_v63, %s4119_s10 }
 0x567   : > { %2960 = vrot.lane.b32.xlu0 %v6228_v15, %s4120_s11 }
 0x568   : > { %v2734_v10 = vpop.permute.xlu1 %2733  ;;  %2889 = vrot.lane.b32.xlu2 %v6641_v55, %s4119_s10 }
 0x569   : > { %2809 = vst.msk [vmem:[#allocation3 + $0xa0] sm:$0xff] %vm1052_vm6, %v2734_v10  ;;  %v2738_v45 = vpop.permute.xlu0 %2737 }
 0x56a   : > { %2811 = vst.msk [vmem:[#allocation3 + $0xb0] sm:$0xff] %vm1052_vm6, %v2738_v45  ;;  %v2754_v33 = vpop.permute.xlu2 %2753 }
 0x56b   : > { %2819 = vst.msk [vmem:[#allocation3 + $0xf0] sm:$0xff] %vm1052_vm6, %v2754_v33 }
 0x56e   : > { %2962 = vrot.lane.b32.xlu1 %v6223_v18, %s4120_s11  ;;  %v7659_v18 = vld [vmem:[#allocation56_spill] sm:$0xff] }
 0x56f   : > { %2966 = vrot.lane.b32.xlu0 %v6250_v19, %s4120_s11 }
 0x570   : > { %v2740_v17 = vpop.permute.xlu1 %2739  ;;  %2964 = vrot.lane.b32.xlu2 %v7658_v57, %s4120_s11 }
 0x571   : > { %2812 = vst.msk [vmem:[#allocation3 + $0xb8] sm:$0xff] %vm1052_vm6, %v2740_v17  ;;  %v2744_v15 = vpop.permute.xlu0 %2743  ;;  %v7660_v17 = vld [vmem:[#allocation52_spill] sm:$0xff] }
 0x572   : > { %2814 = vst.msk [vmem:[#allocation3 + $0xc8] sm:$0xff] %vm1052_vm6, %v2744_v15  ;;  %v2830_v1 = vpop.permute.xlu2 %2829 }
 0x573   : > { %2924 = vst.msk [vmem:[#allocation3 + $0x8] sm:$0xff] %vm1187_vm7, %v2830_v1  ;;  %v7661_v1 = vld [vmem:[#allocation58_spill] sm:$0xff] }
 0x576   : > { %2968 = vrot.lane.b32.xlu1 %v6245_v40, %s4120_s11 }
 0x577   : > { %2972 = vrot.lane.b32.xlu0 %v6270_v23, %s4120_s11 }
 0x578   : > { %v2746_v10 = vpop.permute.xlu1 %2745  ;;  %2970 = vrot.lane.b32.xlu2 %v7659_v18, %s4120_s11 }
 0x579   : > { %2815 = vst.msk [vmem:[#allocation3 + $0xd0] sm:$0xff] %vm1052_vm6, %v2746_v10  ;;  %v2750_v45 = vpop.permute.xlu0 %2749 }
 0x57a   : > { %2817 = vst.msk [vmem:[#allocation3 + $0xe0] sm:$0xff] %vm1052_vm6, %v2750_v45  ;;  %v2836_v33 = vpop.permute.xlu2 %2835 }
 0x57b   : > { %2927 = vst.msk [vmem:[#allocation3 + $0x20] sm:$0xff] %vm1187_vm7, %v2836_v33  ;;  %v7662_v33 = vld [vmem:[#allocation67_spill] sm:$0xff] }
 0x57e   : > { %2974 = vrot.lane.b32.xlu1 %v7660_v17, %s4120_s11 }
 0x57f   : > { %2978 = vrot.lane.b32.xlu0 %v6291_v14, %s4120_s11 }
 0x580   : > { %v2752_v15 = vpop.permute.xlu1 %2751  ;;  %2976 = vrot.lane.b32.xlu2 %v7661_v1, %s4120_s11 }
 0x581   : > { %2818 = vst.msk [vmem:[#allocation3 + $0xe8] sm:$0xff] %vm1052_vm6, %v2752_v15  ;;  %v2756_v10 = vpop.permute.xlu0 %2755  ;;  %v7663_v15 = vld [vmem:[#allocation64_spill] sm:$0xff] }
 0x582   : > { %2820 = vst.msk [vmem:[#allocation3 + $0xf8] sm:$0xff] %vm1052_vm6, %v2756_v10  ;;  %v2842_v55 = vpop.permute.xlu2 %2841 }
 0x583   : > { %2930 = vst.msk [vmem:[#allocation3 + $0x38] sm:$0xff] %vm1187_vm7, %v2842_v55  ;;  %v7664_v55 = vld [vmem:[#allocation61_spill] sm:$0xff] }
 0x586   : > { %2980 = vrot.lane.b32.xlu1 %v6286_v43, %s4120_s11 }
 0x587   : > { %2984 = vrot.lane.b32.xlu0 %v7662_v33, %s4120_s11 }
 0x588   : > { %v2828_v45 = vpop.permute.xlu1 %2827  ;;  %2982 = vrot.lane.b32.xlu2 %v7663_v15, %s4120_s11  ;;  %v2956_v15 = vrot.slane %v6527_v25, 2 }
 0x589   : > { %2923 = vst.msk [vmem:[#allocation3] sm:$0xff] %vm1187_vm7, %v2828_v45  ;;  %v2832_v63 = vpop.permute.xlu0 %2831 }
 0x58a   : > { %2925 = vst.msk [vmem:[#allocation3 + $0x10] sm:$0xff] %vm1187_vm7, %v2832_v63  ;;  %v2848_v14 = vpop.permute.xlu2 %2847 }
 0x58b   : > { %2933 = vst.msk [vmem:[#allocation3 + $0x50] sm:$0xff] %vm1187_vm7, %v2848_v14  ;;  %v7665_v14 = vld [vmem:[#allocation74_spill] sm:$0xff] }
 0x58e   : > { %2986 = vrot.lane.b32.xlu1 %v7664_v55, %s4120_s11 }
 0x58f   : > { %2990 = vrot.lane.b32.xlu0 %v6331_v36, %s4120_s11 }
 0x590   : > { %v2834_v10 = vpop.permute.xlu1 %2833  ;;  %2988 = vrot.lane.b32.xlu2 %v6320_v53, %s4120_s11 }
 0x591   : > { %2926 = vst.msk [vmem:[#allocation3 + $0x18] sm:$0xff] %vm1187_vm7, %v2834_v10  ;;  %v2838_v45 = vpop.permute.xlu0 %2837 }
 0x592   : > { %2928 = vst.msk [vmem:[#allocation3 + $0x28] sm:$0xff] %vm1187_vm7, %v2838_v45  ;;  %v2854_v33 = vpop.permute.xlu2 %2853 }
 0x593   : > { %2936 = vst.msk [vmem:[#allocation3 + $0x68] sm:$0xff] %vm1187_vm7, %v2854_v33  ;;  %v7666_v33 = vld [vmem:[#allocation71_spill] sm:$0xff] }
 0x596   : > { %2992 = vrot.lane.b32.xlu1 %v6326_v34, %s4120_s11 }
 0x597   : > { %2996 = vrot.lane.b32.xlu0 %v6351_v11, %s4120_s11 }
 0x598   : > { %v2840_v63 = vpop.permute.xlu1 %2839  ;;  %2994 = vrot.lane.b32.xlu2 %v7665_v14, %s4120_s11 }
 0x599   : > { %2929 = vst.msk [vmem:[#allocation3 + $0x30] sm:$0xff] %vm1187_vm7, %v2840_v63  ;;  %v2844_v10 = vpop.permute.xlu0 %2843  ;;  %v7667_v63 = vld [vmem:[#allocation76_spill] sm:$0xff] }
 0x59a   : > { %2931 = vst.msk [vmem:[#allocation3 + $0x40] sm:$0xff] %vm1187_vm7, %v2844_v10  ;;  %v2860_v36 = vpop.permute.xlu2 %2859 }
 0x59b   : > { %2939 = vst.msk [vmem:[#allocation3 + $0x80] sm:$0xff] %vm1187_vm7, %v2860_v36  ;;  %v7668_v36 = vld [vmem:[#allocation77_spill] sm:$0xff] }
 0x59e   : > { %2998 = vrot.lane.b32.xlu1 %v7666_v33, %s4120_s11 }
 0x59f   : > { %3002 = vrot.lane.b32.xlu0 %v6374_v31, %s4120_s11 }
 0x5a0   : > { %v2846_v45 = vpop.permute.xlu1 %2845  ;;  %3000 = vrot.lane.b32.xlu2 %v7667_v63, %s4120_s11 }
 0x5a1   : > { %2932 = vst.msk [vmem:[#allocation3 + $0x48] sm:$0xff] %vm1187_vm7, %v2846_v45  ;;  %v2850_v34 = vpop.permute.xlu0 %2849  ;;  %v7669_v45 = vld [vmem:[#allocation22_spill] sm:$0xff] }
 0x5a2   : > { %2934 = vst.msk [vmem:[#allocation3 + $0x58] sm:$0xff] %vm1187_vm7, %v2850_v34  ;;  %v2866_v14 = vpop.permute.xlu2 %2865  ;;  %v7670_v34 = vld [vmem:[#allocation80_spill] sm:$0xff] }
 0x5a3   : > { %2942 = vst.msk [vmem:[#allocation3 + $0x98] sm:$0xff] %vm1187_vm7, %v2866_v14 }
 0x5a6   : > { %3004 = vrot.lane.b32.xlu1 %v7668_v36, %s4120_s11 }
 0x5a7   : > { %3008 = vrot.lane.b32.xlu0 %v6395_v32, %s4120_s11 }
 0x5a8   : > { %v2852_v10 = vpop.permute.xlu1 %2851  ;;  %3006 = vrot.lane.b32.xlu2 %v7669_v45, %s4120_s11 }
 0x5a9   : > { %2935 = vst.msk [vmem:[#allocation3 + $0x60] sm:$0xff] %vm1187_vm7, %v2852_v10  ;;  %v2856_v53 = vpop.permute.xlu0 %2855 }
 0x5aa   : > { %2937 = vst.msk [vmem:[#allocation3 + $0x70] sm:$0xff] %vm1187_vm7, %v2856_v53  ;;  %v2872_v55 = vpop.permute.xlu2 %2871  ;;  %v2955_v53 = vrot.slane %v6531_v9, 2 }
 0x5ab   : > { %2945 = vst.msk [vmem:[#allocation3 + $0xb0] sm:$0xff] %vm1187_vm7, %v2872_v55 }
 0x5ae   : > { %3010 = vrot.lane.b32.xlu1 %v7670_v34, %s4120_s11 }
 0x5af   : > { %3014 = vrot.lane.b32.xlu0 %v6418_v6, %s4120_s11  ;;  %v6734_v6 = vsel %vm744_vm3, %v2955_v53, %v2956_v15 }
 0x5b0   : > { %v2858_v14 = vpop.permute.xlu1 %2857  ;;  %3012 = vrot.lane.b32.xlu2 %v6407_v16, %s4120_s11  ;;  %7671 = vst [vmem:[#allocation41_spill] sm:$0xff] %v6734_v6 }
 0x5b1   : > { %2938 = vst.msk [vmem:[#allocation3 + $0x78] sm:$0xff] %vm1187_vm7, %v2858_v14  ;;  %v2862_v10 = vpop.permute.xlu0 %2861 }
 0x5b2   : > { %2940 = vst.msk [vmem:[#allocation3 + $0x88] sm:$0xff] %vm1187_vm7, %v2862_v10  ;;  %v2878_v55 = vpop.permute.xlu2 %2877  ;;  %v2958_v10 = vrot.slane %v6628_v54, 2 }
 0x5b3   : > { %2948 = vst.msk [vmem:[#allocation3 + $0xc8] sm:$0xff] %vm1187_vm7, %v2878_v55 }
 0x5b4   : > { %v6745_v53 = vsel %vm744_vm3, %v2956_v15, %v2958_v10 }
 0x5b6   : > { %3016 = vrot.lane.b32.xlu1 %v6413_v37, %s4120_s11 }
 0x5b7   : > { %3020 = vrot.lane.b32.xlu0 %v6734_v6, %s4120_s11 }
 0x5b8   : > { %v2864_v14 = vpop.permute.xlu1 %2863  ;;  %3018 = vrot.lane.b32.xlu2 %v6427_v30, %s4120_s11 }
 0x5b9   : > { %2941 = vst.msk [vmem:[#allocation3 + $0x90] sm:$0xff] %vm1187_vm7, %v2864_v14  ;;  %v2868_v25 = vpop.permute.xlu0 %2867 }
 0x5ba   : > { %2943 = vst.msk [vmem:[#allocation3 + $0xa0] sm:$0xff] %vm1187_vm7, %v2868_v25  ;;  %v2884_v55 = vpop.permute.xlu2 %2883 }
 0x5bb   : > { %2951 = vst.msk [vmem:[#allocation3 + $0xe0] sm:$0xff] %vm1187_vm7, %v2884_v55 }
 0x5be   : > { %3022 = vrot.lane.b32.xlu1 %v6745_v53, %s4120_s11 }
 0x5bf   : > { %3092 = vrot.lane.b32.xlu0 %v5805_v8, %s4121_s12 }
 0x5c0   : > { %v2870_v6 = vpop.permute.xlu1 %2869  ;;  %3090 = vrot.lane.b32.xlu2 %v5798_v59, %s4121_s12 }
 0x5c1   : > { %2944 = vst.msk [vmem:[#allocation3 + $0xa8] sm:$0xff] %vm1187_vm7, %v2870_v6  ;;  %v2874_v54 = vpop.permute.xlu0 %2873 }
 0x5c2   : > { %2946 = vst.msk [vmem:[#allocation3 + $0xb8] sm:$0xff] %vm1187_vm7, %v2874_v54  ;;  %v2890_v25 = vpop.permute.xlu2 %2889  ;;  %v3521_v54 = vld [vmem:[%s7242_s4 + $0x20] sm:$0xf] }
 0x5c3   : > { %2954 = vst.msk [vmem:[#allocation3 + $0xf8] sm:$0xff] %vm1187_vm7, %v2890_v25  ;;  %4079 = vmatpush.msk.msra.mxu3 %vm1888_vm11, %v3521_v54  ;;  %4037 = vmatpush.msk.msra.mxu1 %vm1888_vm11, %v3521_v54  ;;  %v7675_v25 = vld [vmem:[#allocation57_spill] sm:$0xff] }
 0x5c6   : > { %3094 = vrot.lane.b32.xlu1 %v5827_v2, %s4121_s12 }
 0x5c7   : > { %3098 = vrot.lane.b32.xlu0 %v5859_v60, %s4121_s12  ;;  %v7672_v60 = vld [vmem:[#allocation59_spill] sm:$0xff] }
 0x5c8   : > { %v2876_v15 = vpop.permute.xlu1 %2875  ;;  %3096 = vrot.lane.b32.xlu2 %v5836_v28, %s4121_s12 }
 0x5c9   : > { %2947 = vst.msk [vmem:[#allocation3 + $0xc0] sm:$0xff] %vm1187_vm7, %v2876_v15  ;;  %v2880_v8 = vpop.permute.xlu0 %2879  ;;  %v7676_v15 = vld [vmem:[#allocation34_spill] sm:$0xff] }
 0x5ca   : > { %2949 = vst.msk [vmem:[#allocation3 + $0xd0] sm:$0xff] %vm1187_vm7, %v2880_v8  ;;  %v2965_v59 = vpop.permute.xlu2 %2964 }
 0x5cb   : > { %3058 = vst.msk [vmem:[#allocation3 + $0x10] sm:$0xff] %vm1321_vm8, %v2965_v59 }
 0x5ce   : > { %3100 = vrot.lane.b32.xlu1 %v5873_v27, %s4121_s12 }
 0x5cf   : > { %3104 = vrot.lane.b32.xlu0 %v5914_v48, %s4121_s12 }
 0x5d0   : > { %v2882_v6 = vpop.permute.xlu1 %2881  ;;  %3102 = vrot.lane.b32.xlu2 %v5900_v42, %s4121_s12 }
 0x5d1   : > { %2950 = vst.msk [vmem:[#allocation3 + $0xd8] sm:$0xff] %vm1187_vm7, %v2882_v6  ;;  %v2886_v2 = vpop.permute.xlu0 %2885  ;;  %v3519_v6 = vld [vmem:[%s7242_s4 + $0x10] sm:$0xff] }
 0x5d2   : > { %2952 = vst.msk [vmem:[#allocation3 + $0xe8] sm:$0xff] %vm1187_vm7, %v2886_v2  ;;  %v2971_v28 = vpop.permute.xlu2 %2970  ;;  %v3518_v2 = vld [vmem:[%s7242_s4 + $0x8] sm:$0xff] }
 0x5d3   : > { %3061 = vst.msk [vmem:[#allocation3 + $0x28] sm:$0xff] %vm1321_vm8, %v2971_v28  ;;  %v7677_v28 = vld [vmem:[#allocation50_spill] sm:$0xff] }
 0x5d6   : > { %3106 = vrot.lane.b32.xlu1 %v7672_v60, %s4121_s12  ;;  %v3517_v60 = vld [vmem:[%s7242_s4] sm:$0xff] }
 0x5d7   : > { %3110 = vrot.lane.b32.xlu0 %v5990_v50, %s4121_s12 }
 0x5d8   : > { %v2888_v14 = vpop.permute.xlu1 %2887  ;;  %3108 = vrot.lane.b32.xlu2 %v5957_v0, %s4121_s12 }
 0x5d9   : > { %2953 = vst.msk [vmem:[#allocation3 + $0xf0] sm:$0xff] %vm1187_vm7, %v2888_v14  ;;  %v2961_v27 = vpop.permute.xlu0 %2960 }
 0x5da   : > { %3056 = vst.msk [vmem:[#allocation3] sm:$0xff] %vm1321_vm8, %v2961_v27  ;;  %v2977_v42 = vpop.permute.xlu2 %2976  ;;  %v7678_v27 = vld [vmem:[#allocation13_spill] sm:$0xff] }
 0x5db   : > { %3064 = vst.msk [vmem:[#allocation3 + $0x40] sm:$0xff] %vm1321_vm8, %v2977_v42 }
 0x5de   : > { %3112 = vrot.lane.b32.xlu1 %v6004_v13, %s4121_s12 }
 0x5df   : > { %3116 = vrot.lane.b32.xlu0 %v6055_v58, %s4121_s12 }
 0x5e0   : > { %v2963_v48 = vpop.permute.xlu1 %2962  ;;  %3114 = vrot.lane.b32.xlu2 %v6034_v20, %s4121_s12 }
 0x5e1   : > { %3057 = vst.msk [vmem:[#allocation3 + $0x8] sm:$0xff] %vm1321_vm8, %v2963_v48  ;;  %v2967_v50 = vpop.permute.xlu0 %2966 }
 0x5e2   : > { %3059 = vst.msk [vmem:[#allocation3 + $0x18] sm:$0xff] %vm1321_vm8, %v2967_v50  ;;  %v2983_v0 = vpop.permute.xlu2 %2982  ;;  %v7679_v50 = vld [vmem:[#allocation48_spill] sm:$0xff] }
 0x5e3   : > { %3067 = vst.msk [vmem:[#allocation3 + $0x58] sm:$0xff] %vm1321_vm8, %v2983_v0 }
 0x5e6   : > { %3118 = vrot.lane.b32.xlu1 %v5863_v22, %s4121_s12 }
 0x5e7   : > { %3122 = vrot.lane.b32.xlu0 %v5911_v44, %s4121_s12 }
 0x5e8   : > { %v2969_v10 = vpop.permute.xlu1 %2968  ;;  %3120 = vrot.lane.b32.xlu2 %v5897_v4, %s4121_s12 }
 0x5e9   : > { %3060 = vst.msk [vmem:[#allocation3 + $0x20] sm:$0xff] %vm1321_vm8, %v2969_v10  ;;  %v2973_v13 = vpop.permute.xlu0 %2972  ;;  %v7681_v10 = vld [vmem:[#allocation62_spill] sm:$0xff] }
 0x5ea   : > { %3062 = vst.msk [vmem:[#allocation3 + $0x30] sm:$0xff] %vm1321_vm8, %v2973_v13  ;;  %v2989_v20 = vpop.permute.xlu2 %2988 }
 0x5eb   : > { %3070 = vst.msk [vmem:[#allocation3 + $0x70] sm:$0xff] %vm1321_vm8, %v2989_v20 }
 0x5ee   : > { %3124 = vrot.lane.b32.xlu1 %v5941_v49, %s4121_s12 }
 0x5ef   : > { %3128 = vrot.lane.b32.xlu0 %v5987_v61, %s4121_s12 }
 0x5f0   : > { %v2975_v58 = vpop.permute.xlu1 %2974  ;;  %3126 = vrot.lane.b32.xlu2 %v5967_v24, %s4121_s12 }
 0x5f1   : > { %3063 = vst.msk [vmem:[#allocation3 + $0x38] sm:$0xff] %vm1321_vm8, %v2975_v58  ;;  %v2979_v22 = vpop.permute.xlu0 %2978 }
 0x5f2   : > { %3065 = vst.msk [vmem:[#allocation3 + $0x48] sm:$0xff] %vm1321_vm8, %v2979_v22  ;;  %v2995_v4 = vpop.permute.xlu2 %2994  ;;  %v7682_v22 = vld [vmem:[#allocation51_spill] sm:$0xff] }
 0x5f3   : > { %3073 = vst.msk [vmem:[#allocation3 + $0x88] sm:$0xff] %vm1321_vm8, %v2995_v4  ;;  %v7683_v4 = vld [vmem:[#allocation81_spill] sm:$0xff] }
 0x5f6   : > { %3130 = vrot.lane.b32.xlu1 %v6001_v47, %s4121_s12 }
 0x5f7   : > { %3256 = vrot.lane.b32.xlu0 %v7646_v52, %s4122_s13 }
 0x5f8   : > { %v2981_v44 = vpop.permute.xlu1 %2980  ;;  %3132 = vrot.lane.b32.xlu2 %v6030_v62, %s4121_s12 }
 0x5f9   : > { %3066 = vst.msk [vmem:[#allocation3 + $0x50] sm:$0xff] %vm1321_vm8, %v2981_v44  ;;  %v2985_v49 = vpop.permute.xlu0 %2984 }
 0x5fa   : > { %3068 = vst.msk [vmem:[#allocation3 + $0x60] sm:$0xff] %vm1321_vm8, %v2985_v49  ;;  %v3001_v24 = vpop.permute.xlu2 %3000 }
 0x5fb   : > { %3076 = vst.msk [vmem:[#allocation3 + $0xa0] sm:$0xff] %vm1321_vm8, %v3001_v24  ;;  %v7684_v24 = vld [vmem:[#allocation60_spill] sm:$0xff] }
 0x5fe   : > { %3389 = vrot.lane.b32.xlu1 %v6351_v11, %s4123_s14 }
 0x5ff   : > { %3224 = vrot.lane.b32.xlu0 %v5820_v38, %s4122_s13 }
 0x600   : > { %v2987_v61 = vpop.permute.xlu1 %2986  ;;  %3134 = vrot.lane.b32.xlu2 %v6065_v41, %s4121_s12 }
 0x601   : > { %3069 = vst.msk [vmem:[#allocation3 + $0x68] sm:$0xff] %vm1321_vm8, %v2987_v61  ;;  %v2991_v47 = vpop.permute.xlu0 %2990 }
 0x602   : > { %3071 = vst.msk [vmem:[#allocation3 + $0x78] sm:$0xff] %vm1321_vm8, %v2991_v47  ;;  %v3007_v62 = vpop.permute.xlu2 %3006  ;;  %v7686_v47 = vld [vmem:[#allocation45_spill] sm:$0xff] }
 0x603   : > { %3079 = vst.msk [vmem:[#allocation3 + $0xb8] sm:$0xff] %vm1321_vm8, %v3007_v62 }
 0x606   : > { %3258 = vrot.lane.b32.xlu1 %v7648_v12, %s4122_s13 }
 0x607   : > { %3391 = vrot.lane.b32.xlu0 %v7666_v33, %s4123_s14 }
 0x608   : > { %v2993_v52 = vpop.permute.xlu1 %2992  ;;  %3357 = vrot.lane.b32.xlu2 %v7658_v57, %s4123_s14 }
 0x609   : > { %3072 = vst.msk [vmem:[#allocation3 + $0x80] sm:$0xff] %vm1321_vm8, %v2993_v52  ;;  %v2997_v38 = vpop.permute.xlu0 %2996 }
 0x60a   : > { %3074 = vst.msk [vmem:[#allocation3 + $0x90] sm:$0xff] %vm1321_vm8, %v2997_v38  ;;  %v3013_v41 = vpop.permute.xlu2 %3012 }
 0x60b   : > { %3082 = vst.msk [vmem:[#allocation3 + $0xd0] sm:$0xff] %vm1321_vm8, %v3013_v41  ;;  %v7687_v41 = vld [vmem:[#allocation63_spill] sm:$0xff] }
 0x60e   : > { %3226 = vrot.lane.b32.xlu1 %v5817_v29, %s4122_s13 }
 0x60f   : > { %3359 = vrot.lane.b32.xlu0 %v6250_v19, %s4123_s14 }
 0x610   : > { %v2999_v11 = vpop.permute.xlu1 %2998  ;;  %3260 = vrot.lane.b32.xlu2 %v7647_v35, %s4122_s13 }
 0x611   : > { %3075 = vst.msk [vmem:[#allocation3 + $0x98] sm:$0xff] %vm1321_vm8, %v2999_v11  ;;  %v3003_v12 = vpop.permute.xlu0 %3002 }
 0x612   : > { %3077 = vst.msk [vmem:[#allocation3 + $0xa8] sm:$0xff] %vm1321_vm8, %v3003_v12  ;;  %v3019_v57 = vpop.permute.xlu2 %3018  ;;  %v7688_v12 = vld [vmem:[#allocation54_spill] sm:$0xff] }
 0x613   : > { %3085 = vst.msk [vmem:[#allocation3 + $0xe8] sm:$0xff] %vm1321_vm8, %v3019_v57 }
 0x616   : > { %3393 = vrot.lane.b32.xlu1 %v7667_v63, %s4123_s14 }
 0x617   : > { %3262 = vrot.lane.b32.xlu0 %v7649_v46, %s4122_s13 }
 0x618   : > { %v3005_v33 = vpop.permute.xlu1 %3004  ;;  %3228 = vrot.lane.b32.xlu2 %v5852_v3, %s4122_s13 }
 0x619   : > { %3078 = vst.msk [vmem:[#allocation3 + $0xb0] sm:$0xff] %vm1321_vm8, %v3005_v33  ;;  %v3009_v29 = vpop.permute.xlu0 %3008 }
 0x61a   : > { %3080 = vst.msk [vmem:[#allocation3 + $0xc0] sm:$0xff] %vm1321_vm8, %v3009_v29  ;;  %v3091_v19 = vpop.permute.xlu2 %3090 }
 0x61b   : > { %3186 = vst.msk [vmem:[#allocation3] sm:$0xff] %vm1452_vm9, %v3091_v19 }
 0x61e   : > { %3361 = vrot.lane.b32.xlu1 %v6245_v40, %s4123_s14 }
 0x61f   : > { %3230 = vrot.lane.b32.xlu0 %v5847_v26, %s4122_s13 }
 0x620   : > { %v3011_v35 = vpop.permute.xlu1 %3010  ;;  %3395 = vrot.lane.b32.xlu2 %v6374_v31, %s4123_s14 }
 0x621   : > { %3081 = vst.msk [vmem:[#allocation3 + $0xc8] sm:$0xff] %vm1321_vm8, %v3011_v35  ;;  %v3015_v46 = vpop.permute.xlu0 %3014  ;;  %v7690_v35 = vld [vmem:[#allocation67_spill] sm:$0xff] }
 0x622   : > { %3083 = vst.msk [vmem:[#allocation3 + $0xd8] sm:$0xff] %vm1321_vm8, %v3015_v46  ;;  %v3097_v3 = vpop.permute.xlu2 %3096 }
 0x623   : > { %3189 = vst.msk [vmem:[#allocation3 + $0x18] sm:$0xff] %vm1452_vm9, %v3097_v3 }
 0x626   : > { %3264 = vrot.lane.b32.xlu1 %v7651_v39, %s4122_s13 }
 0x627   : > { %3397 = vrot.lane.b32.xlu0 %v7668_v36, %s4123_s14 }
 0x628   : > { %v3017_v63 = vpop.permute.xlu1 %3016  ;;  %3363 = vrot.lane.b32.xlu2 %v7659_v18, %s4123_s14 }
 0x629   : > { %3084 = vst.msk [vmem:[#allocation3 + $0xe0] sm:$0xff] %vm1321_vm8, %v3017_v63  ;;  %v3021_v26 = vpop.permute.xlu0 %3020 }
 0x62a   : > { %3086 = vst.msk [vmem:[#allocation3 + $0xf0] sm:$0xff] %vm1321_vm8, %v3021_v26  ;;  %v3103_v40 = vpop.permute.xlu2 %3102 }
 0x62b   : > { %3192 = vst.msk [vmem:[#allocation3 + $0x30] sm:$0xff] %vm1452_vm9, %v3103_v40  ;;  %v7691_v40 = vld [vmem:[#allocation29_spill] sm:$0xff] }
 0x62e   : > { %3232 = vrot.lane.b32.xlu1 %v5890_v51, %s4122_s13 }
 0x62f   : > { %3365 = vrot.lane.b32.xlu0 %v6270_v23, %s4123_s14 }
 0x630   : > { %v3023_v31 = vpop.permute.xlu1 %3022  ;;  %3266 = vrot.lane.b32.xlu2 %v7650_v56, %s4122_s13 }
 0x631   : > { %3087 = vst.msk [vmem:[#allocation3 + $0xf8] sm:$0xff] %vm1321_vm8, %v3023_v31  ;;  %v3093_v39 = vpop.permute.xlu0 %3092 }
 0x632   : > { %3187 = vst.msk [vmem:[#allocation3 + $0x8] sm:$0xff] %vm1452_vm9, %v3093_v39  ;;  %v3109_v18 = vpop.permute.xlu2 %3108 }
 0x633   : > { %3195 = vst.msk [vmem:[#allocation3 + $0x48] sm:$0xff] %vm1452_vm9, %v3109_v18 }
 0x636   : > { %3399 = vrot.lane.b32.xlu1 %v7669_v45, %s4123_s14  ;;  %v7673_v45 = vld [vmem:[#allocation55_spill] sm:$0xff] }
 0x637   : > { %3268 = vrot.lane.b32.xlu0 %v7652_v5, %s4122_s13 }
 0x638   : > { %v3095_v36 = vpop.permute.xlu1 %3094  ;;  %3234 = vrot.lane.b32.xlu2 %v7636_v21, %s4122_s13 }
 0x639   : > { %3188 = vst.msk [vmem:[#allocation3 + $0x10] sm:$0xff] %vm1452_vm9, %v3095_v36  ;;  %v3099_v51 = vpop.permute.xlu0 %3098 }
 0x63a   : > { %3190 = vst.msk [vmem:[#allocation3 + $0x20] sm:$0xff] %vm1452_vm9, %v3099_v51  ;;  %v3115_v56 = vpop.permute.xlu2 %3114  ;;  %v7694_v51 = vld [vmem:[#allocation82_spill] sm:$0xff] }
 0x63b   : > { %3198 = vst.msk [vmem:[#allocation3 + $0x60] sm:$0xff] %vm1452_vm9, %v3115_v56 }
 0x63e   : > { %3367 = vrot.lane.b32.xlu1 %v7660_v17, %s4123_s14 }
 0x63f   : > { %3136 = vrot.lane.b32.xlu0 %v6090_v7, %s4121_s12  ;;  %v7674_v7 = vld [vmem:[#allocation43_spill] sm:$0xff] }
 0x640   : > { %v3101_v23 = vpop.permute.xlu1 %3100  ;;  %3401 = vrot.lane.b32.xlu2 %v6395_v32, %s4123_s14 }
 0x641   : > { %3191 = vst.msk [vmem:[#allocation3 + $0x28] sm:$0xff] %vm1452_vm9, %v3101_v23  ;;  %v3105_v5 = vpop.permute.xlu0 %3104  ;;  %v7695_v23 = vld [vmem:[#allocation41_spill] sm:$0xff] }
 0x642   : > { %3193 = vst.msk [vmem:[#allocation3 + $0x38] sm:$0xff] %vm1452_vm9, %v3105_v5  ;;  %v3121_v21 = vpop.permute.xlu2 %3120 }
 0x643   : > { %3201 = vst.msk [vmem:[#allocation3 + $0x78] sm:$0xff] %vm1452_vm9, %v3121_v21 }
 0x646   : > { %3236 = vrot.lane.b32.xlu1 %v7673_v45, %s4122_s13  ;;  %v7696_v45 = vld [vmem:[#allocation73_spill] sm:$0xff] }
 0x647   : > { %3369 = vrot.lane.b32.xlu0 %v7661_v1, %s4123_s14 }
 0x648   : > { %v3107_v55 = vpop.permute.xlu1 %3106  ;;  %3270 = vrot.lane.b32.xlu2 %v7674_v7, %s4122_s13  ;;  %v7697_v7 = vld [vmem:[#allocation69_spill] sm:$0xff] }
 0x649   : > { %3194 = vst.msk [vmem:[#allocation3 + $0x40] sm:$0xff] %vm1452_vm9, %v3107_v55  ;;  %v3111_v17 = vpop.permute.xlu0 %3110 }
 0x64a   : > { %3196 = vst.msk [vmem:[#allocation3 + $0x50] sm:$0xff] %vm1452_vm9, %v3111_v17  ;;  %v3127_v32 = vpop.permute.xlu2 %3126 }
 0x64b   : > { %3204 = vst.msk [vmem:[#allocation3 + $0x90] sm:$0xff] %vm1452_vm9, %v3127_v32  ;;  %v7698_v32 = vld [vmem:[#allocation37_spill] sm:$0xff] }
 0x64e   : > { %3403 = vrot.lane.b32.xlu1 %v7670_v34, %s4123_s14  ;;  %v3520_v34 = vld [vmem:[%s7242_s4 + $0x18] sm:$0xff] }
 0x64f   : > { %3238 = vrot.lane.b32.xlu0 %v7675_v25, %s4122_s13  ;;  %4080 = vmatpush.msra.mxu3 %v3520_v34 }
 0x650   : > { %v3113_v1 = vpop.permute.xlu1 %3112  ;;  %3138 = vrot.lane.b32.xlu2 %v7676_v15, %s4121_s12  ;;  %3633 = vmatpush.msra.mxu1 %v3520_v34  ;;  %v2193_v15 = vld [vmem:[#allocation2 + $0x1a0] sm:$0xff]  ;;  %v2192_v34 = vld [vmem:[#allocation2 + $0x198] sm:$0xff] }
 0x651   : > { %3197 = vst.msk [vmem:[#allocation3 + $0x58] sm:$0xff] %vm1452_vm9, %v3113_v1  ;;  %v3117_v8 = vpop.permute.xlu0 %3116  ;;  %4081 = vmatpush.msra.mxu3 %v3519_v6 }
 0x652   : > { %3199 = vst.msk [vmem:[#allocation3 + $0x68] sm:$0xff] %vm1452_vm9, %v3117_v8  ;;  %v3133_v59 = vpop.permute.xlu2 %3132  ;;  %3634 = vmatpush.msra.mxu1 %v3519_v6  ;;  %v3219_v8 = vrot.slane %v2192_v34, 1 }
 0x653   : > { %3207 = vst.msk [vmem:[#allocation3 + $0xa8] sm:$0xff] %vm1452_vm9, %v3133_v59  ;;  %4082 = vmatpush.msra.mxu3 %v3518_v2  ;;  %v3220_v59 = vrot.slane %v2193_v15, 1 }
 0x654   : > { %3635 = vmatpush.msra.mxu1 %v3518_v2  ;;  %v7699_v2 = vld [vmem:[#allocation75_spill] sm:$0xff] }
 0x655   : > { %4083 = vmatpush.msra.mxu3 %v3517_v60 }
 0x656   : > { %3272 = vrot.lane.b32.xlu1 %v7677_v28, %s4122_s13  ;;  %3636 = vmatpush.msra.mxu1 %v3517_v60  ;;  %v3352_v60 = vrot.slane %v2192_v34, 2 }
 0x657   : > { %3405 = vrot.lane.b32.xlu0 %v6407_v16, %s4123_s14  ;;  %v7680_v16 = vld [vmem:[#allocation39_spill] sm:$0xff] }
 0x658   : > { %v3119_v14 = vpop.permute.xlu1 %3118  ;;  %3371 = vrot.lane.b32.xlu2 %v7678_v27, %s4123_s14 }
 0x659   : > { %3200 = vst.msk [vmem:[#allocation3 + $0x70] sm:$0xff] %vm1452_vm9, %v3119_v14  ;;  %v3123_v42 = vpop.permute.xlu0 %3122  ;;  %v3353_v14 = vrot.slane %v2193_v15, 2 }
 0x65a   : > { %3202 = vst.msk [vmem:[#allocation3 + $0x80] sm:$0xff] %vm1452_vm9, %v3123_v42  ;;  %v3135_v48 = vpop.permute.xlu2 %3134 }
 0x65b   : > { %3208 = vst.msk [vmem:[#allocation3 + $0xb0] sm:$0xff] %vm1452_vm9, %v3135_v48  ;;  %v3221_v48 = vsel %vm534_vm1, %v3219_v8, %v3220_v59 }
 0x65e   : > { %3140 = vrot.lane.b32.xlu1 %v7679_v50, %s4121_s12  ;;  %v3354_v50 = vsel %vm744_vm3, %v3352_v60, %v3353_v14 }
 0x65f   : > { %3274 = vrot.lane.b32.xlu0 %v7680_v16, %s4122_s13 }
 0x660   : > { %v3125_v0 = vpop.permute.xlu1 %3124  ;;  %3240 = vrot.lane.b32.xlu2 %v7681_v10, %s4122_s13  ;;  %v7700_v10 = vld [vmem:[#allocation72_spill] sm:$0xff] }
 0x661   : > { %3203 = vst.msk [vmem:[#allocation3 + $0x88] sm:$0xff] %vm1452_vm9, %v3125_v0  ;;  %v3129_v13 = vpop.permute.xlu0 %3128  ;;  %v2194_v0 = vld [vmem:[#allocation2 + $0x1a8] sm:$0x3] }
 0x662   : > { %3205 = vst.msk [vmem:[#allocation3 + $0x98] sm:$0xff] %vm1452_vm9, %v3129_v13  ;;  %v3358_v20 = vpop.permute.xlu2 %3357  ;;  %v3222_v13 = vrot.slane %v2194_v0, 1 }
 0x666   : > { %3373 = vrot.lane.b32.xlu1 %v6286_v43, %s4123_s14  ;;  %v7685_v43 = vld [vmem:[#allocation64_spill] sm:$0xff] }
 0x667   : > { %3142 = vrot.lane.b32.xlu0 %v7682_v22, %s4121_s12 }
 0x668   : > { %v3131_v58 = vpop.permute.xlu1 %3130  ;;  %3407 = vrot.lane.b32.xlu2 %v7683_v4, %s4123_s14  ;;  %v3223_v4 = vsel %vm534_vm1, %v3220_v59, %v3222_v13  ;;  %v7096_v59 = vld [vmem:[%s7243_s5] ss:$0 sm:$0xff] }
 0x669   : > { %3206 = vst.msk [vmem:[#allocation3 + $0xa0] sm:$0xff] %vm1452_vm9, %v3131_v58  ;;  %v3257_v44 = vpop.permute.xlu0 %3256 }
 0x66a   : > { %3336 = vst.msk [vmem:[#allocation3 + $0x80] sm:$0xff] %vm1587_vm10, %v3257_v44  ;;  %v3261_v49 = vpop.permute.xlu2 %3260 }
 0x66b   : > { %3338 = vst.msk [vmem:[#allocation3 + $0x90] sm:$0xff] %vm1587_vm10, %v3261_v49 }
 0x66e   : > { %3242 = vrot.lane.b32.xlu1 %v7684_v24, %s4122_s13  ;;  %v7701_v24 = vld [vmem:[#allocation70_spill] sm:$0xff] }
 0x66f   : > { %3375 = vrot.lane.b32.xlu0 %v7685_v43, %s4123_s14 }
 0x670   : > { %v3390_v61 = vpop.permute.xlu1 %3389  ;;  %3276 = vrot.lane.b32.xlu2 %v7686_v47, %s4122_s13  ;;  %v3355_v47 = vrot.slane %v2194_v0, 2  ;;  %v7705_v0 = vld [vmem:[#allocation4_spill] sm:$0xff] }
 0x671   : > { %3469 = vst.msk [vmem:[#allocation3 + $0x80] sm:$0xff] %vm1721_vm12, %v3390_v61  ;;  %v3225_v62 = vpop.permute.xlu0 %3224 }
 0x672   : > { %3320 = vst.msk [vmem:[#allocation3] sm:$0xff] %vm1587_vm10, %v3225_v62  ;;  %v3229_v52 = vpop.permute.xlu2 %3228  ;;  %v7702_v62 = vld [vmem:[#allocation66_spill] sm:$0xff] }
 0x673   : > { %3453 = vst.msk [vmem:[#allocation3] sm:$0xff] %vm1721_vm12, %v3358_v20 }
 0x674   : > { %3322 = vst.msk [vmem:[#allocation3 + $0x10] sm:$0xff] %vm1587_vm10, %v3229_v52  ;;  %v3356_v52 = vsel %vm744_vm3, %v3353_v14, %v3355_v47 }
 0x676   : > { %3409 = vrot.lane.b32.xlu1 %v6413_v37, %s4123_s14  ;;  %v7689_v37 = vld [vmem:[#allocation53_spill] sm:$0xff] }
 0x677   : > { %3244 = vrot.lane.b32.xlu0 %v7687_v41, %s4122_s13  ;;  %v7703_v41 = vld [vmem:[#allocation19_spill] sm:$0xff] }
 0x678   : > { %v3259_v38 = vpop.permute.xlu1 %3258  ;;  %v3501_v11 = vld [vmem:[#allocation3 + $0x80] sm:$0xff]  ;;  %3144 = vrot.lane.b32.xlu2 %v7688_v12, %s4121_s12 }
 0x679   : > { %3337 = vst.msk [vmem:[#allocation3 + $0x88] sm:$0xff] %vm1587_vm10, %v3259_v38  ;;  %4054 = vmatmul.msk.f32.vlgmr.msra.gmra.mxu3 %vm1791_vm13, %v3501_v11  ;;  %v3392_v57 = vpop.permute.xlu0 %3391 }
 0x67a   : > { %3470 = vst.msk [vmem:[#allocation3 + $0x88] sm:$0xff] %vm1721_vm12, %v3392_v57  ;;  %v3396_v33 = vpop.permute.xlu2 %3395  ;;  %v3485_v29 = vld [vmem:[#allocation3] sm:$0xff] }
 0x67b   : > { %4038 = vmatmul.msk.f32.vlgmr.msra.gmra.mxu1 %vm1791_vm13, %v3485_v29  ;;  %v7704_v29 = vld [vmem:[#allocation74_spill] sm:$0xff] }
 0x67e   : > { %3278 = vrot.lane.b32.xlu1 %v7689_v37, %s4122_s13 }
 0x67f   : > { %3411 = vrot.lane.b32.xlu0 %v6427_v30, %s4123_s14  ;;  %v7692_v30 = vld [vmem:[#allocation65_spill] sm:$0xff] }
 0x680   : > { %v3227_v19 = vpop.permute.xlu1 %3226  ;;  %3377 = vrot.lane.b32.xlu2 %v7690_v35, %s4123_s14 }
 0x681   : > { %3321 = vst.msk [vmem:[#allocation3 + $0x8] sm:$0xff] %vm1587_vm10, %v3227_v19  ;;  %v3360_v46 = vpop.permute.xlu0 %3359  ;;  %v3502_v3 = vld [vmem:[#allocation3 + $0x88] sm:$0xff] }
 0x682   : > { %3454 = vst.msk [vmem:[#allocation3 + $0x8] sm:$0xff] %vm1721_vm12, %v3360_v46  ;;  %v3364_v63 = vpop.permute.xlu2 %3363  ;;  %4055 = vmatmul.msk.f32.gmra.mxu3 %vm1791_vm13, %v3502_v3 }
 0x686   : > { %3146 = vrot.lane.b32.xlu1 %v6531_v9, %s4121_s12  ;;  %v7693_v9 = vld [vmem:[#allocation61_spill] sm:$0xff] }
 0x687   : > { %3280 = vrot.lane.b32.xlu0 %v7691_v40, %s4122_s13 }
 0x688   : > { %v3394_v26 = vpop.permute.xlu1 %3393  ;;  %3246 = vrot.lane.b32.xlu2 %v7692_v30, %s4122_s13 }
 0x689   : > { %3471 = vst.msk [vmem:[#allocation3 + $0x90] sm:$0xff] %vm1721_vm12, %v3394_v26  ;;  %v3263_v31 = vpop.permute.xlu0 %3262  ;;  %v3486_v39 = vld [vmem:[#allocation3 + $0x8] sm:$0xff] }
 0x68a   : > { %3339 = vst.msk [vmem:[#allocation3 + $0x98] sm:$0xff] %vm1587_vm10, %v3263_v31  ;;  %v3267_v18 = vpop.permute.xlu2 %3266  ;;  %4039 = vmatmul.msk.f32.gmra.mxu1 %vm1791_vm13, %v3486_v39 }
 0x68b   : > { %3472 = vst.msk [vmem:[#allocation3 + $0x98] sm:$0xff] %vm1721_vm12, %v3396_v33 }
 0x68c   : > { %3341 = vst.msk [vmem:[#allocation3 + $0xa8] sm:$0xff] %vm1587_vm10, %v3267_v18 }
 0x68e   : > { %3379 = vrot.lane.b32.xlu1 %v7693_v9, %s4123_s14 }
 0x68f   : > { %3148 = vrot.lane.b32.xlu0 %v7694_v51, %s4121_s12 }
 0x690   : > { %v3362_v36 = vpop.permute.xlu1 %3361  ;;  %v3503_v56 = vld [vmem:[#allocation3 + $0x90] sm:$0xff]  ;;  %3413 = vrot.lane.b32.xlu2 %v7695_v23, %s4123_s14 }
 0x691   : > { %3455 = vst.msk [vmem:[#allocation3 + $0x10] sm:$0xff] %vm1721_vm12, %v3362_v36  ;;  %4056 = vmatmul.msk.f32.gmra.mxu3 %vm1791_vm13, %v3503_v56  ;;  %v3231_v5 = vpop.permute.xlu0 %3230 }
 0x692   : > { %3323 = vst.msk [vmem:[#allocation3 + $0x18] sm:$0xff] %vm1587_vm10, %v3231_v5  ;;  %v3235_v21 = vpop.permute.xlu2 %3234  ;;  %v3504_v54 = vld [vmem:[#allocation3 + $0x98] sm:$0xff] }
 0x693   : > { %3456 = vst.msk [vmem:[#allocation3 + $0x18] sm:$0xff] %vm1721_vm12, %v3364_v63 }
 0x694   : > { %3325 = vst.msk [vmem:[#allocation3 + $0x28] sm:$0xff] %vm1587_vm10, %v3235_v21 }
 0x696   : > { %3248 = vrot.lane.b32.xlu1 %v7696_v45, %s4122_s13 }
 0x697   : > { %3381 = vrot.lane.b32.xlu0 %v7697_v7, %s4123_s14 }
 0x698   : > { %v3265_v55 = vpop.permute.xlu1 %3264  ;;  %v3487_v17 = vld [vmem:[#allocation3 + $0x10] sm:$0xff]  ;;  %3282 = vrot.lane.b32.xlu2 %v7698_v32, %s4122_s13 }
 0x699   : > { %3340 = vst.msk [vmem:[#allocation3 + $0xa0] sm:$0xff] %vm1587_vm10, %v3265_v55  ;;  %4040 = vmatmul.msk.f32.gmra.mxu1 %vm1791_vm13, %v3487_v17  ;;  %4057 = vmatmul.msk.f32.gmra.mxu3 %vm1791_vm13, %v3504_v54  ;;  %v3398_v1 = vpop.permute.xlu0 %3397 }
 0x69a   : > { %3473 = vst.msk [vmem:[#allocation3 + $0xa0] sm:$0xff] %vm1721_vm12, %v3398_v1  ;;  %v3402_v25 = vpop.permute.xlu2 %3401  ;;  %v3488_v28 = vld [vmem:[#allocation3 + $0x18] sm:$0xff] }
 0x69e   : > { %3415 = vrot.lane.b32.xlu1 %v6745_v53, %s4123_s14 }
 0x69f   : > { %3250 = vrot.lane.b32.xlu0 %v7699_v2, %s4122_s13  ;;  %v7101_v2 = vld [vmem:[%s7244_s6] ss:$0 sm:$0xff] }
 0x6a0   : > { %v3233_v6 = vpop.permute.xlu1 %3232  ;;  %3150 = vrot.lane.b32.xlu2 %v2192_v34, %s4121_s12 }
 0x6a1   : > { %3324 = vst.msk [vmem:[#allocation3 + $0x20] sm:$0xff] %vm1587_vm10, %v3233_v6  ;;  %4041 = vmatmul.msk.f32.gmra.mxu1 %vm1791_vm13, %v3488_v28  ;;  %v3366_v27 = vpop.permute.xlu0 %3365  ;;  %v3505_v42 = vld [vmem:[#allocation3 + $0xa0] sm:$0xff] }
 0x6a2   : > { %3457 = vst.msk [vmem:[#allocation3 + $0x20] sm:$0xff] %vm1721_vm12, %v3366_v27  ;;  %v3271_v53 = vpop.permute.xlu2 %3270  ;;  %4058 = vmatmul.msk.f32.gmra.mxu3 %vm1791_vm13, %v3505_v42 }
 0x6a6   : > { %3284 = vrot.lane.b32.xlu1 %v3221_v48, %s4122_s13 }
 0x6a7   : > { %3417 = vrot.lane.b32.xlu0 %v3354_v50, %s4123_s14 }
 0x6a8   : > { %v3400_v16 = vpop.permute.xlu1 %3399  ;;  %3383 = vrot.lane.b32.xlu2 %v7700_v10, %s4123_s14 }
 0x6a9   : > { %3474 = vst.msk [vmem:[#allocation3 + $0xa8] sm:$0xff] %vm1721_vm12, %v3400_v16  ;;  %v3269_v20 = vpop.permute.xlu0 %3268  ;;  %v3489_v58 = vld [vmem:[#allocation3 + $0x20] sm:$0xff] }
 0x6aa   : > { %3342 = vst.msk [vmem:[#allocation3 + $0xb0] sm:$0xff] %vm1587_vm10, %v3269_v20  ;;  %v3139_v22 = vpop.permute.xlu2 %3138  ;;  %4042 = vmatmul.msk.f32.gmra.mxu1 %vm1791_vm13, %v3489_v58  ;;  %v7706_v58 = vld [vmem:[#allocation20_spill] sm:$0xff] }
 0x6ab   : > { %3475 = vst.msk [vmem:[#allocation3 + $0xb0] sm:$0xff] %vm1721_vm12, %v3402_v25 }
 0x6ac   : > { %3210 = vst.msk [vmem:[#allocation3 + $0xc0] sm:$0xff] %vm1452_vm9, %v3139_v22 }
 0x6ae   : > { %3152 = vrot.lane.b32.xlu1 %v2193_v15, %s4121_s12 }
 0x6af   : > { %3286 = vrot.lane.b32.xlu0 %v3223_v4, %s4122_s13 }
 0x6b0   : > { %v3368_v44 = vpop.permute.xlu1 %3367  ;;  %v3506_v49 = vld [vmem:[#allocation3 + $0xa8] sm:$0xff]  ;;  %3252 = vrot.lane.b32.xlu2 %v7701_v24, %s4122_s13 }
 0x6b1   : > { %3458 = vst.msk [vmem:[#allocation3 + $0x28] sm:$0xff] %vm1721_vm12, %v3368_v44  ;;  %4059 = vmatmul.msk.f32.gmra.mxu3 %vm1791_vm13, %v3506_v49  ;;  %v3137_v61 = vpop.permute.xlu0 %3136 }
 0x6b2   : > { %3209 = vst.msk [vmem:[#allocation3 + $0xb8] sm:$0xff] %vm1452_vm9, %v3137_v61  ;;  %v3372_v43 = vpop.permute.xlu2 %3371  ;;  %v3507_v12 = vld [vmem:[#allocation3 + $0xb0] sm:$0xff] }
 0x6b3   : > { %3343 = vst.msk [vmem:[#allocation3 + $0xb8] sm:$0xff] %vm1587_vm10, %v3271_v53 }
 0x6b6   : > { %3385 = vrot.lane.b32.xlu1 %v7702_v62, %s4123_s14 }
 0x6b7   : > { %3254 = vrot.lane.b32.xlu0 %v7703_v41, %s4122_s13 }
 0x6b8   : > { %v3237_v38 = vpop.permute.xlu1 %3236  ;;  %v3490_v11 = vld [vmem:[#allocation3 + $0x28] sm:$0xff]  ;;  %3419 = vrot.lane.b32.xlu2 %v3356_v52, %s4123_s14 }
 0x6b9   : > { %3326 = vst.msk [vmem:[#allocation3 + $0x30] sm:$0xff] %vm1587_vm10, %v3237_v38  ;;  %4043 = vmatmul.msk.f32.gmra.mxu1 %vm1791_vm13, %v3490_v11  ;;  %4060 = vmatmul.msk.f32.gmra.mxu3 %vm1791_vm13, %v3507_v12  ;;  %v3370_v57 = vpop.permute.xlu0 %3369 }
 0x6ba   : > { %3459 = vst.msk [vmem:[#allocation3 + $0x30] sm:$0xff] %vm1721_vm12, %v3370_v57  ;;  %v3241_v33 = vpop.permute.xlu2 %3240 }
 0x6bb   : > { %3328 = vst.msk [vmem:[#allocation3 + $0x40] sm:$0xff] %vm1587_vm10, %v3241_v33  ;;  %v7707_v33 = vld [vmem:[#allocation21_spill] sm:$0xff] }
 0x6be   : > { %3387 = vrot.lane.b32.xlu1 %v7704_v29, %s4123_s14 }
 0x6c0   : > { %v3404_v37 = vpop.permute.xlu1 %3403 }
 0x6c1   : > { %3476 = vst.msk [vmem:[#allocation3 + $0xb8] sm:$0xff] %vm1721_vm12, %v3404_v37  ;;  %v3239_v19 = vpop.permute.xlu0 %3238  ;;  %v3491_v35 = vld [vmem:[#allocation3 + $0x30] sm:$0xff] }
 0x6c2   : > { %3327 = vst.msk [vmem:[#allocation3 + $0x38] sm:$0xff] %vm1587_vm10, %v3239_v19  ;;  %v3408_v46 = vpop.permute.xlu2 %3407  ;;  %4044 = vmatmul.msk.f32.gmra.mxu1 %vm1791_vm13, %v3491_v35  ;;  %v7708_v19 = vld [vmem:[#allocation5_spill] sm:$0xff] }
 0x6c3   : > { %3460 = vst.msk [vmem:[#allocation3 + $0x38] sm:$0xff] %vm1721_vm12, %v3372_v43 }
 0x6c8   : > { %v3273_v3 = vpop.permute.xlu1 %3272  ;;  %v3508_v63 = vld [vmem:[#allocation3 + $0xb8] sm:$0xff] }
 0x6c9   : > { %3344 = vst.msk [vmem:[#allocation3 + $0xc0] sm:$0xff] %vm1587_vm10, %v3273_v3  ;;  %4061 = vmatmul.msk.f32.gmra.mxu3 %vm1791_vm13, %v3508_v63  ;;  %v3406_v26 = vpop.permute.xlu0 %3405 }
 0x6ca   : > { %3477 = vst.msk [vmem:[#allocation3 + $0xc0] sm:$0xff] %vm1721_vm12, %v3406_v26  ;;  %v3277_v40 = vpop.permute.xlu2 %3276  ;;  %v3492_v30 = vld [vmem:[#allocation3 + $0x38] sm:$0xff] }
 0x6cb   : > { %4045 = vmatmul.msk.f32.gmra.mxu1 %vm1791_vm13, %v3492_v30 }
 0x6d0   : > { %v3141_v31 = vpop.permute.xlu1 %3140 }
 0x6d1   : > { %3211 = vst.msk [vmem:[#allocation3 + $0xc8] sm:$0xff] %vm1452_vm9, %v3141_v31  ;;  %v3275_v39 = vpop.permute.xlu0 %3274  ;;  %v3509_v18 = vld [vmem:[#allocation3 + $0xc0] sm:$0xff] }
 0x6d2   : > { %3345 = vst.msk [vmem:[#allocation3 + $0xc8] sm:$0xff] %vm1587_vm10, %v3275_v39  ;;  %v3145_v9 = vpop.permute.xlu2 %3144  ;;  %4062 = vmatmul.msk.f32.gmra.mxu3 %vm1791_vm13, %v3509_v18 }
 0x6d3   : > { %3478 = vst.msk [vmem:[#allocation3 + $0xc8] sm:$0xff] %vm1721_vm12, %v3408_v46 }
 0x6d4   : > { %3213 = vst.msk [vmem:[#allocation3 + $0xd8] sm:$0xff] %vm1452_vm9, %v3145_v9 }
 0x6d8   : > { %v3374_v36 = vpop.permute.xlu1 %3373 }
 0x6d9   : > { %3461 = vst.msk [vmem:[#allocation3 + $0x40] sm:$0xff] %vm1721_vm12, %v3374_v36  ;;  %v3143_v51 = vpop.permute.xlu0 %3142 }
 0x6da   : > { %3212 = vst.msk [vmem:[#allocation3 + $0xd0] sm:$0xff] %vm1452_vm9, %v3143_v51  ;;  %v3378_v56 = vpop.permute.xlu2 %3377  ;;  %v3510_v23 = vld [vmem:[#allocation3 + $0xc8] sm:$0xff] }
 0x6db   : > { %3346 = vst.msk [vmem:[#allocation3 + $0xd0] sm:$0xff] %vm1587_vm10, %v3277_v40  ;;  %4063 = vmatmul.msk.f32.gmra.mxu3 %vm1791_vm13, %v3510_v23 }
 0x6e0   : > { %v3243_v5 = vpop.permute.xlu1 %3242  ;;  %v3493_v21 = vld [vmem:[#allocation3 + $0x40] sm:$0xff] }
 0x6e1   : > { %3329 = vst.msk [vmem:[#allocation3 + $0x48] sm:$0xff] %vm1587_vm10, %v3243_v5  ;;  %4046 = vmatmul.msk.f32.gmra.mxu1 %vm1791_vm13, %v3493_v21  ;;  %v3376_v45 = vpop.permute.xlu0 %3375 }
 0x6e2   : > { %3462 = vst.msk [vmem:[#allocation3 + $0x48] sm:$0xff] %vm1721_vm12, %v3376_v45  ;;  %v3247_v55 = vpop.permute.xlu2 %3246 }
 0x6e3   : > { %3331 = vst.msk [vmem:[#allocation3 + $0x58] sm:$0xff] %vm1587_vm10, %v3247_v55  ;;  %v7710_v55 = vld [vmem:[#allocation10_spill] sm:$0xff] }
 0x6e8   : > { %v3410_v7 = vpop.permute.xlu1 %3409 }
 0x6e9   : > { %3479 = vst.msk [vmem:[#allocation3 + $0xd0] sm:$0xff] %vm1721_vm12, %v3410_v7  ;;  %v3245_v17 = vpop.permute.xlu0 %3244  ;;  %v3494_v32 = vld [vmem:[#allocation3 + $0x48] sm:$0xff] }
 0x6ea   : > { %3330 = vst.msk [vmem:[#allocation3 + $0x50] sm:$0xff] %vm1587_vm10, %v3245_v17  ;;  %v3414_v54 = vpop.permute.xlu2 %3413  ;;  %4047 = vmatmul.msk.f32.gmra.mxu1 %vm1791_vm13, %v3494_v32 }
 0x6eb   : > { %3463 = vst.msk [vmem:[#allocation3 + $0x50] sm:$0xff] %vm1721_vm12, %v3378_v56  ;;  %v7709_v56 = vld [vmem:[#allocation26_spill] sm:$0xff] }
 0x6f0   : > { %v3279_v1 = vpop.permute.xlu1 %3278  ;;  %v3511_v25 = vld [vmem:[#allocation3 + $0xd0] sm:$0xff] }
 0x6f1   : > { %3347 = vst.msk [vmem:[#allocation3 + $0xd8] sm:$0xff] %vm1587_vm10, %v3279_v1  ;;  %4064 = vmatmul.msk.f32.gmra.mxu3 %vm1791_vm13, %v3511_v25  ;;  %v3412_v15 = vpop.permute.xlu0 %3411 }
 0x6f2   : > { %3480 = vst.msk [vmem:[#allocation3 + $0xd8] sm:$0xff] %vm1721_vm12, %v3412_v15  ;;  %v3283_v34 = vpop.permute.xlu2 %3282  ;;  %v3495_v8 = vld [vmem:[#allocation3 + $0x50] sm:$0xff] }
 0x6f3   : > { %4048 = vmatmul.msk.f32.gmra.mxu1 %vm1791_vm13, %v3495_v8 }
 0x6f8   : > { %v3147_v6 = vpop.permute.xlu1 %3146  ;;  %v3638_v28 = vpop.f32.mrf.mxu1 }
 0x6f9   : > { %3214 = vst.msk [vmem:[#allocation3 + $0xe0] sm:$0xff] %vm1452_vm9, %v3147_v6  ;;  %v3738_v60 = vmul.f32 %v7096_v59, %v3638_v28  ;;  %v3281_v14 = vpop.permute.xlu0 %3280  ;;  %v3512_v27 = vld [vmem:[#allocation3 + $0xd8] sm:$0xff] }
 0x6fa   : > { %3348 = vst.msk [vmem:[#allocation3 + $0xe0] sm:$0xff] %vm1587_vm10, %v3281_v14  ;;  %v3151_v42 = vpop.permute.xlu2 %3150  ;;  %4065 = vmatmul.msk.f32.gmra.mxu3 %vm1791_vm13, %v3512_v27  ;;  %v7711_v14 = vld [vmem:[#allocation27_spill] sm:$0xff] }
 0x6fb   : > { %v3774_v53 = vadd.f32 %v7101_v2, %v3738_v60  ;;  %3481 = vst.msk [vmem:[#allocation3 + $0xe0] sm:$0xff] %vm1721_vm12, %v3414_v54 }
 0x6fc   : > { %v3686_v48 = vpop.f32.mrf.mxu3  ;;  %3216 = vst.msk [vmem:[#allocation3 + $0xf0] sm:$0xff] %vm1452_vm9, %v3151_v42  ;;  %v7712_v42 = vld [vmem:[#allocation11_spill] sm:$0xff] }
 0x6fd   : > { %v3754_v50 = vmul.f32 %v7096_v59, %v3686_v48  ;;  %v3806_v16 = vadd.f32 %v3774_v53, %v7705_v0 }
 0x6ff   : > { %v3790_v10 = vadd.f32 %v7101_v2, %v3754_v50  ;;  %v3838_v20 = vmax.f32 %v3806_v16, 0.0 }
 0x700   : > { %v3380_v13 = vpop.permute.xlu1 %3379 }
 0x701   : > { %3464 = vst.msk [vmem:[#allocation3 + $0x58] sm:$0xff] %vm1721_vm12, %v3380_v13  ;;  %v3822_v22 = vadd.f32 %v3790_v10, %v7706_v58  ;;  %v3149_v4 = vpop.permute.xlu0 %3148  ;;  %3870 = vxpose.xlu2.b32.start [1/16] (narrow) %v3838_v20, 8 }
 0x702   : > { %3215 = vst.msk [vmem:[#allocation3 + $0xe8] sm:$0xff] %vm1452_vm9, %v3149_v4  ;;  %v3384_v44 = vpop.permute.xlu2 %3383  ;;  %v3513_v49 = vld [vmem:[#allocation3 + $0xe0] sm:$0xff] }
 0x703   : > { %v3854_v24 = vmax.f32 %v3822_v22, 0.0  ;;  %3349 = vst.msk [vmem:[#allocation3 + $0xe8] sm:$0xff] %vm1587_vm10, %v3283_v34  ;;  %4066 = vmatmul.msk.f32.gmra.mxu3 %vm1791_vm13, %v3513_v49  ;;  %v7713_v49 = vld [vmem:[#allocation33_spill] sm:$0xff] }
 0x705   : > { %3902 = vxpose.xlu0.b32.start [1/16] (narrow) %v3854_v24, 8  ;;  %v3689_v61 = vpop.f32.mrf.mxu3 }
 0x706   : > { %v3755_v43 = vmul.f32 %v7096_v59, %v3689_v61 }
 0x707   : > { %v3641_v62 = vpop.f32.mrf.mxu1 }
 0x708   : > { %v3249_v47 = vpop.permute.xlu1 %3248  ;;  %v3496_v52 = vld [vmem:[#allocation3 + $0x58] sm:$0xff]  ;;  %v3791_v38 = vadd.f32 %v7101_v2, %v3755_v43  ;;  %v3739_v41 = vmul.f32 %v7096_v59, %v3641_v62  ;;  %v7714_v43 = vld [vmem:[#allocation6_spill] sm:$0xff] }
 0x709   : > { %3332 = vst.msk [vmem:[#allocation3 + $0x60] sm:$0xff] %vm1587_vm10, %v3249_v47  ;;  %4049 = vmatmul.msk.f32.gmra.mxu1 %vm1791_vm13, %v3496_v52  ;;  %v3382_v11 = vpop.permute.xlu0 %3381 }
 0x70a   : > { %v3775_v12 = vadd.f32 %v7101_v2, %v3739_v41  ;;  %3465 = vst.msk [vmem:[#allocation3 + $0x60] sm:$0xff] %vm1721_vm12, %v3382_v11  ;;  %v3253_v57 = vpop.permute.xlu2 %3252  ;;  %v3823_v29 = vadd.f32 %v3791_v38, %v7707_v33 }
 0x70b   : > { %3334 = vst.msk [vmem:[#allocation3 + $0x70] sm:$0xff] %vm1587_vm10, %v3253_v57 }
 0x70c   : > { %v3855_v37 = vmax.f32 %v3823_v29, 0.0  ;;  %v3807_v35 = vadd.f32 %v3775_v12, %v7708_v19  ;;  %v7715_v19 = vld [vmem:[#allocation35_spill] sm:$0xff] }
 0x70e   : > { %3903 = vxpose.xlu0.b32.cont [2/16] (narrow) %v3855_v37, 8  ;;  %v3839_v46 = vmax.f32 %v3807_v35, 0.0 }
 0x710   : > { %v3416_v3 = vpop.permute.xlu1 %3415  ;;  %3871 = vxpose.xlu2.b32.cont [2/16] (narrow) %v3839_v46, 8 }
 0x711   : > { %3482 = vst.msk [vmem:[#allocation3 + $0xe8] sm:$0xff] %vm1721_vm12, %v3416_v3  ;;  %v3251_v63 = vpop.permute.xlu0 %3250  ;;  %v3497_v26 = vld [vmem:[#allocation3 + $0x60] sm:$0xff]  ;;  %v7716_v3 = vld [vmem:[#allocation7_spill] sm:$0xff] }
 0x712   : > { %3333 = vst.msk [vmem:[#allocation3 + $0x68] sm:$0xff] %vm1587_vm10, %v3251_v63  ;;  %4050 = vmatmul.msk.f32.gmra.mxu1 %vm1791_vm13, %v3497_v26  ;;  %v3420_v6 = vpop.permute.xlu2 %3419 }
 0x713   : > { %3466 = vst.msk [vmem:[#allocation3 + $0x68] sm:$0xff] %vm1721_vm12, %v3384_v44 }
 0x714   : > { %v3692_v40 = vpop.f32.mrf.mxu3 }
 0x715   : > { %v3756_v30 = vmul.f32 %v7096_v59, %v3692_v40 }
 0x716   : > { %v3644_v31 = vpop.f32.mrf.mxu1 }
 0x717   : > { %v3792_v39 = vadd.f32 %v7101_v2, %v3756_v30  ;;  %v3740_v18 = vmul.f32 %v7096_v59, %v3644_v31 }
 0x718   : > { %v3285_v9 = vpop.permute.xlu1 %3284  ;;  %v3514_v36 = vld [vmem:[#allocation3 + $0xe8] sm:$0xff] }
 0x719   : > { %v3776_v51 = vadd.f32 %v7101_v2, %v3740_v18  ;;  %3350 = vst.msk [vmem:[#allocation3 + $0xf0] sm:$0xff] %vm1587_vm10, %v3285_v9  ;;  %4067 = vmatmul.msk.f32.gmra.mxu3 %vm1791_vm13, %v3514_v36  ;;  %v3824_v23 = vadd.f32 %v3792_v39, %v7709_v56  ;;  %v3418_v5 = vpop.permute.xlu0 %3417  ;;  %v7717_v9 = vld [vmem:[#allocation30_spill] sm:$0xff] }
 0x71a   : > { %3483 = vst.msk [vmem:[#allocation3 + $0xf0] sm:$0xff] %vm1721_vm12, %v3418_v5  ;;  %v3498_v21 = vld [vmem:[#allocation3 + $0x68] sm:$0xff] }
 0x71b   : > { %v3856_v45 = vmax.f32 %v3824_v23, 0.0  ;;  %v3808_v7 = vadd.f32 %v3776_v51, %v7710_v55  ;;  %4051 = vmatmul.msk.f32.gmra.mxu1 %vm1791_vm13, %v3498_v21  ;;  %v7718_v23 = vld [vmem:[#allocation8_spill] sm:$0xff] }
 0x71c   : > { %v3695_v17 = vpop.f32.mrf.mxu3 }
 0x71d   : > { %3904 = vxpose.xlu0.b32.cont [3/16] (narrow) %v3856_v45, 8  ;;  %v3840_v32 = vmax.f32 %v3808_v7, 0.0  ;;  %v3757_v54 = vmul.f32 %v7096_v59, %v3695_v17 }
 0x71e   : > { %v3647_v1 = vpop.f32.mrf.mxu1 }
 0x71f   : > { %v3741_v25 = vmul.f32 %v7096_v59, %v3647_v1  ;;  %3872 = vxpose.xlu2.b32.cont [3/16] (narrow) %v3840_v32, 8  ;;  %v3793_v15 = vadd.f32 %v7101_v2, %v3757_v54  ;;  %v7719_v54 = vld [vmem:[#allocation9_spill] sm:$0xff] }
 0x720   : > { %v3153_v34 = vpop.permute.xlu1 %3152 }
 0x721   : > { %v3777_v8 = vadd.f32 %v7101_v2, %v3741_v25  ;;  %3217 = vst.msk [vmem:[#allocation3 + $0xf8] sm:$0xff] %vm1452_vm9, %v3153_v34  ;;  %v3287_v28 = vpop.permute.xlu0 %3286  ;;  %v3515_v60 = vld [vmem:[#allocation3 + $0xf0] sm:$0xff]  ;;  %v3825_v27 = vadd.f32 %v3793_v15, %v7711_v14  ;;  %v7720_v34 = vld [vmem:[#allocation32_spill] sm:$0xff] }
 0x722   : > { %3351 = vst.msk [vmem:[#allocation3 + $0xf8] sm:$0xff] %vm1587_vm10, %v3287_v28  ;;  %4068 = vmatmul.msk.f32.gmra.mxu3 %vm1791_vm13, %v3515_v60 }
 0x723   : > { %v3809_v53 = vadd.f32 %v3777_v8, %v7712_v42  ;;  %3484 = vst.msk [vmem:[#allocation3 + $0xf8] sm:$0xff] %vm1721_vm12, %v3420_v6  ;;  %v3857_v48 = vmax.f32 %v3825_v27, 0.0  ;;  %v7721_v27 = vld [vmem:[#allocation36_spill] sm:$0xff] }
 0x725   : > { %v3841_v50 = vmax.f32 %v3809_v53, 0.0  ;;  %3905 = vxpose.xlu0.b32.cont [4/16] (narrow) %v3857_v48, 8  ;;  %v3698_v0 = vpop.f32.mrf.mxu3 }
 0x726   : > { %v3758_v16 = vmul.f32 %v7096_v59, %v3698_v0 }
 0x727   : > { %3873 = vxpose.xlu2.b32.cont [4/16] (narrow) %v3841_v50, 8  ;;  %v3650_v13 = vpop.f32.mrf.mxu1 }
 0x728   : > { %v3386_v10 = vpop.permute.xlu1 %3385  ;;  %v3794_v20 = vadd.f32 %v7101_v2, %v3758_v16  ;;  %v3742_v58 = vmul.f32 %v7096_v59, %v3650_v13 }
 0x729   : > { %3467 = vst.msk [vmem:[#allocation3 + $0x70] sm:$0xff] %vm1721_vm12, %v3386_v10  ;;  %v3255_v22 = vpop.permute.xlu0 %3254 }
 0x72a   : > { %v3778_v4 = vadd.f32 %v7101_v2, %v3742_v58  ;;  %3335 = vst.msk [vmem:[#allocation3 + $0x78] sm:$0xff] %vm1587_vm10, %v3255_v22  ;;  %v3516_v44 = vld [vmem:[#allocation3 + $0xf8] sm:$0xff]  ;;  %v3826_v24 = vadd.f32 %v3794_v20, %v7713_v49  ;;  %v7723_v22 = vld [vmem:[#allocation38_spill] sm:$0xff] }
 0x72b   : > { %4069 = vmatmul.msk.f32.gmra.mxu3 %vm1791_vm13, %v3516_v44  ;;  %v7722_v20 = vld [vmem:[#allocation15_spill] sm:$0xff] }
 0x72c   : > { %v3858_v61 = vmax.f32 %v3826_v24, 0.0  ;;  %v3810_v47 = vadd.f32 %v3778_v4, %v7714_v43 }
 0x72e   : > { %3906 = vxpose.xlu0.b32.cont [5/16] (narrow) %v3858_v61, 8  ;;  %v3842_v62 = vmax.f32 %v3810_v47, 0.0  ;;  %v7724_v47 = vld [vmem:[#allocation16_spill] sm:$0xff] }
 0x730   : > { %v3388_v52 = vpop.permute.xlu1 %3387  ;;  %v3499_v38 = vld [vmem:[#allocation3 + $0x70] sm:$0xff]  ;;  %3874 = vxpose.xlu2.b32.cont [5/16] (narrow) %v3842_v62, 8 }
 0x731   : > { %3468 = vst.msk [vmem:[#allocation3 + $0x78] sm:$0xff] %vm1721_vm12, %v3388_v52  ;;  %4052 = vmatmul.msk.f32.gmra.mxu1 %vm1791_vm13, %v3499_v38 }
 0x734   : > { %v3701_v41 = vpop.f32.mrf.mxu3 }
 0x735   : > { %v3759_v11 = vmul.f32 %v7096_v59, %v3701_v41 }
 0x736   : > { %v3653_v12 = vpop.f32.mrf.mxu1 }
 0x737   : > { %v3795_v57 = vadd.f32 %v7101_v2, %v3759_v11  ;;  %v3743_v33 = vmul.f32 %v7096_v59, %v3653_v12 }
 0x738   : > { %v3500_v29 = vld [vmem:[#allocation3 + $0x78] sm:$0xff] }
 0x739   : > { %v3779_v37 = vadd.f32 %v7101_v2, %v3743_v33  ;;  %4053 = vmatmul.msk.f32.gmra.mxu1 %vm1791_vm13, %v3500_v29  ;;  %v3827_v35 = vadd.f32 %v3795_v57, %v7715_v19  ;;  %v7725_v33 = vld [vmem:[#allocation12_spill] sm:$0xff] }
 0x73b   : > { %v3859_v46 = vmax.f32 %v3827_v35, 0.0  ;;  %v3811_v63 = vadd.f32 %v3779_v37, %v7716_v3  ;;  %v7726_v35 = vld [vmem:[#allocation44_spill] sm:$0xff] }
 0x73c   : > { %v3704_v26 = vpop.f32.mrf.mxu3 }
 0x73d   : > { %v3760_v40 = vmul.f32 %v7096_v59, %v3704_v26  ;;  %3907 = vxpose.xlu0.b32.cont [6/16] (narrow) %v3859_v46, 8  ;;  %v3843_v30 = vmax.f32 %v3811_v63, 0.0 }
 0x73f   : > { %v3796_v31 = vadd.f32 %v7101_v2, %v3760_v40  ;;  %3875 = vxpose.xlu2.b32.cont [6/16] (narrow) %v3843_v30, 8  ;;  %v3656_v39 = vpop.f32.mrf.mxu1  ;;  %v7727_v30 = vld [vmem:[#allocation46_spill] sm:$0xff] }
 0x740   : > { %v3744_v18 = vmul.f32 %v7096_v59, %v3656_v39 }
 0x741   : > { %v3828_v36 = vadd.f32 %v3796_v31, %v7717_v9 }
 0x742   : > { %v3780_v51 = vadd.f32 %v7101_v2, %v3744_v18 }
 0x743   : > { %v3860_v56 = vmax.f32 %v3828_v36, 0.0 }
 0x744   : > { %v3812_v5 = vadd.f32 %v3780_v51, %v7718_v23 }
 0x745   : > { %3908 = vxpose.xlu0.b32.cont [7/16] (narrow) %v3860_v56, 8 }
 0x746   : > { %v3844_v21 = vmax.f32 %v3812_v5, 0.0  ;;  %v7728_v5 = vld [vmem:[#allocation14_spill] sm:$0xff] }
 0x748   : > { %3876 = vxpose.xlu2.b32.cont [7/16] (narrow) %v3844_v21, 8  ;;  %v3659_v45 = vpop.f32.mrf.mxu1 }
 0x749   : > { %v3745_v55 = vmul.f32 %v7096_v59, %v3659_v45  ;;  %v7729_v45 = vld [vmem:[#allocation40_spill] sm:$0xff] }
 0x74b   : > { %v3781_v7 = vadd.f32 %v7101_v2, %v3745_v55 }
 0x74c   : > { %v3707_v17 = vpop.f32.mrf.mxu3 }
 0x74d   : > { %v3761_v32 = vmul.f32 %v7096_v59, %v3707_v17  ;;  %v3813_v1 = vadd.f32 %v3781_v7, %v7719_v54 }
 0x74f   : > { %v3797_v25 = vadd.f32 %v7101_v2, %v3761_v32  ;;  %v3845_v15 = vmax.f32 %v3813_v1, 0.0 }
 0x751   : > { %v3829_v8 = vadd.f32 %v3797_v25, %v7720_v34  ;;  %3877 = vxpose.xlu2.b32.cont [8/16] (narrow) %v3845_v15, 8  ;;  %v7730_v25 = vld [vmem:[#allocation17_spill] sm:$0xff] }
 0x753   : > { %v3861_v6 = vmax.f32 %v3829_v8, 0.0 }
 0x755   : > { %3909 = vxpose.xlu0.b32.cont [8/16] (narrow) %v3861_v6, 8  ;;  %v3710_v28 = vpop.f32.mrf.mxu3 }
 0x756   : > { %v3762_v60 = vmul.f32 %v7096_v59, %v3710_v28 }
 0x758   : > { %v3798_v14 = vadd.f32 %v7101_v2, %v3762_v60 }
 0x75a   : > { %v3830_v42 = vadd.f32 %v3798_v14, %v7721_v27  ;;  %v7731_v27 = vld [vmem:[#allocation18_spill] sm:$0xff] }
 0x75c   : > { %v3862_v53 = vmax.f32 %v3830_v42, 0.0 }
 0x75e   : > { %v3662_v48 = vpop.f32.mrf.mxu1  ;;  %3910 = vxpose.xlu0.b32.cont [9/16] (narrow) %v3862_v53, 8  ;;  %v3713_v0 = vpop.f32.mrf.mxu3 }
 0x75f   : > { %v3746_v50 = vmul.f32 %v7096_v59, %v3662_v48  ;;  %v3763_v16 = vmul.f32 %v7096_v59, %v3713_v0 }
 0x761   : > { %v3782_v10 = vadd.f32 %v7101_v2, %v3746_v50  ;;  %v3799_v13 = vadd.f32 %v7101_v2, %v3763_v16  ;;  %v7732_v50 = vld [vmem:[#allocation42_spill] sm:$0xff] }
 0x763   : > { %v3814_v58 = vadd.f32 %v3782_v10, %v7722_v20  ;;  %v3831_v4 = vadd.f32 %v3799_v13, %v7723_v22 }
 0x765   : > { %v3846_v44 = vmax.f32 %v3814_v58, 0.0  ;;  %v3863_v49 = vmax.f32 %v3831_v4, 0.0  ;;  %v7733_v58 = vld [vmem:[#allocation78_spill] sm:$0xff] }
 0x767   : > { %3878 = vxpose.xlu2.b32.cont [9/16] (narrow) %v3846_v44, 8  ;;  %v3665_v24 = vpop.f32.mrf.mxu1  ;;  %3911 = vxpose.xlu0.b32.cont [10/16] (narrow) %v3863_v49, 8 }
 0x768   : > { %v3747_v61 = vmul.f32 %v7096_v59, %v3665_v24 }
 0x76a   : > { %v3783_v43 = vadd.f32 %v7101_v2, %v3747_v61 }
 0x76c   : > { %v3815_v62 = vadd.f32 %v3783_v43, %v7724_v47 }
 0x76e   : > { %v3847_v52 = vmax.f32 %v3815_v62, 0.0  ;;  %v7734_v62 = vld [vmem:[#allocation23_spill] sm:$0xff] }
 0x770   : > { %3879 = vxpose.xlu2.b32.cont [10/16] (narrow) %v3847_v52, 8  ;;  %v3668_v38 = vpop.f32.mrf.mxu1 }
 0x771   : > { %v3748_v41 = vmul.f32 %v7096_v59, %v3668_v38  ;;  %v7735_v38 = vld [vmem:[#allocation79_spill] sm:$0xff] }
 0x773   : > { %v3784_v11 = vadd.f32 %v7101_v2, %v3748_v41 }
 0x774   : > { %v3716_v12 = vpop.f32.mrf.mxu3 }
 0x775   : > { %v3764_v57 = vmul.f32 %v7096_v59, %v3716_v12  ;;  %v3816_v29 = vadd.f32 %v3784_v11, %v7725_v33 }
 0x777   : > { %v3800_v37 = vadd.f32 %v7101_v2, %v3764_v57  ;;  %v3848_v19 = vmax.f32 %v3816_v29, 0.0 }
 0x779   : > { %v3832_v46 = vadd.f32 %v3800_v37, %v7726_v35  ;;  %3880 = vxpose.xlu2.b32.cont [11/16] (narrow) %v3848_v19, 8  ;;  %v7736_v37 = vld [vmem:[#allocation25_spill] sm:$0xff] }
 0x77b   : > { %v3864_v3 = vmax.f32 %v3832_v46, 0.0 }
 0x77d   : > { %3912 = vxpose.xlu0.b32.cont [11/16] (narrow) %v3864_v3, 8  ;;  %v3719_v63 = vpop.f32.mrf.mxu3 }
 0x77e   : > { %v3765_v26 = vmul.f32 %v7096_v59, %v3719_v63 }
 0x780   : > { %v3801_v40 = vadd.f32 %v7101_v2, %v3765_v26 }
 0x782   : > { %v3833_v31 = vadd.f32 %v3801_v40, %v7727_v30 }
 0x784   : > { %v3865_v39 = vmax.f32 %v3833_v31, 0.0 }
 0x786   : > { %v3671_v18 = vpop.f32.mrf.mxu1  ;;  %3913 = vxpose.xlu0.b32.cont [12/16] (narrow) %v3865_v39, 8  ;;  %v3722_v36 = vpop.f32.mrf.mxu3 }
 0x787   : > { %v3749_v9 = vmul.f32 %v7096_v59, %v3671_v18  ;;  %v3766_v51 = vmul.f32 %v7096_v59, %v3722_v36 }
 0x789   : > { %v3785_v56 = vadd.f32 %v7101_v2, %v3749_v9  ;;  %v3802_v23 = vadd.f32 %v7101_v2, %v3766_v51 }
 0x78b   : > { %v3817_v21 = vadd.f32 %v3785_v56, %v7728_v5  ;;  %v3834_v55 = vadd.f32 %v3802_v23, %v7729_v45 }
 0x78d   : > { %v3849_v7 = vmax.f32 %v3817_v21, 0.0  ;;  %v3866_v17 = vmax.f32 %v3834_v55, 0.0 }
 0x78f   : > { %3881 = vxpose.xlu2.b32.cont [12/16] (narrow) %v3849_v7, 8  ;;  %v3674_v32 = vpop.f32.mrf.mxu1  ;;  %3914 = vxpose.xlu0.b32.cont [13/16] (narrow) %v3866_v17, 8 }
 0x790   : > { %v3750_v54 = vmul.f32 %v7096_v59, %v3674_v32 }
 0x792   : > { %v3786_v1 = vadd.f32 %v7101_v2, %v3750_v54 }
 0x794   : > { %v3818_v15 = vadd.f32 %v3786_v1, %v7730_v25 }
 0x796   : > { %v3850_v34 = vmax.f32 %v3818_v15, 0.0 }
 0x798   : > { %3882 = vxpose.xlu2.b32.cont [13/16] (narrow) %v3850_v34, 8  ;;  %v3677_v8 = vpop.f32.mrf.mxu1 }
 0x799   : > { %v3751_v6 = vmul.f32 %v7096_v59, %v3677_v8 }
 0x79b   : > { %v3787_v28 = vadd.f32 %v7101_v2, %v3751_v6 }
 0x79c   : > { %v3725_v60 = vpop.f32.mrf.mxu3 }
 0x79d   : > { %v3767_v14 = vmul.f32 %v7096_v59, %v3725_v60  ;;  %v3819_v42 = vadd.f32 %v3787_v28, %v7731_v27 }
 0x79f   : > { %v3803_v53 = vadd.f32 %v7101_v2, %v3767_v14  ;;  %v3851_v48 = vmax.f32 %v3819_v42, 0.0 }
 0x7a1   : > { %v3835_v0 = vadd.f32 %v3803_v53, %v7732_v50  ;;  %3883 = vxpose.xlu2.b32.cont [14/16] (narrow) %v3851_v48, 8 }
 0x7a3   : > { %v3867_v16 = vmax.f32 %v3835_v0, 0.0 }
 0x7a5   : > { %3915 = vxpose.xlu0.b32.cont [14/16] (narrow) %v3867_v16, 8  ;;  %v3728_v10 = vpop.f32.mrf.mxu3 }
 0x7a6   : > { %v3768_v13 = vmul.f32 %v7096_v59, %v3728_v10 }
 0x7a8   : > { %v3804_v20 = vadd.f32 %v7101_v2, %v3768_v13 }
 0x7aa   : > { %v3836_v22 = vadd.f32 %v3804_v20, %v7733_v58 }
 0x7ac   : > { %v3868_v4 = vmax.f32 %v3836_v22, 0.0 }
 0x7ae   : > { %v3680_v44 = vpop.f32.mrf.mxu1  ;;  %3916 = vxpose.xlu0.b32.cont [15/16] (narrow) %v3868_v4, 8  ;;  %v3731_v24 = vpop.f32.mrf.mxu3 }
 0x7af   : > { %v3752_v49 = vmul.f32 %v7096_v59, %v3680_v44  ;;  %v3769_v61 = vmul.f32 %v7096_v59, %v3731_v24 }
 0x7b1   : > { %v3788_v43 = vadd.f32 %v7101_v2, %v3752_v49  ;;  %v3805_v47 = vadd.f32 %v7101_v2, %v3769_v61 }
 0x7b3   : > { %v3820_v52 = vadd.f32 %v3788_v43, %v7734_v62  ;;  %v3837_v41 = vadd.f32 %v3805_v47, %v7735_v38 }
 0x7b5   : > { %v3852_v11 = vmax.f32 %v3820_v52, 0.0  ;;  %v3869_v57 = vmax.f32 %v3837_v41, 0.0 }
 0x7b6   : > { %v3683_v12 = vpop.f32.mrf.mxu1 }
 0x7b7   : > { %v3753_v33 = vmul.f32 %v7096_v59, %v3683_v12  ;;  %3884 = vxpose.xlu2.b32.cont [15/16] (narrow) %v3852_v11, 8  ;;  %3917 = vxpose.xlu0.b32.end [16/16] (narrow) %v3869_v57, 8 }
 0x7b9   : > { %v3789_v29 = vadd.f32 %v7101_v2, %v3753_v33 }
 0x7bb   : > { %v3821_v19 = vadd.f32 %v3789_v29, %v7736_v37 }
 0x7bd   : > { %v3853_v35 = vmax.f32 %v3821_v19, 0.0 }
 0x7bf   : > { %3885 = vxpose.xlu2.b32.end [16/16] (narrow) %v3853_v35, 8 }
 0x7e0   : > { %v3886_v3 = vpop.trf.xlu2 }
 0x7e3   : > { %v3918_v46 = vpop.trf.xlu0 }
 0x7e4   : > { %v3936_v63 = vrot.slane %v3918_v46, 4 }
 0x7e6   : > { %v3937_v26 = vsel %vm1888_vm11, %v3886_v3, %v3936_v63 }
 0x7e7   : > { %3939 = vst [vmem:[%s278_s26] sm:$0xff] %v3937_v26 }
 0x7e8 PF: > { %s17_s24 = sadd.s32 1, %s4113_s24  }
 0x7e9   : > { %p14_p4 = scmp.ge.s32.totalorder %s17_s24, 4  }
 0x7eb   :  { %16 = sbr.rel (!%p14_p4) target bundleno = 1 (0x1), region = 79 }

</bundles_post_ra>
